<compile_context>
chip_gen: v7x
topology: tpu7x:2x2x1
jax: 0.10.0
libtpu: 0.0.40
codegen_flags: <defaults>
</compile_context>

<pallas_src>
import jax
import jax.numpy as jnp
from jax.experimental import pallas as pl
from jax.experimental.pallas import tpu as pltpu

_EPS = 1e-5  # PyTorch BatchNorm2d default eps


# ----------------------------- helpers ------------------------------------ #

def _fold_bn(gamma, beta, mean, var, eps=_EPS):
    scale = gamma / jnp.sqrt(var + eps)
    bias = beta - mean * scale
    return scale, bias


def _tap_list(stride):
    """3x3/pad=1 conv taps expressed on the space-to-depth input:
    (channel group, unit-stride dy, unit-stride dx), in (kh, kw) order."""
    taps = []
    for kh in range(3):
        for kw in range(3):
            g = (kh % stride) * stride + (kw % stride)
            taps.append((g, kh // stride, kw // stride))
    return taps


def _space_to_depth_pad(x_nhwc, stride, ho, wo):
    """Zero-pad for the conv and fold the stride phases into channels:
    (N,H,W,C) -> (N, ho + 2//stride, wo + 2//stride, stride*stride*C).
    For stride==1 this is just the padded input (pure reorganisation, no 9x)."""
    n, h, w, c = x_nhwc.shape
    php = ho + 2 // stride
    pwp = wo + 2 // stride
    xp = jnp.pad(x_nhwc, ((0, 0),
                          (1, stride * php - h - 1),
                          (1, stride * pwp - w - 1),
                          (0, 0)))
    xs = xp.reshape(n, php, stride, pwp, stride, c)
    xs = xs.transpose(0, 1, 3, 2, 4, 5).reshape(n, php, pwp, stride * stride * c)
    return xs


def _extract_patches(x, taps, ho, wo, c):
    """x: (Ph, Pw, G*c) VMEM value -> (ho*wo, len(taps)*c) patch matrix.
    Only leading-dim collapses; the lane (channel) dim is never reshaped."""
    cols = [x[dy:dy + ho, dx:dx + wo, g * c:(g + 1) * c] for (g, dy, dx) in taps]
    return jnp.concatenate(cols, axis=-1).reshape(ho * wo, len(taps) * c)


# --------------------------- fused PlainBasic ------------------------------ #

def plain_basic_forward(params, x_nchw, stride=1):
    """Pallas-backed PlainBasic forward; input/output are NCHW like PyTorch."""
    x = jnp.transpose(x_nchw, (0, 2, 3, 1))          # NCHW -> NHWC (once)
    n, h, w, cin = x.shape
    c1 = params["w1"].shape[-1]
    c2 = params["w2"].shape[-1]
    ho = (h - 1) // stride + 1
    wo = (w - 1) // stride + 1

    # Fold inference BN into weights + bias (no scale operand in the kernel).
    s1, b1 = _fold_bn(params["bn1_gamma"], params["bn1_beta"],
                      params["bn1_mean"], params["bn1_var"])
    s2, b2 = _fold_bn(params["bn2_gamma"], params["bn2_beta"],
                      params["bn2_mean"], params["bn2_var"])
    # (3,3,Cin,Cout) -> (9*Cin, Cout); row order matches the in-kernel tap order.
    w1m = (params["w1"] * s1).reshape(9 * cin, c1).astype(jnp.bfloat16)
    w2m = (params["w2"] * s2).reshape(9 * c1, c2).astype(jnp.bfloat16)
    b1m = b1.reshape(1, c1).astype(jnp.float32)
    b2m = b2.reshape(1, c2).astype(jnp.float32)

    xs = _space_to_depth_pad(x, stride, ho, wo).astype(jnp.bfloat16)
    _, php, pwp, gc = xs.shape
    taps1 = _tap_list(stride)      # layer 1 (stride folded into channel groups)
    taps2 = _tap_list(1)           # layer 2 is always stride 1

    def kernel(x_ref, w1_ref, b1_ref, w2_ref, b2_ref, o_ref, act_ref):
        # ---- layer 1: conv3x3(stride) + folded BN + ReLU -------------------
        xv = x_ref[0]                                     # (php, pwp, gc) bf16
        p1 = _extract_patches(xv, taps1, ho, wo, cin)     # (M, 9*cin) bf16
        y1 = jnp.dot(p1, w1_ref[...], preferred_element_type=jnp.float32)
        y1 = jnp.maximum(y1 + b1_ref[...], 0.0)           # f32 epilogue

        # (Re)write only the zero pad ring of the layer-1 scratch; the
        # interior is fully overwritten below.  Not gated on program_id==0:
        # with a "parallel" grid axis each core has its own scratch and may
        # never execute step 0, so the ring must be established every step.
        zrow = jnp.zeros((1, wo + 2, c1), act_ref.dtype)
        zcol = jnp.zeros((ho + 2, 1, c1), act_ref.dtype)
        act_ref[0:1, :, :] = zrow
        act_ref[ho + 1:ho + 2, :, :] = zrow
        act_ref[:, 0:1, :] = zcol
        act_ref[:, wo + 1:wo + 2, :] = zcol

        # Park layer-1 output (with zero pad ring) in VMEM -- no HBM round trip.
        act_ref[pl.ds(1, ho), pl.ds(1, wo), :] = (
            y1.reshape(ho, wo, c1).astype(act_ref.dtype))

        # ---- layer 2: conv3x3(stride 1) + folded BN + ReLU -----------------
        p2 = _extract_patches(act_ref[...], taps2, ho, wo, c1)   # (M, 9*c1)
        y2 = jnp.dot(p2, w2_ref[...], preferred_element_type=jnp.float32)
        y2 = jnp.maximum(y2 + b2_ref[...], 0.0)
        o_ref[0] = y2.reshape(ho, wo, c2).astype(o_ref.dtype)

    # Advisory cost estimate (helps XLA schedule around the custom call).
    m = ho * wo
    flops = 2 * n * (m * 9 * cin * c1 + m * 9 * c1 * c2)
    bytes_accessed = (xs.size * 2 + w1m.size * 2 + w2m.size * 2
                      + (b1m.size + b2m.size) * 4 + n * m * c2 * 4)
    cost = pl.CostEstimate(flops=flops, transcendentals=0,
                           bytes_accessed=bytes_accessed)

    out = pl.pallas_call(
        kernel,
        out_shape=jax.ShapeDtypeStruct((n, ho, wo, c2), jnp.float32),
        grid=(n,),
        in_specs=[
            pl.BlockSpec((1, php, pwp, gc), lambda i: (i, 0, 0, 0)),
            pl.BlockSpec((9 * cin, c1), lambda i: (0, 0)),
            pl.BlockSpec((1, c1), lambda i: (0, 0)),
            pl.BlockSpec((9 * c1, c2), lambda i: (0, 0)),
            pl.BlockSpec((1, c2), lambda i: (0, 0)),
        ],
        out_specs=pl.BlockSpec((1, ho, wo, c2), lambda i: (i, 0, 0, 0)),
        scratch_shapes=[pltpu.VMEM((ho + 2, wo + 2, c1), jnp.bfloat16)],
        compiler_params=pltpu.CompilerParams(
            dimension_semantics=("parallel",)),
        cost_estimate=cost,
    )(xs, w1m, b1m, w2m, b2m)

    return jnp.transpose(out, (0, 3, 1, 2))              # NHWC -> NCHW


# ------------------------------ parameters --------------------------------- #

def init_plain_basic_params(key, in_c, out_c):
    ks = jax.random.split(key, 10)
    f32 = jnp.float32
    return {
        "w1": 0.1 * jax.random.normal(ks[0], (3, 3, in_c, out_c), f32),   # HWIO
        "bn1_gamma": jax.random.uniform(ks[1], (out_c,), f32, 0.5, 1.5),
        "bn1_beta": 0.1 * jax.random.normal(ks[2], (out_c,), f32),
        "bn1_mean": 0.1 * jax.random.normal(ks[3], (out_c,), f32),
        "bn1_var": jax.random.uniform(ks[4], (out_c,), f32, 0.5, 1.5),
        "w2": 0.1 * jax.random.normal(ks[5], (3, 3, out_c, out_c), f32),  # HWIO
        "bn2_gamma": jax.random.uniform(ks[6], (out_c,), f32, 0.5, 1.5),
        "bn2_beta": 0.1 * jax.random.normal(ks[7], (out_c,), f32),
        "bn2_mean": 0.1 * jax.random.normal(ks[8], (out_c,), f32),
        "bn2_var": jax.random.uniform(ks[9], (out_c,), f32, 0.5, 1.5),
    }


# ----------------------------- plain-JAX reference ------------------------- #

def _bf16(a):
    # round-trip through bf16 (same quantisation points as the kernel path)
    return a.astype(jnp.bfloat16).astype(jnp.float32)


def _reference_forward(params, x_nchw, stride=1):
    """lax.conv reference with PyTorch PlainBasic semantics (eval BN), using
    the same bf16 input/weight quantisation as the kernel + f32 accumulation."""
    x = _bf16(jnp.transpose(x_nchw, (0, 2, 3, 1)))

    def layer(xin, w, g, b, m, v, s):
        sc = g / jnp.sqrt(v + _EPS)
        bb = b - m * sc
        y = jax.lax.conv_general_dilated(
            xin, _bf16(w * sc), (s, s), ((1, 1), (1, 1)),
            dimension_numbers=("NHWC", "HWIO", "NHWC"),
            preferred_element_type=jnp.float32)
        return jnp.maximum(y + bb, 0.0)

    y = layer(x, params["w1"], params["bn1_gamma"], params["bn1_beta"],
              params["bn1_mean"], params["bn1_var"], stride)
    y = layer(_bf16(y), params["w2"], params["bn2_gamma"], params["bn2_beta"],
              params["bn2_mean"], params["bn2_var"], 1)
    return jnp.transpose(y, (0, 3, 1, 2))


# ---------------------------------- main ----------------------------------- #

if __name__ == "__main__":
    key = jax.random.PRNGKey(0)
    k_x, k_p = jax.random.split(key)

    in_c, out_c = 4, 8
    x = jax.random.normal(k_x, (2, in_c, 16, 16), jnp.float32)   # NCHW
    params = init_plain_basic_params(k_p, in_c, out_c)

    fwd = jax.jit(plain_basic_forward, static_argnames="stride")
    for stride in (1, 2):
        out = jax.block_until_ready(fwd(params, x, stride=stride))
        ref = jax.block_until_ready(_reference_forward(params, x, stride=stride))
        assert out.shape == ref.shape, (out.shape, ref.shape)
        err = float(jnp.max(jnp.abs(out - ref)))
        assert jnp.allclose(out, ref, atol=2e-2, rtol=2e-2), (
            f"mismatch at stride={stride}: max_abs_err={err}")

    print("KERNEL_OK")
</pallas_src>

<mosaic_0001>
module attributes {stable_mosaic.version = 11 : i64} {
  func.func @kernel(%arg0: i32, %arg1: memref<1x18x18x4xbf16, #tpu.memory_space<vmem>>, %arg2: memref<36x8xbf16, #tpu.memory_space<vmem>>, %arg3: memref<1x8xf32, #tpu.memory_space<vmem>>, %arg4: memref<72x8xbf16, #tpu.memory_space<vmem>>, %arg5: memref<1x8xf32, #tpu.memory_space<vmem>>, %arg6: memref<1x16x16x8xf32, #tpu.memory_space<vmem>>, %arg7: memref<18x18x8xbf16, #tpu.memory_space<vmem>>) attributes {dimension_semantics = [#tpu.dimension_semantics<parallel>], iteration_bounds = array<i64: 2>, scalar_prefetch = 0 : i64, scratch_operands = 1 : i64, tpu.core_type = #tpu.core_type<tc>, window_params = [{transform_indices = @transform_0, window_bounds = array<i64: 1, 18, 18, 4>}, {pipeline_mode = #tpu.pipeline_mode<synchronous>, transform_indices = @transform_1, window_bounds = array<i64: 36, 8>}, {pipeline_mode = #tpu.pipeline_mode<synchronous>, transform_indices = @transform_2, window_bounds = array<i64: 1, 8>}, {pipeline_mode = #tpu.pipeline_mode<synchronous>, transform_indices = @transform_3, window_bounds = array<i64: 72, 8>}, {pipeline_mode = #tpu.pipeline_mode<synchronous>, transform_indices = @transform_4, window_bounds = array<i64: 1, 8>}, {transform_indices = @transform_5, window_bounds = array<i64: 1, 16, 16, 8>}]} {
    %c0 = arith.constant 0 : index
    %c0_0 = arith.constant 0 : index
    %c0_1 = arith.constant 0 : index
    %c0_2 = arith.constant 0 : index
    %0 = vector.load %arg1[%c0, %c0_0, %c0_1, %c0_2] : memref<1x18x18x4xbf16, #tpu.memory_space<vmem>>, vector<1x18x18x4xbf16>
    %1 = vector.shape_cast %0 : vector<1x18x18x4xbf16> to vector<18x18x4xbf16>
    %2 = vector.extract_strided_slice %1 {offsets = [0, 0, 0], sizes = [16, 16, 4], strides = [1, 1, 1]} : vector<18x18x4xbf16> to vector<16x16x4xbf16>
    %3 = vector.extract_strided_slice %1 {offsets = [0, 1, 0], sizes = [16, 16, 4], strides = [1, 1, 1]} : vector<18x18x4xbf16> to vector<16x16x4xbf16>
    %4 = vector.extract_strided_slice %1 {offsets = [0, 2, 0], sizes = [16, 16, 4], strides = [1, 1, 1]} : vector<18x18x4xbf16> to vector<16x16x4xbf16>
    %5 = vector.extract_strided_slice %1 {offsets = [1, 0, 0], sizes = [16, 16, 4], strides = [1, 1, 1]} : vector<18x18x4xbf16> to vector<16x16x4xbf16>
    %6 = vector.extract_strided_slice %1 {offsets = [1, 1, 0], sizes = [16, 16, 4], strides = [1, 1, 1]} : vector<18x18x4xbf16> to vector<16x16x4xbf16>
    %7 = vector.extract_strided_slice %1 {offsets = [1, 2, 0], sizes = [16, 16, 4], strides = [1, 1, 1]} : vector<18x18x4xbf16> to vector<16x16x4xbf16>
    %8 = vector.extract_strided_slice %1 {offsets = [2, 0, 0], sizes = [16, 16, 4], strides = [1, 1, 1]} : vector<18x18x4xbf16> to vector<16x16x4xbf16>
    %9 = vector.extract_strided_slice %1 {offsets = [2, 1, 0], sizes = [16, 16, 4], strides = [1, 1, 1]} : vector<18x18x4xbf16> to vector<16x16x4xbf16>
    %10 = vector.extract_strided_slice %1 {offsets = [2, 2, 0], sizes = [16, 16, 4], strides = [1, 1, 1]} : vector<18x18x4xbf16> to vector<16x16x4xbf16>
    %11 = tpu.concatenate %2, %3, %4, %5, %6, %7, %8, %9, %10 in 2 : vector<16x16x4xbf16>, vector<16x16x4xbf16>, vector<16x16x4xbf16>, vector<16x16x4xbf16>, vector<16x16x4xbf16>, vector<16x16x4xbf16>, vector<16x16x4xbf16>, vector<16x16x4xbf16>, vector<16x16x4xbf16> -> vector<16x16x36xbf16>
    %12 = vector.shape_cast %11 : vector<16x16x36xbf16> to vector<256x36xbf16>
    %c0_3 = arith.constant 0 : index
    %c0_4 = arith.constant 0 : index
    %13 = vector.load %arg2[%c0_3, %c0_4] : memref<36x8xbf16, #tpu.memory_space<vmem>>, vector<36x8xbf16>
    %cst = arith.constant dense<0.000000e+00> : vector<256x8xf32>
    %14 = tpu.matmul %12, %13, %cst {dimension_numbers = #tpu.dot_dimension_numbers<[1], [0], [0], [1], [0, 0, 1, 1], [], []>} : vector<256x36xbf16>, vector<36x8xbf16>, vector<256x8xf32> -> vector<256x8xf32>
    %c0_5 = arith.constant 0 : index
    %c0_6 = arith.constant 0 : index
    %15 = vector.load %arg3[%c0_5, %c0_6] : memref<1x8xf32, #tpu.memory_space<vmem>>, vector<1x8xf32>
    %16 = vector.broadcast %15 : vector<1x8xf32> to vector<256x8xf32>
    %17 = arith.addf %14, %16 : vector<256x8xf32>
    %cst_7 = arith.constant 0.000000e+00 : f32
    %18 = vector.broadcast %cst_7 : f32 to vector<256x8xf32>
    %19 = arith.maximumf %17, %18 : vector<256x8xf32>
    %cst_8 = arith.constant 0.000000e+00 : bf16
    %20 = vector.broadcast %cst_8 : bf16 to vector<1x18x8xbf16>
    %cst_9 = arith.constant 0.000000e+00 : bf16
    %21 = vector.broadcast %cst_9 : bf16 to vector<18x1x8xbf16>
    %c0_10 = arith.constant 0 : index
    %c0_11 = arith.constant 0 : index
    %c0_12 = arith.constant 0 : index
    %22 = vector.load %arg7[%c0_10, %c0_11, %c0_12] : memref<18x18x8xbf16, #tpu.memory_space<vmem>>, vector<1x18x8xbf16>
    tpu.vector_store %arg7[%c0_10, %c0_11, %c0_12], %20 {strides = array<i32>} : memref<18x18x8xbf16, #tpu.memory_space<vmem>>, vector<1x18x8xbf16>,
    %c17 = arith.constant 17 : index
    %c0_13 = arith.constant 0 : index
    %c0_14 = arith.constant 0 : index
    %23 = vector.load %arg7[%c17, %c0_13, %c0_14] : memref<18x18x8xbf16, #tpu.memory_space<vmem>>, vector<1x18x8xbf16>
    tpu.vector_store %arg7[%c17, %c0_13, %c0_14], %20 {strides = array<i32>} : memref<18x18x8xbf16, #tpu.memory_space<vmem>>, vector<1x18x8xbf16>,
    %c0_15 = arith.constant 0 : index
    %c0_16 = arith.constant 0 : index
    %c0_17 = arith.constant 0 : index
    %24 = vector.load %arg7[%c0_15, %c0_16, %c0_17] : memref<18x18x8xbf16, #tpu.memory_space<vmem>>, vector<18x1x8xbf16>
    tpu.vector_store %arg7[%c0_15, %c0_16, %c0_17], %21 {strides = array<i32>} : memref<18x18x8xbf16, #tpu.memory_space<vmem>>, vector<18x1x8xbf16>,
    %c0_18 = arith.constant 0 : index
    %c17_19 = arith.constant 17 : index
    %c0_20 = arith.constant 0 : index
    %25 = vector.load %arg7[%c0_18, %c17_19, %c0_20] : memref<18x18x8xbf16, #tpu.memory_space<vmem>>, vector<18x1x8xbf16>
    tpu.vector_store %arg7[%c0_18, %c17_19, %c0_20], %21 {strides = array<i32>} : memref<18x18x8xbf16, #tpu.memory_space<vmem>>, vector<18x1x8xbf16>,
    %26 = vector.shape_cast %19 : vector<256x8xf32> to vector<16x16x8xf32>
    %27 = arith.truncf %26 : vector<16x16x8xf32> to vector<16x16x8xbf16>
    %c1 = arith.constant 1 : index
    %c1_21 = arith.constant 1 : index
    %c0_22 = arith.constant 0 : index
    %28 = vector.load %arg7[%c1, %c1_21, %c0_22] : memref<18x18x8xbf16, #tpu.memory_space<vmem>>, vector<16x16x8xbf16>
    tpu.vector_store %arg7[%c1, %c1_21, %c0_22], %27 {strides = array<i32>} : memref<18x18x8xbf16, #tpu.memory_space<vmem>>, vector<16x16x8xbf16>,
    %c0_23 = arith.constant 0 : index
    %c0_24 = arith.constant 0 : index
    %c0_25 = arith.constant 0 : index
    %29 = vector.load %arg7[%c0_23, %c0_24, %c0_25] : memref<18x18x8xbf16, #tpu.memory_space<vmem>>, vector<18x18x8xbf16>
    %30 = vector.extract_strided_slice %29 {offsets = [0, 0, 0], sizes = [16, 16, 8], strides = [1, 1, 1]} : vector<18x18x8xbf16> to vector<16x16x8xbf16>
    %31 = vector.extract_strided_slice %29 {offsets = [0, 1, 0], sizes = [16, 16, 8], strides = [1, 1, 1]} : vector<18x18x8xbf16> to vector<16x16x8xbf16>
    %32 = vector.extract_strided_slice %29 {offsets = [0, 2, 0], sizes = [16, 16, 8], strides = [1, 1, 1]} : vector<18x18x8xbf16> to vector<16x16x8xbf16>
    %33 = vector.extract_strided_slice %29 {offsets = [1, 0, 0], sizes = [16, 16, 8], strides = [1, 1, 1]} : vector<18x18x8xbf16> to vector<16x16x8xbf16>
    %34 = vector.extract_strided_slice %29 {offsets = [1, 1, 0], sizes = [16, 16, 8], strides = [1, 1, 1]} : vector<18x18x8xbf16> to vector<16x16x8xbf16>
    %35 = vector.extract_strided_slice %29 {offsets = [1, 2, 0], sizes = [16, 16, 8], strides = [1, 1, 1]} : vector<18x18x8xbf16> to vector<16x16x8xbf16>
    %36 = vector.extract_strided_slice %29 {offsets = [2, 0, 0], sizes = [16, 16, 8], strides = [1, 1, 1]} : vector<18x18x8xbf16> to vector<16x16x8xbf16>
    %37 = vector.extract_strided_slice %29 {offsets = [2, 1, 0], sizes = [16, 16, 8], strides = [1, 1, 1]} : vector<18x18x8xbf16> to vector<16x16x8xbf16>
    %38 = vector.extract_strided_slice %29 {offsets = [2, 2, 0], sizes = [16, 16, 8], strides = [1, 1, 1]} : vector<18x18x8xbf16> to vector<16x16x8xbf16>
    %39 = tpu.concatenate %30, %31, %32, %33, %34, %35, %36, %37, %38 in 2 : vector<16x16x8xbf16>, vector<16x16x8xbf16>, vector<16x16x8xbf16>, vector<16x16x8xbf16>, vector<16x16x8xbf16>, vector<16x16x8xbf16>, vector<16x16x8xbf16>, vector<16x16x8xbf16>, vector<16x16x8xbf16> -> vector<16x16x72xbf16>
    %40 = vector.shape_cast %39 : vector<16x16x72xbf16> to vector<256x72xbf16>
    %c0_26 = arith.constant 0 : index
    %c0_27 = arith.constant 0 : index
    %41 = vector.load %arg4[%c0_26, %c0_27] : memref<72x8xbf16, #tpu.memory_space<vmem>>, vector<72x8xbf16>
    %cst_28 = arith.constant dense<0.000000e+00> : vector<256x8xf32>
    %42 = tpu.matmul %40, %41, %cst_28 {dimension_numbers = #tpu.dot_dimension_numbers<[1], [0], [0], [1], [0, 0, 1, 1], [], []>} : vector<256x72xbf16>, vector<72x8xbf16>, vector<256x8xf32> -> vector<256x8xf32>
    %c0_29 = arith.constant 0 : index
    %c0_30 = arith.constant 0 : index
    %43 = vector.load %arg5[%c0_29, %c0_30] : memref<1x8xf32, #tpu.memory_space<vmem>>, vector<1x8xf32>
    %44 = vector.broadcast %43 : vector<1x8xf32> to vector<256x8xf32>
    %45 = arith.addf %42, %44 : vector<256x8xf32>
    %cst_31 = arith.constant 0.000000e+00 : f32
    %46 = vector.broadcast %cst_31 : f32 to vector<256x8xf32>
    %47 = arith.maximumf %45, %46 : vector<256x8xf32>
    %48 = vector.shape_cast %47 : vector<256x8xf32> to vector<16x16x8xf32>
    %c0_32 = arith.constant 0 : index
    %c0_33 = arith.constant 0 : index
    %c0_34 = arith.constant 0 : index
    %c0_35 = arith.constant 0 : index
    %49 = vector.load %arg6[%c0_32, %c0_33, %c0_34, %c0_35] : memref<1x16x16x8xf32, #tpu.memory_space<vmem>>, vector<1x16x16x8xf32>
    %50 = vector.shape_cast %49 : vector<1x16x16x8xf32> to vector<16x16x8xf32>
    %51 = vector.shape_cast %48 : vector<16x16x8xf32> to vector<1x16x16x8xf32>
    tpu.vector_store %arg6[%c0_32, %c0_33, %c0_34, %c0_35], %51 {strides = array<i32>} : memref<1x16x16x8xf32, #tpu.memory_space<vmem>>, vector<1x16x16x8xf32>,
    return
  }
  func.func @transform_0(%arg0: i32) -> (i32, i32, i32, i32) {
    %c0_i32 = arith.constant 0 : i32
    %c0_i32_0 = arith.constant 0 : i32
    %c0_i32_1 = arith.constant 0 : i32
    %c0_i32_2 = arith.constant 0 : i32
    return %arg0, %c0_i32, %c0_i32_0, %c0_i32_1 : i32, i32, i32, i32
  }
  func.func @transform_1(%arg0: i32) -> (i32, i32) {
    %c0_i32 = arith.constant 0 : i32
    %c0_i32_0 = arith.constant 0 : i32
    %c0_i32_1 = arith.constant 0 : i32
    return %c0_i32, %c0_i32_0 : i32, i32
  }
  func.func @transform_2(%arg0: i32) -> (i32, i32) {
    %c0_i32 = arith.constant 0 : i32
    %c0_i32_0 = arith.constant 0 : i32
    %c0_i32_1 = arith.constant 0 : i32
    return %c0_i32, %c0_i32_0 : i32, i32
  }
  func.func @transform_3(%arg0: i32) -> (i32, i32) {
    %c0_i32 = arith.constant 0 : i32
    %c0_i32_0 = arith.constant 0 : i32
    %c0_i32_1 = arith.constant 0 : i32
    return %c0_i32, %c0_i32_0 : i32, i32
  }
  func.func @transform_4(%arg0: i32) -> (i32, i32) {
    %c0_i32 = arith.constant 0 : i32
    %c0_i32_0 = arith.constant 0 : i32
    %c0_i32_1 = arith.constant 0 : i32
    return %c0_i32, %c0_i32_0 : i32, i32
  }
  func.func @transform_5(%arg0: i32) -> (i32, i32, i32, i32) {
    %c0_i32 = arith.constant 0 : i32
    %c0_i32_0 = arith.constant 0 : i32
    %c0_i32_1 = arith.constant 0 : i32
    %c0_i32_2 = arith.constant 0 : i32
    return %arg0, %c0_i32, %c0_i32_0, %c0_i32_1 : i32, i32, i32, i32
  }
}

</mosaic_0001>

<bundles_post_ra>
// kernel: plain_basic_forward.1
= control target key start
LH: loop header
LB: loop body
LE: loop exit
PB: predicated region body
PF: predicated region fallthrough
CT: control target
= control target key end

     0   :  { %s3947_s18 = smov 0   ;;  %s5402_s0 = inlined_call_operand.vmem [shape: bf16[2,18,18,4], index: 0, kind: input, shape index: {}]   ;;  %s5403_s1 = inlined_call_operand.vmem [shape: bf16[36,8], index: 1, kind: input, shape index: {}]   ;;  %s5404_s2 = inlined_call_operand.vmem [shape: f32[1,8], index: 2, kind: input, shape index: {}]   ;;  %s5405_s3 = inlined_call_operand.vmem [shape: bf16[72,8], index: 3, kind: input, shape index: {}]   ;;  %s5406_s4 = inlined_call_operand.vmem [shape: f32[1,8], index: 4, kind: input, shape index: {}]   ;;  %s5407_s5 = inlined_call_operand.vmem [shape: f32[2,16,16,8], index: 5, kind: output, shape index: {}]  }
   0x1 LB: > { %s3472_s19 = sadd.s32 4294967295, %s3902_s18   ;;  %p3476_p0 = scmp.ge.s32.totalorder %s3902_s18, 1  ;;  %s3902_s18 = sphi %s3947_s18, %s15_s18  }
   0x2   : > { %p187_p1 = scmp.lt.s32.totalorder %s3902_s18, 3 }
   0x4   : > { %p188_p2 = pnand %p3476_p0, %p187_p1 }
   0x5   : > { %p215_p3 = scmp.lt.s32.totalorder (!%p188_p2), %s3472_s19, 1  ;;  %vm633_vm0 = vcmask (!%p188_p2), 1046528   ;;  %s3904_s24 = smov (!%p188_p2), 12   ;;  %vm408_vm1 = vsmask.f32 (!%p188_p2), 7424  ;;  %v3825_v44 = vld [vmem:[%s5403_s1] sm:$0xff] (!%p188_p2)  }
   0x6   : > { %191 = sbr.rel (%p188_p2) target bundleno = 1005 (0x3ed), region = 40  ;;  %s3905_s25 = smov (!%p188_p2), 20   ;;  %3701 = vmatprep.subr.bf16.mxu0 (!%p188_p2), %v3825_v44  ;;  %v3827_v46 = vld [vmem:[%s5403_s1 + $0x8] sm:$0xff] (!%p188_p2)   ;;  %v3829_v50 = vld [vmem:[%s5403_s1 + $0x10] ss:$0 sps:$4 sm:$0x33] (!%p188_p2)  }
   0x7   : > { %s3906_s26 = smov (!%p188_p2), 8   ;;  %s3907_s27 = smov (!%p188_p2), 4   ;;  %3702 = vmatpush3.bf16.msra.mxu0 (!%p188_p2), %v3825_v44  ;;  %vm1276_vm2 = vcmask (!%p188_p2), 1041408   ;;  %vm952_vm3 = vcmask (!%p188_p2), 31744   ;;  %vm985_vm4 = vcmask (!%p188_p2), 64512   ;;  %vm1018_vm5 = vcmask (!%p188_p2), 97280  }
   0x8   : > { %s3908_s28 = smov (!%p188_p2), 16   ;;  %s3909_s6 = smov (!%p188_p2), 24   ;;  %3703 = vmatprep.subr.bf16.mxu0 (!%p188_p2), %v3827_v46  ;;  %v1278_v54 = vsel (!%p188_p2), %vm1276_vm2, %v3829_v50, 0  ;;  %vm1051_vm6 = vcmask (!%p188_p2), 130048   ;;  %vm1084_vm7 = vcmask (!%p188_p2), 162816   ;;  %vm1117_vm8 = vcmask (!%p188_p2), 195584  }
   0x9   : > { %s3910_s9 = smov (!%p188_p2), 28   ;;  %s3911_s12 = smov (!%p188_p2), 32   ;;  %vm1150_vm9 = vcmask (!%p188_p2), 228352   ;;  %vm1183_vm10 = vcmask (!%p188_p2), 261120   ;;  %vm1243_vm11 = vcmask (!%p188_p2), 293888   ;;  %vm1473_vm12 = vcmask (!%p188_p2), 60416  }
   0xa   : > { %vm1476_vm13 = vcmask (!%p188_p2), 57344   ;;  %vm5408_vm14 = vsmask.f32 (!%p188_p2), 256  ;;  %s3913_s15 = smov (!%p188_p2), 48   ;;  %s3914_s16 = smov (!%p188_p2), 40  }
   0xb   : > { %3704 = vmatpush3.bf16.msra.mxu0 (!%p188_p2), %v3827_v46  ;;  %vm4352_vm15 = vmand (!%p188_p2), %vm1476_vm13, %vm5408_vm14  ;;  %s3915_s17 = smov (!%p188_p2), 64  }
   0xc   : > { %3781 = vmatprep.subr.msk.bf16.mxu0 (!%p188_p2), %vm1276_vm2, %v3829_v50  ;;  %vm1539_vm2 = vsmask.f32 (!%p188_p2), 7938 }
   0xd   : > { %s5419_s19 = smov (!%p215_p3, %s3472_s19), 1  ;;  %vm4373_vm14 = vmand %vm1476_vm13, %vm1539_vm2 }
   0xe   : > { %s3783_s20 = smul.u32 216, %s5419_s19 }
   0xf   : > { %3706 = vmatpush3.bf16.msra.mxu0 %v1278_v54 }
  0x10   : > { %s3961_s23 = scalar_lea.vmem %s5402_s0, %s3783_s20  ;;  %s3916_s20 = smov 56  }
  0x11   : > { %v3964_v0 = vld [vmem:[%s3961_s23 + $0x18] sm:$0xff]   ;;  %v3967_v1 = vld [vmem:[%s3961_s23 + $0xc] sm:$0xff]   ;;  %v3807_v2 = vld [vmem:[%s3961_s23 + $0x14] ss:$0 sps:$4 sm:$0x11]  }
  0x12   : > { %721 = vrot.lane.b32.xlu1 %v3964_v0, %s3904_s24  ;;  %v3973_v3 = vld [vmem:[%s3961_s23] sm:$0xff]   ;;  %719 = vrot.lane.b32.xlu0 %v3967_v1, %s3904_s24  ;;  %v637_v4 = vrot.slane %v3967_v1, 1  ;;  %v638_v5 = vrot.slane %v3807_v2, 1  ;;  %v3809_v6 = vld [vmem:[%s3961_s23 + $0x8] ss:$0 sps:$4 sm:$0x11]  }
  0x13   : > { %v634_v7 = vrot.slane %v3973_v3, 1  ;;  %v410_v8 = vshrl.u32 %v3973_v3, 16  ;;  %v412_v9 = vshll.u32 %v3973_v3, 16  ;;  %v422_v10 = vshrl.u32 %v3967_v1, 16  ;;  %v3993_v30 = vld [vmem:[%s3961_s23 + $0x24] sm:$0xff]   ;;  %v4023_v49 = vld [vmem:[%s3961_s23 + $0x30] sm:$0xff]  }
  0x14   : > { %v639_v11 = vsel %vm633_vm0, %v637_v4, %v638_v5  ;;  %v635_v12 = vrot.slane %v3809_v6, 1  ;;  %v417_v13 = vshll.u32 %v3809_v6, 16  ;;  %v3810_v14 = vld [vmem:[%s3961_s23 + $0x20] ss:$0 sps:$4 sm:$0x11]   ;;  %v424_v15 = vshll.u32 %v3967_v1, 16 }
  0x15   : > { %v414_v16 = vrot.slane %v412_v9, 1  ;;  %v429_v17 = vshll.u32 %v3807_v2, 16  ;;  %v436_v18 = vshll.u32 %v3964_v0, 16  ;;  %v640_v23 = vrot.slane %v3964_v0, 1  ;;  %v4039_v60 = vld [vmem:[%s3961_s23 + $0x3c] sm:$0xff]  }
  0x16   : > { %801 = vrot.lane.b32.xlu0 %v639_v11, %s3905_s25  ;;  %v636_v19 = vsel %vm633_vm0, %v634_v7, %v635_v12  ;;  %v419_v20 = vrot.slane %v417_v13, 1  ;;  %v426_v21 = vrot.slane %v424_v15, 1  ;;  %v434_v25 = vshrl.u32 %v3964_v0, 16  ;;  %v3812_v33 = vld [vmem:[%s3961_s23 + $0x2c] ss:$0 sps:$4 sm:$0x11]  }
  0x17   : > { %682 = vrot.lane.b32.xlu1 %v636_v19, %s3906_s26  ;;  %v415_v22 = vor.u32 %v414_v16, %v410_v8  ;;  %v431_v24 = vrot.slane %v429_v17, 1  ;;  %v641_v26 = vrot.slane %v3810_v14, 1  ;;  %v438_v28 = vrot.slane %v436_v18, 1  ;;  %v3814_v51 = vld [vmem:[%s3961_s23 + $0x38] ss:$0 sps:$4 sm:$0x11]  }
  0x18   : > { %v427_v27 = vor.u32 %v426_v21, %v422_v10  ;;  %v441_v29 = vshll.u32 %v3810_v14, 16  ;;  %v448_v37 = vshll.u32 %v3993_v30, 16  ;;  %v446_v39 = vshrl.u32 %v3993_v30, 16  ;;  %v3816_v2 = vld [vmem:[%s3961_s23 + $0x44] ss:$0 sps:$4 sm:$0x11]  }
  0x19   : > { %v420_v31 = vsel %vm408_vm1, %v415_v22, %v419_v20  ;;  %v642_v34 = vsel %vm633_vm0, %v640_v23, %v641_v26  ;;  %v439_v35 = vor.u32 %v438_v28, %v434_v25  ;;  %v453_v41 = vshll.u32 %v3812_v33, 16  ;;  %v4064_v14 = vld [vmem:[%s3961_s23 + $0x48] sm:$0xff]   ;;  %v3818_v16 = vld [vmem:[%s3961_s23 + $0x50] ss:$0 sps:$4 sm:$0x11]   ;;  %v4077_v23 = vld [vmem:[%s3961_s23 + $0x54] sm:$0xff]  }
  0x1a   : > { %601 = vrot.lane.b32.xlu0 %v420_v31, %s3907_s27  ;;  %v432_v32 = vsel %vm408_vm1, %v427_v27, %v431_v24  ;;  %v443_v36 = vrot.slane %v441_v29, 1  ;;  %v450_v40 = vrot.slane %v448_v37, 1  ;;  %v643_v47 = vrot.slane %v3993_v30, 1  ;;  %v3820_v27 = vld [vmem:[%s3961_s23 + $0x5c] ss:$0 sps:$4 sm:$0x11]  }
  0x1b   : > { %684 = vrot.lane.b32.xlu1 %v639_v11, %s3906_s26  ;;  %v455_v43 = vrot.slane %v453_v41, 1  ;;  %v644_v48 = vrot.slane %v3812_v33, 1  ;;  %v460_v53 = vshll.u32 %v4023_v49, 16  ;;  %v458_v55 = vshrl.u32 %v4023_v49, 16 }
  0x1c   : > { %v444_v38 = vsel %vm408_vm1, %v439_v35, %v443_v36  ;;  %v451_v42 = vor.u32 %v450_v40, %v446_v39  ;;  %v465_v57 = vshll.u32 %v3814_v51, 16  ;;  %v646_v62 = vrot.slane %v4023_v49, 1  ;;  %v4102_v39 = vld [vmem:[%s3961_s23 + $0x60] sm:$0xff]   ;;  %v3822_v41 = vld [vmem:[%s3961_s23 + $0x68] ss:$0 sps:$4 sm:$0x11]  }
  0x1d   : > { %v645_v52 = vsel %vm633_vm0, %v643_v47, %v644_v48  ;;  %v462_v56 = vrot.slane %v460_v53, 1  ;;  %v647_v63 = vrot.slane %v3814_v51, 1  ;;  %v472_v4 = vshll.u32 %v4039_v60, 16  ;;  %v4115_v48 = vld [vmem:[%s3961_s23 + $0x6c] sm:$0xff]  }
  0x1e   : > { %603 = vrot.lane.b32.xlu0 %v432_v32, %s3907_s27  ;;  %v456_v45 = vsel %vm408_vm1, %v451_v42, %v455_v43  ;;  %v467_v59 = vrot.slane %v465_v57, 1  ;;  %v470_v6 = vshrl.u32 %v4039_v60, 16  ;;  %v477_v8 = vshll.u32 %v3816_v2, 16  ;;  %v3824_v53 = vld [vmem:[%s3961_s23 + $0x74] ss:$0 sps:$4 sm:$0x11]  }
  0x1f   : > { %803 = vrot.lane.b32.xlu1 %v642_v34, %s3905_s25  ;;  %v463_v58 = vor.u32 %v462_v56, %v458_v55  ;;  %v648_v5 = vsel %vm633_vm0, %v646_v62, %v647_v63  ;;  %v474_v7 = vrot.slane %v472_v4, 1  ;;  %v649_v12 = vrot.slane %v4039_v60, 1 }
  0x20   : > { %v479_v10 = vrot.slane %v477_v8, 1  ;;  %v650_v13 = vrot.slane %v3816_v2, 1  ;;  %v484_v17 = vshll.u32 %v4064_v14, 16  ;;  %v482_v18 = vshrl.u32 %v4064_v14, 16 }
  0x21   : > { %v468_v61 = vsel %vm408_vm1, %v463_v58, %v467_v59  ;;  %v475_v9 = vor.u32 %v474_v7, %v470_v6  ;;  %v489_v20 = vshll.u32 %v3818_v16, 16  ;;  %v652_v25 = vrot.slane %v4064_v14, 1 }
  0x22   : > { %766 = vrot.lane.b32.xlu0 %v432_v32, %s3908_s28  ;;  %v651_v15 = vsel %vm633_vm0, %v649_v12, %v650_v13  ;;  %v486_v19 = vrot.slane %v484_v17, 1  ;;  %v653_v26 = vrot.slane %v3818_v16, 1  ;;  %v496_v28 = vshll.u32 %v4077_v23, 16  ;;  %v3828_v13 = vld [vmem:[%s3961_s23 + $0x80] ss:$0 sps:$4 sm:$0x11]  }
  0x23   : > { %768 = vrot.lane.b32.xlu1 %v444_v38, %s3908_s28  ;;  %v480_v11 = vsel %vm408_vm1, %v475_v9, %v479_v10  ;;  %v491_v22 = vrot.slane %v489_v20, 1  ;;  %v494_v31 = vshrl.u32 %v4077_v23, 16  ;;  %v501_v33 = vshll.u32 %v3820_v27, 16  ;;  %v4140_v9 = vld [vmem:[%s3961_s23 + $0x78] sm:$0xff]  }
  0x24   : > { %v487_v21 = vor.u32 %v486_v19, %v482_v18  ;;  %v654_v29 = vsel %vm633_vm0, %v652_v25, %v653_v26  ;;  %v498_v32 = vrot.slane %v496_v28, 1  ;;  %v655_v37 = vrot.slane %v4077_v23, 1  ;;  %v4158_v28 = vld [vmem:[%s3961_s23 + $0x84] sm:$0xff]  }
  0x25   : > { %v503_v35 = vrot.slane %v501_v33, 1  ;;  %v508_v42 = vshll.u32 %v4102_v39, 16  ;;  %v506_v43 = vshrl.u32 %v4102_v39, 16  ;;  %v658_v51 = vrot.slane %v4102_v39, 1 }
  0x26   : > { %838 = vrot.lane.b32.xlu0 %v3964_v0, %s3909_s6  ;;  %v492_v24 = vsel %vm408_vm1, %v487_v21, %v491_v22  ;;  %v520_v54 = vshll.u32 %v4115_v48, 16  ;;  %v518_v56 = vshrl.u32 %v4115_v48, 16  ;;  %v525_v58 = vshll.u32 %v3824_v53, 16 }
  0x27   : > { %840 = vrot.lane.b32.xlu1 %v3993_v30, %s3909_s6  ;;  %v510_v44 = vrot.slane %v508_v42, 1  ;;  %v661_v6 = vrot.slane %v4115_v48, 1  ;;  %v662_v7 = vrot.slane %v3824_v53, 1  ;;  %v530_v19 = vshrl.u32 %v4140_v9, 16 }
  0x28   : > { %v522_v57 = vrot.slane %v520_v54, 1  ;;  %v527_v63 = vrot.slane %v525_v58, 1  ;;  %v537_v21 = vshll.u32 %v3828_v13, 16  ;;  %v664_v33 = vrot.slane %v4140_v9, 1 }
  0x29   : > { %v511_v46 = vor.u32 %v510_v44, %v506_v43 }
  0x2a   : > { %885 = vrot.lane.b32.xlu0 %v444_v38, %s3910_s9  ;;  %v523_v62 = vor.u32 %v522_v57, %v518_v56 }
  0x2b   : > { %887 = vrot.lane.b32.xlu1 %v456_v45, %s3910_s9 }
  0x2c   : > { %v528_v4 = vsel %vm408_vm1, %v523_v62, %v527_v63 }
  0x2e   : > { %920 = vrot.lane.b32.xlu0 %v642_v34, %s3911_s12 }
  0x2f   : > { %605 = vrot.lane.b32.xlu1 %v444_v38, %s3907_s27  ;;  %v656_v38 = vrot.slane %v3820_v27, 1 }
  0x31   : > { %v657_v40 = vsel %vm633_vm0, %v655_v37, %v656_v38  ;;  %v3831_v38 = vld [vmem:[%s3961_s23 + $0x8c] ss:$0 sps:$4 sm:$0x11]  }
  0x32   : > { %922 = vrot.lane.b32.xlu0 %v645_v52, %s3911_s12 }
  0x33   : > { %607 = vrot.lane.b32.xlu1 %v456_v45, %s3907_s27 }
  0x36   : > { %686 = vrot.lane.b32.xlu0 %v642_v34, %s3906_s26  ;;  %v499_v34 = vor.u32 %v498_v32, %v494_v31 }
  0x37   : > { %688 = vrot.lane.b32.xlu1 %v645_v52, %s3906_s26 }
  0x38   : > { %v504_v36 = vsel %vm408_vm1, %v499_v34, %v503_v35  ;;  %v665_v34 = vrot.slane %v3828_v13, 1 }
  0x3a   : > { %723 = vrot.lane.b32.xlu0 %v3993_v30, %s3904_s24 }
  0x3b   : > { %725 = vrot.lane.b32.xlu1 %v4023_v49, %s3904_s24 }
  0x3e   : > { %770 = vrot.lane.b32.xlu0 %v456_v45, %s3908_s28  ;;  %v513_v45 = vshll.u32 %v3822_v41, 16 }
  0x3f   : > { %772 = vrot.lane.b32.xlu1 %v468_v61, %s3908_s28 }
  0x40   : > { %v515_v47 = vrot.slane %v513_v45, 1  ;;  %v666_v45 = vsel %vm633_vm0, %v664_v33, %v665_v34 }
  0x42   : > { %805 = vrot.lane.b32.xlu0 %v645_v52, %s3905_s25  ;;  %v516_v50 = vsel %vm408_vm1, %v511_v46, %v515_v47  ;;  %v659_v52 = vrot.slane %v3822_v41, 1 }
  0x43   : > { %807 = vrot.lane.b32.xlu1 %v648_v5, %s3905_s25 }
  0x44   : > { %v660_v55 = vsel %vm633_vm0, %v658_v51, %v659_v52  ;;  %v549_v52 = vshll.u32 %v3831_v38, 16 }
  0x46   : > { %842 = vrot.lane.b32.xlu0 %v4023_v49, %s3909_s6 }
  0x47   : > { %844 = vrot.lane.b32.xlu1 %v4039_v60, %s3909_s6 }
  0x4a   : > { %889 = vrot.lane.b32.xlu0 %v468_v61, %s3910_s9 }
  0x4b   : > { %891 = vrot.lane.b32.xlu1 %v480_v11, %s3910_s9 }
  0x4e   : > { %924 = vrot.lane.b32.xlu0 %v648_v5, %s3911_s12 }
  0x4f   : > { %609 = vrot.lane.b32.xlu1 %v468_v61, %s3907_s27 }
  0x52   : > { %926 = vrot.lane.b32.xlu0 %v651_v15, %s3911_s12 }
  0x53   : > { %611 = vrot.lane.b32.xlu1 %v480_v11, %s3907_s27 }
  0x56   : > { %690 = vrot.lane.b32.xlu0 %v648_v5, %s3906_s26 }
  0x57   : > { %692 = vrot.lane.b32.xlu1 %v651_v15, %s3906_s26 }
  0x5a   : > { %727 = vrot.lane.b32.xlu0 %v4039_v60, %s3904_s24 }
  0x5b   : > { %729 = vrot.lane.b32.xlu1 %v4064_v14, %s3904_s24 }
  0x5e   : > { %774 = vrot.lane.b32.xlu0 %v480_v11, %s3908_s28  ;;  %v663_v11 = vsel %vm633_vm0, %v661_v6, %v662_v7  ;;  %v667_v6 = vrot.slane %v4158_v28, 1  ;;  %v668_v7 = vrot.slane %v3831_v38, 1 }
  0x5f   : > { %776 = vrot.lane.b32.xlu1 %v492_v24, %s3908_s28 }
  0x62   : > { %809 = vrot.lane.b32.xlu0 %v651_v15, %s3905_s25  ;;  %v532_v15 = vshll.u32 %v4140_v9, 16 }
  0x63   : > { %811 = vrot.lane.b32.xlu1 %v654_v29, %s3905_s25 }
  0x64   : > { %v534_v20 = vrot.slane %v532_v15, 1  ;;  %v3833_v15 = vld [vmem:[%s3961_s23 + $0x98] ss:$0 sps:$4 sm:$0x11]  }
  0x66   : > { %846 = vrot.lane.b32.xlu0 %v4064_v14, %s3909_s6  ;;  %v535_v27 = vor.u32 %v534_v20, %v530_v19 }
  0x67   : > { %848 = vrot.lane.b32.xlu1 %v4077_v23, %s3909_s6 }
  0x6a   : > { %893 = vrot.lane.b32.xlu0 %v492_v24, %s3910_s9 }
  0x6b   : > { %895 = vrot.lane.b32.xlu1 %v504_v36, %s3910_s9 }
  0x6e   : > { %928 = vrot.lane.b32.xlu0 %v654_v29, %s3911_s12 }
  0x6f   : > { %613 = vrot.lane.b32.xlu1 %v492_v24, %s3907_s27 }
  0x72   : > { %930 = vrot.lane.b32.xlu0 %v657_v40, %s3911_s12 }
  0x73   : > { %615 = vrot.lane.b32.xlu1 %v504_v36, %s3907_s27 }
  0x76   : > { %694 = vrot.lane.b32.xlu0 %v654_v29, %s3906_s26 }
  0x77   : > { %696 = vrot.lane.b32.xlu1 %v657_v40, %s3906_s26 }
  0x7a   : > { %731 = vrot.lane.b32.xlu0 %v4077_v23, %s3904_s24 }
  0x7b   : > { %733 = vrot.lane.b32.xlu1 %v4102_v39, %s3904_s24 }
  0x7e   : > { %778 = vrot.lane.b32.xlu0 %v504_v36, %s3908_s28 }
  0x7f   : > { %780 = vrot.lane.b32.xlu1 %v516_v50, %s3908_s28 }
  0x82   : > { %813 = vrot.lane.b32.xlu0 %v657_v40, %s3905_s25  ;;  %v544_v40 = vshll.u32 %v4158_v28, 16 }
  0x83   : > { %815 = vrot.lane.b32.xlu1 %v660_v55, %s3905_s25 }
  0x84   : > { %v722_v59 = vpop.permute.xlu1 %721  ;;  %v720_v61 = vpop.permute.xlu0 %719  ;;  %v546_v51 = vrot.slane %v544_v40, 1 }
  0x86   : > { %850 = vrot.lane.b32.xlu0 %v4102_v39, %s3909_s6 }
  0x87   : > { %852 = vrot.lane.b32.xlu1 %v4115_v48, %s3909_s6 }
  0x88   : > { %v802_v2 = vpop.permute.xlu0 %801 }
  0x89   : > { %v683_v5 = vpop.permute.xlu1 %682 }
  0x8a   : > { %897 = vrot.lane.b32.xlu0 %v516_v50, %s3910_s9 }
  0x8b   : > { %899 = vrot.lane.b32.xlu1 %v528_v4, %s3910_s9 }
  0x8c   : > { %v602_v8 = vpop.permute.xlu0 %601 }
  0x8d   : > { %v685_v10 = vpop.permute.xlu1 %684  ;;  %v954_v17 = vsel %vm952_vm3, %v3973_v3, %v602_v8  ;;  %v539_v3 = vrot.slane %v537_v21, 1  ;;  %v561_v21 = vshll.u32 %v3833_v15, 16 }
  0x8e   : > { %932 = vrot.lane.b32.xlu0 %v660_v55, %s3911_s12  ;;  %v987_v25 = vsel %vm985_vm4, %v954_v17, %v683_v5 }
  0x8f   : > { %617 = vrot.lane.b32.xlu1 %v516_v50, %s3907_s27  ;;  %v1020_v32 = vsel %vm1018_vm5, %v987_v25, %v720_v61  ;;  %v540_v37 = vsel %vm408_vm1, %v535_v27, %v539_v3  ;;  %v542_v50 = vshrl.u32 %v4158_v28, 16  ;;  %v551_v61 = vrot.slane %v549_v52, 1  ;;  %v4211_v27 = vld [vmem:[%s3961_s23 + $0x9c] sm:$0xff]  }
  0x90   : > { %v604_v12 = vpop.permute.xlu0 %603 }
  0x91   : > { %v804_v16 = vpop.permute.xlu1 %803  ;;  %v956_v24 = vsel %vm952_vm3, %v3967_v1, %v604_v12  ;;  %v669_v12 = vsel %vm633_vm0, %v667_v6, %v668_v7  ;;  %v673_v6 = vrot.slane %v4211_v27, 1 }
  0x92   : > { %934 = vrot.lane.b32.xlu0 %v663_v11, %s3911_s12  ;;  %v989_v29 = vsel %vm985_vm4, %v956_v24, %v685_v10  ;;  %v4198_v10 = vld [vmem:[%s3961_s23 + $0x90] sm:$0xff]  }
  0x93   : > { %619 = vrot.lane.b32.xlu1 %v528_v4, %s3907_s27  ;;  %v1022_v35 = vsel %vm1018_vm5, %v989_v29, %v722_v59  ;;  %v547_v59 = vor.u32 %v546_v51, %v542_v50  ;;  %v554_v19 = vshrl.u32 %v4198_v10, 16 }
  0x94   : > { %v767_v18 = vpop.permute.xlu0 %766 }
  0x95   : > { %v769_v22 = vpop.permute.xlu1 %768  ;;  %v1053_v1 = vsel %vm1051_vm6, %v1020_v32, %v767_v18  ;;  %v670_v32 = vrot.slane %v4198_v10, 1 }
  0x96   : > { %698 = vrot.lane.b32.xlu0 %v660_v55, %s3906_s26  ;;  %v1086_v42 = vsel %vm1084_vm7, %v1053_v1, %v802_v2  ;;  %v1055_v43 = vsel %vm1051_vm6, %v1022_v35, %v769_v22  ;;  %v671_v1 = vrot.slane %v3833_v15, 1 }
  0x97   : > { %700 = vrot.lane.b32.xlu1 %v663_v11, %s3906_s26  ;;  %v1088_v55 = vsel %vm1084_vm7, %v1055_v43, %v804_v16  ;;  %v556_v16 = vshll.u32 %v4198_v10, 16 }
  0x98   : > { %v839_v26 = vpop.permute.xlu0 %838 }
  0x99   : > { %v841_v31 = vpop.permute.xlu1 %840  ;;  %v1119_v44 = vsel %vm1117_vm8, %v1086_v42, %v839_v26  ;;  %v558_v20 = vrot.slane %v556_v16, 1  ;;  %v563_v26 = vrot.slane %v561_v21, 1  ;;  %v3837_v16 = vld [vmem:[%s3961_s23 + $0xb0] ss:$0 sps:$4 sm:$0x11]  }
  0x9a   : > { %735 = vrot.lane.b32.xlu0 %v4115_v48, %s3904_s24  ;;  %v1121_v56 = vsel %vm1117_vm8, %v1088_v55, %v841_v31 }
  0x9b   : > { %737 = vrot.lane.b32.xlu1 %v4140_v9, %s3904_s24  ;;  %v559_v25 = vor.u32 %v558_v20, %v554_v19 }
  0x9c   : > { %v886_v36 = vpop.permute.xlu0 %885 }
  0x9d   : > { %v888_v41 = vpop.permute.xlu1 %887  ;;  %v1152_v46 = vsel %vm1150_vm9, %v1119_v44, %v886_v36  ;;  %v564_v36 = vsel %vm408_vm1, %v559_v25, %v563_v26  ;;  %v566_v44 = vshrl.u32 %v4211_v27, 16 }
  0x9e   : > { %782 = vrot.lane.b32.xlu0 %v528_v4, %s3908_s28  ;;  %v1154_v57 = vsel %vm1150_vm9, %v1121_v56, %v888_v41  ;;  %v552_v4 = vsel %vm408_vm1, %v547_v59, %v551_v61 }
  0x9f   : > { %784 = vrot.lane.b32.xlu1 %v540_v37, %s3908_s28 }
  0xa0   : > { %v921_v47 = vpop.permute.xlu0 %920 }
  0xa1   : > { %v606_v53 = vpop.permute.xlu1 %605  ;;  %v1185_v54 = vsel %vm1183_vm10, %v1152_v46, %v921_v47 }
  0xa2   : > { %817 = vrot.lane.b32.xlu0 %v663_v11, %s3905_s25  ;;  %3707 = vmatprep.mubr.msk.bf16.mxu0 %vm1243_vm11, %v1185_v54  ;;  %v958_v29 = vsel %vm952_vm3, %v3964_v0, %v606_v53  ;;  %v3835_v0 = vld [vmem:[%s3961_s23 + $0xa4] ss:$0 sps:$4 sm:$0x11]  }
  0xa3   : > { %819 = vrot.lane.b32.xlu1 %v666_v45, %s3905_s25  ;;  %v573_v51 = vshll.u32 %v3835_v0, 16  ;;  %v674_v7 = vrot.slane %v3835_v0, 1 }
  0xa4   : > { %v923_v58 = vpop.permute.xlu0 %922 }
  0xa5   : > { %v608_v62 = vpop.permute.xlu1 %607  ;;  %v1187_v63 = vsel %vm1183_vm10, %v1154_v57, %v923_v58  ;;  %v575_v61 = vrot.slane %v573_v51, 1 }
  0xa6   : > { %854 = vrot.lane.b32.xlu0 %v4140_v9, %s3909_s6  ;;  %3708 = vmatmul.mubr.msk.bf16.vlgmr.msra.gmra.mrb[0].mxu0 %vm1243_vm11, %v1187_v63  ;;  %v960_v33 = vsel %vm952_vm3, %v3993_v30, %v608_v62  ;;  %v672_v30 = vsel %vm633_vm0, %v670_v32, %v671_v1 }
  0xa7   : > { %856 = vrot.lane.b32.xlu1 %v4158_v28, %s3909_s6 }
  0xa8   : > { %v687_v2 = vpop.permute.xlu0 %686 }
  0xa9   : > { %v689_v5 = vpop.permute.xlu1 %688  ;;  %v991_v31 = vsel %vm985_vm4, %v958_v29, %v687_v2  ;;  %v4269_v29 = vld [vmem:[%s3961_s23 + $0xb4] sm:$0xff]  }
  0xaa   : > { %901 = vrot.lane.b32.xlu0 %v540_v37, %s3910_s9  ;;  %v993_v42 = vsel %vm985_vm4, %v960_v33, %v689_v5 }
  0xab   : > { %903 = vrot.lane.b32.xlu1 %v552_v4, %s3910_s9 }
  0xac   : > { %v724_v8 = vpop.permute.xlu0 %723 }
  0xad   : > { %v726_v11 = vpop.permute.xlu1 %725  ;;  %v1024_v34 = vsel %vm1018_vm5, %v991_v31, %v724_v8 }
  0xae   : > { %936 = vrot.lane.b32.xlu0 %v666_v45, %s3911_s12 }
  0xaf   : > { %621 = vrot.lane.b32.xlu1 %v540_v37, %s3907_s27  ;;  %v568_v37 = vshll.u32 %v4211_v27, 16 }
  0xb0   : > { %v771_v13 = vpop.permute.xlu0 %770 }
  0xb1   : > { %v773_v17 = vpop.permute.xlu1 %772  ;;  %v1057_v38 = vsel %vm1051_vm6, %v1024_v34, %v771_v13  ;;  %v570_v50 = vrot.slane %v568_v37, 1  ;;  %v675_v13 = vsel %vm633_vm0, %v673_v6, %v674_v7  ;;  %v677_v34 = vrot.slane %v3837_v16, 1 }
  0xb2   : > { %938 = vrot.lane.b32.xlu0 %v669_v12, %s3911_s12  ;;  %v679_v6 = vrot.slane %v4269_v29, 1 }
  0xb3   : > { %623 = vrot.lane.b32.xlu1 %v552_v4, %s3907_s27  ;;  %v571_v59 = vor.u32 %v570_v50, %v566_v44  ;;  %v590_v44 = vshrl.u32 %v4269_v29, 16 }
  0xb4   : > { %v806_v18 = vpop.permute.xlu0 %805 }
  0xb5   : > { %v808_v22 = vpop.permute.xlu1 %807  ;;  %v1090_v41 = vsel %vm1084_vm7, %v1057_v38, %v806_v18  ;;  %v592_v38 = vshll.u32 %v4269_v29, 16 }
  0xb6   : > { %702 = vrot.lane.b32.xlu0 %v666_v45, %s3906_s26  ;;  %v1026_v45 = vsel %vm1018_vm5, %v993_v42, %v726_v11  ;;  %v4256_v11 = vld [vmem:[%s3961_s23 + $0xa8] sm:$0xff]  }
  0xb7   : > { %704 = vrot.lane.b32.xlu1 %v669_v12, %s3906_s26  ;;  %v1059_v52 = vsel %vm1051_vm6, %v1026_v45, %v773_v17  ;;  %v580_v17 = vshll.u32 %v4256_v11, 16  ;;  %v578_v20 = vshrl.u32 %v4256_v11, 16  ;;  %v676_v33 = vrot.slane %v4256_v11, 1 }
  0xb8   : > { %v843_v24 = vpop.permute.xlu0 %842  ;;  %v1092_v55 = vsel %vm1084_vm7, %v1059_v52, %v808_v22  ;;  %v585_v22 = vshll.u32 %v3837_v16, 16  ;;  %v594_v50 = vrot.slane %v592_v38, 1  ;;  %v3841_v16 = vld [vmem:[%s3961_s23 + $0xc8] ss:$0 sps:$4 sm:$0x11]  }
  0xb9   : > { %v845_v3 = vpop.permute.xlu1 %844  ;;  %v1123_v43 = vsel %vm1117_vm8, %v1090_v41, %v843_v24  ;;  %v582_v21 = vrot.slane %v580_v17, 1 }
  0xba   : > { %739 = vrot.lane.b32.xlu0 %v4158_v28, %s3904_s24  ;;  %v1125_v56 = vsel %vm1117_vm8, %v1092_v55, %v845_v3  ;;  %v587_v3 = vrot.slane %v585_v22, 1 }
  0xbb   : > { %741 = vrot.lane.b32.xlu1 %v4198_v10, %s3904_s24  ;;  %v583_v26 = vor.u32 %v582_v21, %v578_v20  ;;  %v3912_v20 = vmov 0  }
  0xbc   : > { %v890_v35 = vpop.permute.xlu0 %889  ;;  %1474 = vst.msk [vmem:[#allocation2] sm:$0xf] %vm1473_vm12, %v3912_v20  ;;  %1475 = vst.msk [vmem:[#allocation2 + $0x4] sm:$0xf] %vm1473_vm12, %v3912_v20 }
  0xbd   : > { %v892_v40 = vpop.permute.xlu1 %891  ;;  %v1156_v46 = vsel %vm1150_vm9, %v1123_v43, %v890_v35  ;;  %v588_v37 = vsel %vm408_vm1, %v583_v26, %v587_v3  ;;  %1479 = vst.msk [vmem:[#allocation2 + $0xcc] sm:$0xf] %vm1473_vm12, %v3912_v20  ;;  %1480 = vst.msk [vmem:[#allocation2 + $0xd0] sm:$0xf] %vm1473_vm12, %v3912_v20 }
  0xbe   : > { %786 = vrot.lane.b32.xlu0 %v552_v4, %s3908_s28  ;;  %v1158_v57 = vsel %vm1150_vm9, %v1125_v56, %v892_v40  ;;  %v576_v4 = vsel %vm408_vm1, %v571_v59, %v575_v61  ;;  %v595_v59 = vor.u32 %v594_v50, %v590_v44  ;;  %1477 = vst.msk [vmem:[#allocation2 + $0x8] sm:$0x1] %vm1476_vm13, %v3912_v20  ;;  %1481 = vst.msk [vmem:[#allocation2 + $0xd4] sm:$0x1] %vm1476_vm13, %v3912_v20  ;;  %vm1691_vm13 = vsmask.f32 4368 }
  0xbf   : > { %788 = vrot.lane.b32.xlu1 %v564_v36, %s3908_s28 }
  0xc0   : > { %v925_v47 = vpop.permute.xlu0 %924 }
  0xc1   : > { %v610_v53 = vpop.permute.xlu1 %609  ;;  %v1189_v54 = vsel %vm1183_vm10, %v1156_v46, %v925_v47 }
  0xc2   : > { %821 = vrot.lane.b32.xlu0 %v669_v12, %s3905_s25  ;;  %3711 = vmatprep.mubr.msk.bf16.mxu0 %vm1243_vm11, %v1189_v54  ;;  %v962_v32 = vsel %vm952_vm3, %v4023_v49, %v610_v53  ;;  %v3839_v49 = vld [vmem:[%s3961_s23 + $0xbc] ss:$0 sps:$4 sm:$0x11]  }
  0xc3   : > { %823 = vrot.lane.b32.xlu1 %v672_v30, %s3905_s25  ;;  %v597_v51 = vshll.u32 %v3839_v49, 16  ;;  %v680_v7 = vrot.slane %v3839_v49, 1  ;;  %v4361_v49 = vld [vmem:[%s3961_s23 + $0xd4] ss:$0 sps:$4 sm:$0x11]  }
  0xc4   : > { %v927_v58 = vpop.permute.xlu0 %926 }
  0xc5   : > { %v612_v62 = vpop.permute.xlu1 %611  ;;  %v1191_v63 = vsel %vm1183_vm10, %v1158_v57, %v927_v58  ;;  %v599_v61 = vrot.slane %v597_v51, 1 }
  0xc6   : > { %858 = vrot.lane.b32.xlu0 %v4198_v10, %s3909_s6  ;;  %3712 = vmatmul.mubr.msk.bf16.gmra.mrb[4].mxu0 %vm1243_vm11, %v1191_v63  ;;  %v964_v35 = vsel %vm952_vm3, %v4039_v60, %v612_v62  ;;  %v678_v60 = vsel %vm633_vm0, %v676_v33, %v677_v34 }
  0xc7   : > { %860 = vrot.lane.b32.xlu1 %v4211_v27, %s3909_s6 }
  0xc8   : > { %v691_v2 = vpop.permute.xlu0 %690 }
  0xc9   : > { %v693_v5 = vpop.permute.xlu1 %692  ;;  %v995_v1 = vsel %vm985_vm4, %v962_v32, %v691_v2 }
  0xca   : > { %905 = vrot.lane.b32.xlu0 %v564_v36, %s3910_s9  ;;  %v997_v43 = vsel %vm985_vm4, %v964_v35, %v693_v5  ;;  %v799_v35 = vrot.slane %v3841_v16, 1 }
  0xcb   : > { %907 = vrot.lane.b32.xlu1 %v576_v4, %s3910_s9 }
  0xcc   : > { %v728_v8 = vpop.permute.xlu0 %727 }
  0xcd   : > { %v730_v12 = vpop.permute.xlu1 %729 }
  0xce   : > { %940 = vrot.lane.b32.xlu0 %v672_v30, %s3911_s12  ;;  %v1030_v45 = vsel %vm1018_vm5, %v997_v43, %v730_v12 }
  0xcf   : > { %625 = vrot.lane.b32.xlu1 %v564_v36, %s3907_s27  ;;  %v1028_v36 = vsel %vm1018_vm5, %v995_v1, %v728_v8  ;;  %v4319_v8 = vld [vmem:[%s3961_s23 + $0xc0] sm:$0xff]   ;;  %v4347_v1 = vld [vmem:[%s3961_s23 + $0xcc] sm:$0xff]  }
  0xd0   : > { %v775_v15 = vpop.permute.xlu0 %774  ;;  %v757_v17 = vshll.u32 %v4319_v8, 16  ;;  %v755_v21 = vshrl.u32 %v4319_v8, 16  ;;  %v798_v34 = vrot.slane %v4319_v8, 1  ;;  %v876_v44 = vshll.u32 %v4347_v1, 16 }
  0xd1   : > { %v777_v18 = vpop.permute.xlu1 %776  ;;  %v1061_v40 = vsel %vm1051_vm6, %v1028_v36, %v775_v15  ;;  %v4326_v15 = vsel %vm633_vm0, %v679_v6, %v680_v7 }
  0xd2   : > { %942 = vrot.lane.b32.xlu0 %v675_v13, %s3911_s12  ;;  %v1063_v52 = vsel %vm1051_vm6, %v1030_v45, %v777_v18  ;;  %v759_v22 = vrot.slane %v757_v17, 1  ;;  %v1491_v45 = vld [vmem:[#allocation2 + $0x18] sm:$0x1] }
  0xd3   : > { %627 = vrot.lane.b32.xlu1 %v576_v4, %s3907_s27  ;;  %v1492_v51 = vsel %vm4352_vm15, 0, %v1491_v45 }
  0xd4   : > { %v810_v19 = vpop.permute.xlu0 %809  ;;  %v760_v3 = vor.u32 %v759_v22, %v755_v21  ;;  %1493 = vst [vmem:[#allocation2 + $0x18] sm:$0x1] %v1492_v51 }
  0xd5   : > { %v812_v24 = vpop.permute.xlu1 %811  ;;  %v1094_v42 = vsel %vm1084_vm7, %v1061_v40, %v810_v19 }
  0xd6   : > { %706 = vrot.lane.b32.xlu0 %v672_v30, %s3906_s26  ;;  %v1096_v55 = vsel %vm1084_vm7, %v1063_v52, %v812_v24  ;;  %v762_v24 = vshll.u32 %v3841_v16, 16 }
  0xd7   : > { %708 = vrot.lane.b32.xlu1 %v675_v13, %s3906_s26 }
  0xd8   : > { %v847_v25 = vpop.permute.xlu0 %846 }
  0xd9   : > { %v849_v31 = vpop.permute.xlu1 %848  ;;  %v1127_v30 = vsel %vm1117_vm8, %v1094_v42, %v847_v25  ;;  %v1541_v42 = vld [vmem:[#allocation2 + $0x8] sm:$0x1] }
  0xda   : > { %743 = vrot.lane.b32.xlu0 %v4211_v27, %s3904_s24  ;;  %v1129_v56 = vsel %vm1117_vm8, %v1096_v55, %v849_v31  ;;  %v764_v31 = vrot.slane %v762_v24, 1 }
  0xdb   : > { %745 = vrot.lane.b32.xlu1 %v4256_v11, %s3904_s24 }
  0xdc   : > { %v894_v0 = vpop.permute.xlu0 %893 }
  0xdd   : > { %v896_v41 = vpop.permute.xlu1 %895  ;;  %v1160_v46 = vsel %vm1150_vm9, %v1127_v30, %v894_v0  ;;  %v1485_v0 = vld [vmem:[#allocation2] sm:$0x1] }
  0xde   : > { %790 = vrot.lane.b32.xlu0 %v576_v4, %s3908_s28  ;;  %v1162_v57 = vsel %vm1150_vm9, %v1129_v56, %v896_v41  ;;  %v4310_v4 = vsel %vm408_vm1, %v595_v59, %v599_v61  ;;  %v1486_v38 = vsel %vm4352_vm15, 0, %v1485_v0  ;;  %v4369_v41 = vsel %vm408_vm1, %v760_v3, %v764_v31  ;;  %v1547_v59 = vld [vmem:[#allocation2 + $0x20] sm:$0x1] }
  0xdf   : > { %792 = vrot.lane.b32.xlu1 %v588_v37, %s3908_s28  ;;  %1487 = vst [vmem:[#allocation2] sm:$0x1] %v1486_v38  ;;  %v918_v0 = vrot.slane %v4361_v49, 1 }
  0xe0   : > { %v929_v47 = vpop.permute.xlu0 %928 }
  0xe1   : > { %v614_v53 = vpop.permute.xlu1 %613  ;;  %v1193_v54 = vsel %vm1183_vm10, %v1160_v46, %v929_v47  ;;  %v1542_v46 = vsel %vm4373_vm14, 0, %v1541_v42 }
  0xe2   : > { %825 = vrot.lane.b32.xlu0 %v675_v13, %s3905_s25  ;;  %3715 = vmatprep.mubr.msk.bf16.mxu0 %vm1243_vm11, %v1193_v54  ;;  %1543 = vst [vmem:[#allocation2 + $0x8] sm:$0x1] %v1542_v46  ;;  %v1488_v54 = vld [vmem:[#allocation2 + $0xc] sm:$0x1] }
  0xe3   : > { %827 = vrot.lane.b32.xlu1 %v678_v60, %s3905_s25 }
  0xe4   : > { %v931_v58 = vpop.permute.xlu0 %930 }
  0xe5   : > { %v616_v62 = vpop.permute.xlu1 %615  ;;  %v1195_v63 = vsel %vm1183_vm10, %v1162_v57, %v931_v58  ;;  %v881_v57 = vshll.u32 %v4361_v49, 16  ;;  %v1489_v58 = vsel %vm4352_vm15, 0, %v1488_v54 }
  0xe6   : > { %862 = vrot.lane.b32.xlu0 %v4256_v11, %s3909_s6  ;;  %3716 = vmatmul.mubr.msk.bf16.gmra.mrb[8].mxu0 %vm1243_vm11, %v1195_v63  ;;  %v968_v43 = vsel %vm952_vm3, %v4077_v23, %v616_v62  ;;  %v800_v23 = vsel %vm633_vm0, %v798_v34, %v799_v35  ;;  %1490 = vst [vmem:[#allocation2 + $0xc] sm:$0x1] %v1489_v58  ;;  %v3844_v17 = vld [vmem:[#allocation2] sm:$0xff]   ;;  %v917_v35 = vrot.slane %v4347_v1, 1 }
  0xe7   : > { %864 = vrot.lane.b32.xlu1 %v4269_v29, %s3909_s6 }
  0xe8   : > { %v695_v2 = vpop.permute.xlu0 %694  ;;  %v919_v42 = vsel %vm633_vm0, %v917_v35, %v918_v0 }
  0xe9   : > { %v4312_v5 = vpop.permute.xlu1 %696  ;;  %v3845_v24 = vld [vmem:[#allocation2 + $0x8] ss:$0 sps:$4 sm:$0x11]  }
  0xea   : > { %909 = vrot.lane.b32.xlu0 %v588_v37, %s3910_s9  ;;  %v1001_v55 = vsel %vm985_vm4, %v968_v43, %v4312_v5  ;;  %v1544_v5 = vld [vmem:[#allocation2 + $0x14] sm:$0x1]  ;;  %v2535_v49 = vrot.slane %v3845_v24, 1 }
  0xeb   : > { %911 = vrot.lane.b32.xlu1 %v4310_v4, %s3910_s9  ;;  %v1545_v16 = vsel %vm4373_vm14, 0, %v1544_v5 }
  0xec   : > { %v732_v12 = vpop.permute.xlu0 %731  ;;  %1546 = vst [vmem:[#allocation2 + $0x14] sm:$0x1] %v1545_v16 }
  0xed   : > { %v4321_v13 = vpop.permute.xlu1 %733 }
  0xee   : > { %944 = vrot.lane.b32.xlu0 %v678_v60, %s3911_s12  ;;  %v1034_v61 = vsel %vm1018_vm5, %v1001_v55, %v4321_v13  ;;  %v1497_v55 = vld [vmem:[#allocation2 + $0x30] sm:$0x1] }
  0xef   : > { %629 = vrot.lane.b32.xlu1 %v588_v37, %s3907_s27  ;;  %v966_v37 = vsel %vm952_vm3, %v4064_v14, %v614_v53  ;;  %v874_v53 = vshrl.u32 %v4347_v1, 16  ;;  %v1498_v58 = vsel %vm4352_vm15, 0, %v1497_v55 }
  0xf0   : > { %v779_v18 = vpop.permute.xlu0 %778  ;;  %v999_v40 = vsel %vm985_vm4, %v966_v37, %v695_v2  ;;  %v878_v2 = vrot.slane %v876_v44, 1  ;;  %1499 = vst [vmem:[#allocation2 + $0x30] sm:$0x1] %v1498_v58 }
  0xf1   : > { %v4330_v19 = vpop.permute.xlu1 %780  ;;  %v1032_v30 = vsel %vm1018_vm5, %v999_v40, %v732_v12 }
  0xf2   : > { %946 = vrot.lane.b32.xlu0 %v4326_v15, %s3911_s12  ;;  %v1065_v47 = vsel %vm1051_vm6, %v1032_v30, %v779_v18  ;;  %v1067_v6 = vsel %vm1051_vm6, %v1034_v61, %v4330_v19  ;;  %v883_v19 = vrot.slane %v881_v57, 1  ;;  %v879_v22 = vor.u32 %v878_v2, %v874_v53  ;;  %v1494_v61 = vld [vmem:[#allocation2 + $0x24] sm:$0x1] }
  0xf3   : > { %631 = vrot.lane.b32.xlu1 %v4310_v4, %s3907_s27  ;;  %v2534_v30 = vrot.slane %v3844_v17, 1 }
  0xf4   : > { %v814_v25 = vpop.permute.xlu0 %813  ;;  %v884_v34 = vsel %vm408_vm1, %v879_v22, %v883_v19 }
  0xf5   : > { %v816_v26 = vpop.permute.xlu1 %815  ;;  %v1098_v52 = vsel %vm1084_vm7, %v1065_v47, %v814_v25  ;;  %v2313_v25 = vshll.u32 %v3844_v17, 16 }
  0xf6   : > { %710 = vrot.lane.b32.xlu0 %v678_v60, %s3906_s26  ;;  %v1100_v13 = vsel %vm1084_vm7, %v1067_v6, %v816_v26 }
  0xf7   : > { %712 = vrot.lane.b32.xlu1 %v4326_v15, %s3906_s26  ;;  %v2315_v31 = vrot.slane %v2313_v25, 1 }
  0xf8   : > { %v851_v32 = vpop.permute.xlu0 %850 }
  0xf9   : > { %v853_v33 = vpop.permute.xlu1 %852  ;;  %v1131_v56 = vsel %vm1117_vm8, %v1098_v52, %v851_v32  ;;  %v2318_v32 = vshll.u32 %v3845_v24, 16 }
  0xfa   : > { %747 = vrot.lane.b32.xlu0 %v4269_v29, %s3904_s24  ;;  %v1133_v18 = vsel %vm1117_vm8, %v1100_v13, %v853_v33 }
  0xfb   : > { %749 = vrot.lane.b32.xlu1 %v4319_v8, %s3904_s24  ;;  %v2320_v38 = vrot.slane %v2318_v32, 1 }
  0xfc   : > { %v898_v60 = vpop.permute.xlu0 %897 }
  0xfd   : > { %v900_v50 = vpop.permute.xlu1 %899  ;;  %v1164_v62 = vsel %vm1150_vm9, %v1131_v56, %v898_v60 }
  0xfe   : > { %794 = vrot.lane.b32.xlu0 %v4310_v4, %s3908_s28  ;;  %v1548_v4 = vsel %vm4373_vm14, 0, %v1547_v59  ;;  %v1166_v20 = vsel %vm1150_vm9, %v1133_v18, %v900_v50 }
  0xff   : > { %796 = vrot.lane.b32.xlu1 %v4369_v41, %s3908_s28  ;;  %1549 = vst [vmem:[#allocation2 + $0x20] sm:$0x1] %v1548_v4 }
 0x100   : > { %v933_v63 = vpop.permute.xlu0 %932 }
 0x101   : > { %v618_v7 = vpop.permute.xlu1 %617  ;;  %v1197_v12 = vsel %vm1183_vm10, %v1164_v62, %v933_v63  ;;  %v1553_v63 = vld [vmem:[#allocation2 + $0x38] sm:$0x1] }
 0x102   : > { %829 = vrot.lane.b32.xlu0 %v4326_v15, %s3905_s25  ;;  %3719 = vmatprep.mubr.msk.bf16.mxu0 %vm1243_vm11, %v1197_v12  ;;  %v2311_v15 = vshrl.u32 %v3844_v17, 16  ;;  %v970_v51 = vsel %vm952_vm3, %v4102_v39, %v618_v7  ;;  %v1554_v6 = vsel %vm4373_vm14, 0, %v1553_v63  ;;  %v1550_v7 = vld [vmem:[#allocation2 + $0x2c] sm:$0x1] }
 0x103   : > { %831 = vrot.lane.b32.xlu1 %v800_v23, %s3905_s25  ;;  %1555 = vst [vmem:[#allocation2 + $0x38] sm:$0x1] %v1554_v6  ;;  %v1551_v17 = vsel %vm4373_vm14, 0, %v1550_v7 }
 0x104   : > { %v935_v21 = vpop.permute.xlu0 %934  ;;  %1552 = vst [vmem:[#allocation2 + $0x2c] sm:$0x1] %v1551_v17 }
 0x105   : > { %v620_v3 = vpop.permute.xlu1 %619  ;;  %v1199_v26 = vsel %vm1183_vm10, %v1166_v20, %v935_v21 }
 0x106   : > { %866 = vrot.lane.b32.xlu0 %v4319_v8, %s3909_s6  ;;  %3720 = vmatmul.mubr.msk.bf16.gmra.mrb[12].mxu0 %vm1243_vm11, %v1199_v26  ;;  %v2316_v8 = vor.u32 %v2315_v31, %v2311_v15 }
 0x107   : > { %868 = vrot.lane.b32.xlu1 %v4347_v1, %s3909_s6 }
 0x108   : > { %v699_v33 = vpop.permute.xlu0 %698  ;;  %v2321_v1 = vsel %vm408_vm1, %v2316_v8, %v2320_v38 }
 0x109   : > { %v701_v37 = vpop.permute.xlu1 %700  ;;  %v1003_v52 = vsel %vm985_vm4, %v970_v51, %v699_v33 }
 0x10a   : > { %913 = vrot.lane.b32.xlu0 %v4369_v41, %s3910_s9  ;;  %v2536_v41 = vsel %vm633_vm0, %v2534_v30, %v2535_v49 }
 0x10b   : > { %915 = vrot.lane.b32.xlu1 %v884_v34, %s3910_s9 }
 0x10c   : > { %v736_v40 = vpop.permute.xlu0 %735 }
 0x10d   : > { %v738_v43 = vpop.permute.xlu1 %737  ;;  %v1036_v53 = vsel %vm1018_vm5, %v1003_v52, %v736_v40 }
 0x10e   : > { %948 = vrot.lane.b32.xlu0 %v800_v23, %s3911_s12  ;;  %v972_v23 = vsel %vm952_vm3, %v4115_v48, %v620_v3  ;;  %v1495_v48 = vsel %vm4352_vm15, 0, %v1494_v61 }
 0x10f   : > { %950 = vrot.lane.b32.xlu1 %v919_v42, %s3911_s12  ;;  %v1005_v39 = vsel %vm985_vm4, %v972_v23, %v701_v37  ;;  %1496 = vst [vmem:[#allocation2 + $0x24] sm:$0x1] %v1495_v48 }
 0x110   : > { %v783_v60 = vpop.permute.xlu0 %782  ;;  %v1038_v2 = vsel %vm1018_vm5, %v1005_v39, %v738_v43  ;;  %v1503_v43 = vld [vmem:[#allocation2 + $0x48] sm:$0x1] }
 0x111   : > { %v785_v44 = vpop.permute.xlu1 %784  ;;  %v1069_v56 = vsel %vm1051_vm6, %v1036_v53, %v783_v60  ;;  %v1504_v49 = vsel %vm4352_vm15, 0, %v1503_v43 }
 0x112   : > { %2502 = vrot.lane.b32.xlu0 %v2321_v1, %s3906_s26  ;;  %v1071_v12 = vsel %vm1051_vm6, %v1038_v2, %v785_v44  ;;  %1505 = vst [vmem:[#allocation2 + $0x48] sm:$0x1] %v1504_v49 }
 0x114   : > { %v818_v45 = vpop.permute.xlu0 %817 }
 0x115   : > { %v820_v46 = vpop.permute.xlu1 %819  ;;  %v1102_v59 = vsel %vm1084_vm7, %v1069_v56, %v818_v45 }
 0x116   : > { %2582 = vrot.lane.b32.xlu0 %v2536_v41, %s3908_s28  ;;  %v1104_v18 = vsel %vm1084_vm7, %v1071_v12, %v820_v46  ;;  %v1500_v41 = vld [vmem:[#allocation2 + $0x3c] sm:$0x1] }
 0x118   : > { %v855_v47 = vpop.permute.xlu0 %854 }
 0x119   : > { %v857_v50 = vpop.permute.xlu1 %856  ;;  %v1135_v62 = vsel %vm1117_vm8, %v1102_v59, %v855_v47  ;;  %v1501_v47 = vsel %vm4352_vm15, 0, %v1500_v41 }
 0x11a   : > { %v1137_v19 = vsel %vm1117_vm8, %v1104_v18, %v857_v50  ;;  %v1559_v50 = vld [vmem:[#allocation2 + $0x50] sm:$0x1]  ;;  %1502 = vst [vmem:[#allocation2 + $0x3c] sm:$0x1] %v1501_v47 }
 0x11b   : > { %v1560_v53 = vsel %vm4373_vm14, 0, %v1559_v50 }
 0x11c   : > { %v902_v54 = vpop.permute.xlu0 %901  ;;  %1561 = vst [vmem:[#allocation2 + $0x50] sm:$0x1] %v1560_v53 }
 0x11d   : > { %v904_v57 = vpop.permute.xlu1 %903  ;;  %v1168_v4 = vsel %vm1150_vm9, %v1135_v62, %v902_v54  ;;  %v1556_v54 = vld [vmem:[#allocation2 + $0x44] sm:$0x1] }
 0x11e   : > { %v1170_v20 = vsel %vm1150_vm9, %v1137_v19, %v904_v57  ;;  %v1557_v56 = vsel %vm4373_vm14, 0, %v1556_v54 }
 0x11f   : > { %1558 = vst [vmem:[#allocation2 + $0x44] sm:$0x1] %v1557_v56 }
 0x120   : > { %v937_v5 = vpop.permute.xlu0 %936 }
 0x121   : > { %v622_v16 = vpop.permute.xlu1 %621  ;;  %v1201_v13 = vsel %vm1183_vm10, %v1168_v4, %v937_v5 }
 0x122   : > { %3723 = vmatprep.mubr.msk.bf16.mxu0 %vm1243_vm11, %v1201_v13  ;;  %v974_v37 = vsel %vm952_vm3, %v4140_v9, %v622_v16 }
 0x124   : > { %v939_v21 = vpop.permute.xlu0 %938 }
 0x125   : > { %v624_v22 = vpop.permute.xlu1 %623  ;;  %v1203_v24 = vsel %vm1183_vm10, %v1170_v20, %v939_v21  ;;  %v1509_v21 = vld [vmem:[#allocation2 + $0x60] sm:$0x1] }
 0x126   : > { %3724 = vmatmul.mubr.msk.bf16.gmra.mrb[16].mxu0 %vm1243_vm11, %v1203_v24  ;;  %v976_v38 = vsel %vm952_vm3, %v4158_v28, %v624_v22 }
 0x128   : > { %v703_v25 = vpop.permute.xlu0 %702 }
 0x129   : > { %v705_v3 = vpop.permute.xlu1 %704  ;;  %v1007_v8 = vsel %vm985_vm4, %v974_v37, %v703_v25  ;;  %v1510_v25 = vsel %vm4352_vm15, 0, %v1509_v21 }
 0x12a   : > { %v1009_v9 = vsel %vm985_vm4, %v976_v38, %v705_v3  ;;  %1511 = vst [vmem:[#allocation2 + $0x60] sm:$0x1] %v1510_v25  ;;  %v1562_v38 = vld [vmem:[#allocation2 + $0x5c] sm:$0x1] }
 0x12c   : > { %v740_v26 = vpop.permute.xlu0 %739 }
 0x12d   : > { %v742_v15 = vpop.permute.xlu1 %741  ;;  %v1040_v40 = vsel %vm1018_vm5, %v1007_v8, %v740_v26 }
 0x12e   : > { %v1042_v28 = vsel %vm1018_vm5, %v1009_v9, %v742_v15  ;;  %v1506_v15 = vld [vmem:[#allocation2 + $0x54] sm:$0x1] }
 0x130   : > { %v787_v31 = vpop.permute.xlu0 %786 }
 0x131   : > { %v789_v32 = vpop.permute.xlu1 %788  ;;  %v1073_v1 = vsel %vm1051_vm6, %v1040_v40, %v787_v31 }
 0x132   : > { %v1075_v51 = vsel %vm1051_vm6, %v1042_v28, %v789_v32 }
 0x134   : > { %v822_v33 = vpop.permute.xlu0 %821 }
 0x135   : > { %v824_v34 = vpop.permute.xlu1 %823  ;;  %v1106_v60 = vsel %vm1084_vm7, %v1073_v1, %v822_v33  ;;  %v1507_v33 = vsel %vm4352_vm15, 0, %v1506_v15 }
 0x136   : > { %v1108_v55 = vsel %vm1084_vm7, %v1075_v51, %v824_v34  ;;  %v1565_v34 = vld [vmem:[#allocation2 + $0x68] sm:$0x1]  ;;  %1508 = vst [vmem:[#allocation2 + $0x54] sm:$0x1] %v1507_v33  ;;  %v4522_v51 = vld [vmem:[%s5404_s2] ss:$0 sm:$0xff] }
 0x137   : > { %v1566_v8 = vsel %vm4373_vm14, 0, %v1565_v34 }
 0x138   : > { %v859_v35 = vpop.permute.xlu0 %858  ;;  %1567 = vst [vmem:[#allocation2 + $0x68] sm:$0x1] %v1566_v8  ;;  %v1568_v8 = vld [vmem:[#allocation2 + $0x74] sm:$0x1] }
 0x139   : > { %v861_v0 = vpop.permute.xlu1 %860  ;;  %v1139_v44 = vsel %vm1117_vm8, %v1106_v60, %v859_v35 }
 0x13a   : > { %v1141_v57 = vsel %vm1117_vm8, %v1108_v55, %v861_v0 }
 0x13c   : > { %v906_v42 = vpop.permute.xlu0 %905 }
 0x13d   : > { %v908_v30 = vpop.permute.xlu1 %907  ;;  %v1172_v45 = vsel %vm1150_vm9, %v1139_v44, %v906_v42  ;;  %v1563_v42 = vsel %vm4373_vm14, 0, %v1562_v38 }
 0x13e   : > { %v1174_v58 = vsel %vm1150_vm9, %v1141_v57, %v908_v30  ;;  %1564 = vst [vmem:[#allocation2 + $0x5c] sm:$0x1] %v1563_v42 }
 0x140   : > { %v941_v46 = vpop.permute.xlu0 %940 }
 0x141   : > { %v626_v52 = vpop.permute.xlu1 %625  ;;  %v1205_v23 = vsel %vm1183_vm10, %v1172_v45, %v941_v46 }
 0x142   : > { %3727 = vmatprep.mubr.msk.bf16.mxu0 %vm1243_vm11, %v1205_v23  ;;  %v978_v13 = vsel %vm952_vm3, %v4198_v10, %v626_v52 }
 0x144   : > { %v943_v59 = vpop.permute.xlu0 %942 }
 0x145   : > { %v628_v61 = vpop.permute.xlu1 %627  ;;  %v1207_v39 = vsel %vm1183_vm10, %v1174_v58, %v943_v59 }
 0x146   : > { %3728 = vmatmul.mubr.msk.bf16.gmra.mrb[20].mxu0 %vm1243_vm11, %v1207_v39  ;;  %v980_v18 = vsel %vm952_vm3, %v4211_v27, %v628_v61 }
 0x148   : > { %v707_v62 = vpop.permute.xlu0 %706 }
 0x149   : > { %v709_v48 = vpop.permute.xlu1 %708  ;;  %v1011_v17 = vsel %vm985_vm4, %v978_v13, %v707_v62 }
 0x14a   : > { %v1013_v10 = vsel %vm985_vm4, %v980_v18, %v709_v48 }
 0x14c   : > { %v744_v63 = vpop.permute.xlu0 %743 }
 0x14d   : > { %v746_v2 = vpop.permute.xlu1 %745  ;;  %v1044_v19 = vsel %vm1018_vm5, %v1011_v17, %v744_v63 }
 0x14e   : > { %v1046_v27 = vsel %vm1018_vm5, %v1013_v10, %v746_v2 }
 0x150   : > { %v791_v4 = vpop.permute.xlu0 %790 }
 0x151   : > { %v793_v5 = vpop.permute.xlu1 %792  ;;  %v1077_v22 = vsel %vm1051_vm6, %v1044_v19, %v791_v4 }
 0x152   : > { %v1079_v35 = vsel %vm1051_vm6, %v1046_v27, %v793_v5  ;;  %v1515_v5 = vld [vmem:[#allocation2 + $0x78] sm:$0x1] }
 0x153   : > { %v1516_v13 = vsel %vm4352_vm15, 0, %v1515_v5 }
 0x154   : > { %v826_v6 = vpop.permute.xlu0 %825  ;;  %1517 = vst [vmem:[#allocation2 + $0x78] sm:$0x1] %v1516_v13 }
 0x155   : > { %v828_v7 = vpop.permute.xlu1 %827  ;;  %v1110_v3 = vsel %vm1084_vm7, %v1077_v22, %v826_v6 }
 0x156   : > { %v1112_v40 = vsel %vm1084_vm7, %v1079_v35, %v828_v7 }
 0x158   : > { %v863_v12 = vpop.permute.xlu0 %862 }
 0x159   : > { %v865_v16 = vpop.permute.xlu1 %864  ;;  %v1143_v26 = vsel %vm1117_vm8, %v1110_v3, %v863_v12  ;;  %v1512_v3 = vld [vmem:[#allocation2 + $0x6c] sm:$0x1] }
 0x15a   : > { %v1145_v43 = vsel %vm1117_vm8, %v1112_v40, %v865_v16 }
 0x15c   : > { %v910_v20 = vpop.permute.xlu0 %909 }
 0x15d   : > { %v912_v24 = vpop.permute.xlu1 %911  ;;  %v1176_v31 = vsel %vm1150_vm9, %v1143_v26, %v910_v20 }
 0x15e   : > { %v1178_v1 = vsel %vm1150_vm9, %v1145_v43, %v912_v24 }
 0x160   : > { %v945_v32 = vpop.permute.xlu0 %944 }
 0x161   : > { %v630_v0 = vpop.permute.xlu1 %629  ;;  %v1209_v37 = vsel %vm1183_vm10, %v1176_v31, %v945_v32  ;;  %v1513_v31 = vsel %vm4352_vm15, 0, %v1512_v3  ;;  %v1571_v32 = vld [vmem:[#allocation2 + $0x80] sm:$0x1] }
 0x162   : > { %3731 = vmatprep.mubr.msk.bf16.mxu0 %vm1243_vm11, %v1209_v37  ;;  %v982_v53 = vsel %vm952_vm3, %v4256_v11, %v630_v0  ;;  %1514 = vst [vmem:[#allocation2 + $0x6c] sm:$0x1] %v1513_v31 }
 0x164   : > { %v947_v30 = vpop.permute.xlu0 %946 }
 0x165   : > { %v632_v49 = vpop.permute.xlu1 %631  ;;  %v1211_v60 = vsel %vm1183_vm10, %v1178_v1, %v947_v30  ;;  %v2023_v30 = vld [vmem:[#allocation2 + $0x18] sm:$0xf] }
 0x166   : > { %3732 = vmatmul.mubr.msk.bf16.gmra.mrb[24].mxu0 %vm1243_vm11, %v1211_v60  ;;  %v984_v52 = vsel %vm952_vm3, %v4269_v29, %v632_v49  ;;  %vm4553_vm3 = vmand %vm1473_vm12, %vm1539_vm2  ;;  %vm3046_vm2 = vcmask 457728  }
 0x168   : > { %v711_v9 = vpop.permute.xlu0 %710 }
 0x169   : > { %v713_v44 = vpop.permute.xlu1 %712  ;;  %v1015_v56 = vsel %vm985_vm4, %v982_v53, %v711_v9 }
 0x16a   : > { %v1017_v59 = vsel %vm985_vm4, %v984_v52, %v713_v44  ;;  %v1572_v44 = vsel %vm4373_vm14, 0, %v1571_v32 }
 0x16b   : > { %1573 = vst [vmem:[#allocation2 + $0x80] sm:$0x1] %v1572_v44 }
 0x16c   : > { %v748_v41 = vpop.permute.xlu0 %747 }
 0x16d   : > { %v750_v28 = vpop.permute.xlu1 %749  ;;  %v1048_v61 = vsel %vm1018_vm5, %v1015_v56, %v748_v41 }
 0x16e   : > { %v1050_v29 = vsel %vm1018_vm5, %v1017_v59, %v750_v28  ;;  %v2016_v28 = vld [vmem:[#allocation2 + $0xc] sm:$0xf]  ;;  %vm5415_vm5 = vsmask.f32 256  ;;  %v2020_v59 = vld [vmem:[#allocation2 + $0x14] sm:$0x1] }
 0x170   : > { %v795_v45 = vpop.permute.xlu0 %794 }
 0x171   : > { %v797_v46 = vpop.permute.xlu1 %796  ;;  %v1081_v48 = vsel %vm1051_vm6, %v1048_v61, %v795_v45 }
 0x172   : > { %v1083_v6 = vsel %vm1051_vm6, %v1050_v29, %v797_v46 }
 0x174   : > { %v830_v47 = vpop.permute.xlu0 %829 }
 0x175   : > { %v832_v50 = vpop.permute.xlu1 %831  ;;  %v1114_v18 = vsel %vm1084_vm7, %v1081_v48, %v830_v47  ;;  %v1569_v47 = vsel %vm4373_vm14, 0, %v1568_v8 }
 0x176   : > { %v1116_v17 = vsel %vm1084_vm7, %v1083_v6, %v832_v50  ;;  %vm4564_vm7 = vmor %vm5415_vm5, %vm1691_vm13  ;;  %1570 = vst [vmem:[#allocation2 + $0x74] sm:$0x1] %v1569_v47  ;;  %v1577_v47 = vld [vmem:[#allocation2 + $0x98] sm:$0x1]  ;;  %vm3079_vm13 = vcmask 523264   ;;  %vm3155_vm5 = vcmask 588800  }
 0x178   : > { %v867_v23 = vpop.permute.xlu0 %866 }
 0x179   : > { %v869_v54 = vpop.permute.xlu1 %868  ;;  %v3709_v55 = vpop.f32.mrb[0].mxu0  ;;  %v1147_v22 = vsel %vm1117_vm8, %v1114_v18, %v867_v23  ;;  %v2027_v23 = vld [vmem:[#allocation2 + $0x20] sm:$0x1] }
 0x17a   : > { %v1323_v57 = vadd.f32 %v3709_v55, %v4522_v51  ;;  %v1314_v58 = vpop.f32.mrb[1].mxu0  ;;  %v1149_v21 = vsel %vm1117_vm8, %v1116_v17, %v869_v54 }
 0x17b   : > { %v1315_v39 = vadd.f32 %v4522_v51, %v1314_v58  ;;  %v3710_v62 = vpop.f32.mrb[2].mxu0 }
 0x17c   : > { %v1443_v11 = vmax.f32 %v1323_v57, 0.0  ;;  %v1326_v63 = vadd.f32 %v3710_v62, %v4522_v51  ;;  %v1317_v2 = vpop.f32.mrb[3].mxu0  ;;  %v914_v4 = vpop.permute.xlu0 %913 }
 0x17d   : > { %v1441_v7 = vmax.f32 %v1315_v39, 0.0  ;;  %v916_v12 = vpop.permute.xlu1 %915  ;;  %v1318_v16 = vadd.f32 %v4522_v51, %v1317_v2  ;;  %v1180_v15 = vsel %vm1150_vm9, %v1147_v22, %v914_v4 }
 0x17e   : > { %v3631_v19 = vpack.c.bf16 %v1443_v11, %v1443_v11  ;;  %v1444_v20 = vmax.f32 %v1326_v63, 0.0  ;;  %v1182_v34 = vsel %vm1150_vm9, %v1149_v21, %v916_v12  ;;  %vm3188_vm9 = vcmask 1043456  }
 0x17f   : > { %v3629_v24 = vpack.c.bf16 %v1441_v7, %v1441_v7  ;;  %v1442_v25 = vmax.f32 %v1318_v16, 0.0 }
 0x180   : > { %v1711_v10 = vshrl.u32 %v3631_v19, 16  ;;  %v3632_v26 = vpack.c.bf16 %v1444_v20, %v1444_v20  ;;  %v949_v27 = vpop.permute.xlu0 %948  ;;  %v1714_v40 = vshll.u32 %v3631_v19, 16 }
 0x181   : > { %v1694_v33 = vshrl.u32 %v3629_v24, 16  ;;  %v3630_v35 = vpack.c.bf16 %v1442_v25, %v1442_v25  ;;  %v951_v0 = vpop.permute.xlu1 %950  ;;  %v1213_v37 = vsel %vm1183_vm10, %v1180_v15, %v949_v27  ;;  %v1697_v60 = vshll.u32 %v3629_v24, 16 }
 0x182   : > { %v1713_v38 = vrot.slane %v1711_v10, 7  ;;  %v1719_v42 = vshrl.u32 %v3632_v26, 16  ;;  %v1215_v43 = vsel %vm1183_vm10, %v1182_v34, %v951_v0  ;;  %3735 = vmatprep.mubr.msk.bf16.mxu0 %vm1243_vm11, %v1213_v37  ;;  %v1722_v46 = vshll.u32 %v3632_v26, 16  ;;  %v1521_v37 = vld [vmem:[#allocation2 + $0x90] sm:$0x1] }
 0x183   : > { %v1696_v49 = vrot.slane %v1694_v33, 7  ;;  %v1702_v9 = vshrl.u32 %v3630_v35, 16  ;;  %3736 = vmatmul.mubr.msk.bf16.gmra.mrb[28].mxu0 %vm1243_vm11, %v1215_v43  ;;  %v1705_v54 = vshll.u32 %v3630_v35, 16  ;;  %vm2980_vm11 = vcmask 326656  }
 0x184   : > { %v1716_v41 = vor.u32 %v1714_v40, %v1713_v38  ;;  %v1721_v45 = vrot.slane %v1719_v42, 7  ;;  %v1717_v55 = vrot.slane %v1713_v38, 4  ;;  %v1522_v42 = vsel %vm4352_vm15, 0, %v1521_v37 }
 0x185   : > { %v1699_v50 = vor.u32 %v1697_v60, %v1696_v49  ;;  %v1704_v53 = vrot.slane %v1702_v9, 7  ;;  %v1700_v61 = vrot.slane %v1696_v49, 4  ;;  %1523 = vst [vmem:[#allocation2 + $0x90] sm:$0x1] %v1522_v42 }
 0x186   : > { %v2024_v56 = vsel %vm4553_vm3, %v1716_v41, %v2023_v30  ;;  %v1724_v57 = vor.u32 %v1722_v46, %v1721_v45  ;;  %v1726_v58 = vrot.slane %v1721_v45, 4  ;;  %v1518_v41 = vld [vmem:[#allocation2 + $0x84] sm:$0x1] }
 0x187   : > { %2025 = vst [vmem:[#allocation2 + $0x18] sm:$0xf] %v2024_v56  ;;  %v2017_v39 = vsel %vm4553_vm3, %v1699_v50, %v2016_v28  ;;  %v1707_v62 = vor.u32 %v1705_v54, %v1704_v53  ;;  %v1709_v29 = vrot.slane %v1704_v53, 4  ;;  %v1519_v46 = vsel %vm4352_vm15, 0, %v1518_v41 }
 0x188   : > { %2018 = vst [vmem:[#allocation2 + $0xc] sm:$0xf] %v2017_v39  ;;  %v1725_v48 = vsel %vm4564_vm7, %v1717_v55, %v1724_v57  ;;  %v2028_v11 = vsel %vm4352_vm15, %v1726_v58, %v2027_v23  ;;  %1520 = vst [vmem:[#allocation2 + $0x84] sm:$0x1] %v1519_v46  ;;  %v1578_v54 = vsel %vm4373_vm14, 0, %v1577_v47 }
 0x189   : > { %2026 = vst.msk [vmem:[#allocation2 + $0x1c] sm:$0xf] %vm1473_vm12, %v1725_v48  ;;  %2029 = vst [vmem:[#allocation2 + $0x20] sm:$0x1] %v2028_v11  ;;  %v1708_v63 = vsel %vm4564_vm7, %v1700_v61, %v1707_v62  ;;  %v2021_v2 = vsel %vm4352_vm15, %v1709_v29, %v2020_v59  ;;  %v1574_v55 = vld [vmem:[#allocation2 + $0x8c] sm:$0x1] }
 0x18a   : > { %2019 = vst.msk [vmem:[#allocation2 + $0x10] sm:$0xf] %vm1473_vm12, %v1708_v63  ;;  %2022 = vst [vmem:[#allocation2 + $0x14] sm:$0x1] %v2021_v2  ;;  %v2037_v58 = vld [vmem:[#allocation2 + $0x30] sm:$0xf] }
 0x18b   : > { %1579 = vst [vmem:[#allocation2 + $0x98] sm:$0x1] %v1578_v54  ;;  %v1575_v61 = vsel %vm4373_vm14, 0, %v1574_v55  ;;  %v2030_v63 = vld [vmem:[#allocation2 + $0x24] sm:$0xf] }
 0x18c   : > { %1576 = vst [vmem:[#allocation2 + $0x8c] sm:$0x1] %v1575_v61 }
 0x190   : > { %v3846_v4 = vld [vmem:[#allocation2 + $0x18] sm:$0xff]   ;;  %v3847_v5 = vld [vmem:[#allocation2 + $0x20] ss:$0 sps:$4 sm:$0x11]  }
 0x191   : > { %v3848_v6 = vld [vmem:[#allocation2 + $0xc] sm:$0xff]   ;;  %2621 = vrot.lane.b32.xlu1 %v3846_v4, %s3909_s6  ;;  %2738 = vrot.lane.b32.xlu0 %v3846_v4, %s3913_s15  ;;  %v2540_v7 = vrot.slane %v3846_v4, 1  ;;  %v4584_v12 = vld [vmem:[#allocation2 + $0x14] ss:$0 sps:$4 sm:$0x11]   ;;  %v2541_v16 = vrot.slane %v3847_v5, 1 }
 0x192   : > { %v2337_v13 = vshll.u32 %v3846_v4, 16  ;;  %v2537_v18 = vrot.slane %v3848_v6, 1  ;;  %v2538_v19 = vrot.slane %v4584_v12, 1  ;;  %v2335_v21 = vshrl.u32 %v3846_v4, 16 }
 0x193   : > { %v2542_v17 = vsel %vm633_vm0, %v2540_v7, %v2541_v16  ;;  %v2342_v22 = vshll.u32 %v3847_v5, 16  ;;  %v2325_v24 = vshll.u32 %v3848_v6, 16  ;;  %v2323_v9 = vshrl.u32 %v3848_v6, 16 }
 0x194   : > { %v2339_v20 = vrot.slane %v2337_v13, 1  ;;  %v2539_v3 = vsel %vm633_vm0, %v2537_v18, %v2538_v19  ;;  %v2330_v44 = vshll.u32 %v4584_v12, 16 }
 0x195   : > { %2703 = vrot.lane.b32.xlu1 %v2542_v17, %s3914_s16  ;;  %2619 = vrot.lane.b32.xlu0 %v3848_v6, %s3909_s6  ;;  %v2344_v32 = vrot.slane %v2342_v22, 1  ;;  %v2327_v0 = vrot.slane %v2325_v24, 1  ;;  %v2041_v6 = vld [vmem:[#allocation2 + $0x38] sm:$0x1] }
 0x196   : > { %v2340_v10 = vor.u32 %v2339_v20, %v2335_v21  ;;  %v2332_v48 = vrot.slane %v2330_v44, 1  ;;  %v2034_v20 = vld [vmem:[#allocation2 + $0x2c] sm:$0x1] }
 0x197   : > { %v2328_v53 = vor.u32 %v2327_v0, %v2323_v9  ;;  %v3868_v0 = vld [vmem:[%s5405_s3 + $0x10] sm:$0xff]  }
 0x198   : > { %v2345_v40 = vsel %vm408_vm1, %v2340_v10, %v2344_v32 }
 0x199   : > { %v3713_v25 = vpop.f32.mrb[4].mxu0  ;;  %2584 = vrot.lane.b32.xlu1 %v2539_v3, %s3908_s28  ;;  %2820 = vrot.lane.b32.xlu0 %v2542_v17, %s3915_s17  ;;  %v2333_v16 = vsel %vm408_vm1, %v2328_v53, %v2332_v48 }
 0x19a   : > { %v1339_v26 = vadd.f32 %v3713_v25, %v4522_v51  ;;  %v1330_v15 = vpop.f32.mrb[5].mxu0 }
 0x19b   : > { %v1331_v27 = vadd.f32 %v4522_v51, %v1330_v15  ;;  %v3714_v31 = vpop.f32.mrb[6].mxu0 }
 0x19c   : > { %v1447_v33 = vmax.f32 %v1339_v26, 0.0  ;;  %v1342_v34 = vadd.f32 %v3714_v31, %v4522_v51  ;;  %v1333_v35 = vpop.f32.mrb[7].mxu0  ;;  %v3867_v31 = vld [vmem:[%s5405_s3 + $0x8] sm:$0xff]  }
 0x19d   : > { %v1445_v8 = vmax.f32 %v1331_v27, 0.0  ;;  %v1334_v38 = vadd.f32 %v4522_v51, %v1333_v35  ;;  %2668 = vrot.lane.b32.xlu1 %v2345_v40, %s3911_s12  ;;  %2586 = vrot.lane.b32.xlu0 %v2542_v17, %s3908_s28  ;;  %v3866_v27 = vld [vmem:[%s5405_s3] sm:$0xff]  }
 0x19e   : > { %v3635_v43 = vpack.c.bf16 %v1447_v33, %v1447_v33  ;;  %v1448_v30 = vmax.f32 %v1342_v34, 0.0  ;;  %3739 = vmatprep.subr.bf16.mxu1 %v3866_v27 }
 0x19f   : > { %v3633_v49 = vpack.c.bf16 %v1445_v8, %v1445_v8  ;;  %v1446_v60 = vmax.f32 %v1334_v38, 0.0  ;;  %3740 = vmatpush3.bf16.msra.mxu1 %v3866_v27 }
 0x1a0   : > { %v1745_v28 = vshrl.u32 %v3635_v43, 16  ;;  %v3636_v45 = vpack.c.bf16 %v1448_v30, %v1448_v30  ;;  %v1748_v57 = vshll.u32 %v3635_v43, 16  ;;  %3741 = vmatprep.subr.bf16.mxu1 %v3867_v31  ;;  %v3871_v43 = vld [vmem:[%s5405_s3 + $0x18] sm:$0xff]  }
 0x1a1   : > { %v1728_v50 = vshrl.u32 %v3633_v49, 16  ;;  %v3634_v23 = vpack.c.bf16 %v1446_v60, %v1446_v60  ;;  %2506 = vrot.lane.b32.xlu1 %v2345_v40, %s3906_s26  ;;  %2701 = vrot.lane.b32.xlu0 %v2539_v3, %s3914_s16  ;;  %v1731_v62 = vshll.u32 %v3633_v49, 16 }
 0x1a2   : > { %v1747_v56 = vrot.slane %v1745_v28, 7  ;;  %v1753_v59 = vshrl.u32 %v3636_v45, 16  ;;  %v1756_v4 = vshll.u32 %v3636_v45, 16 }
 0x1a3   : > { %v1730_v39 = vrot.slane %v1728_v50, 7  ;;  %v1736_v29 = vshrl.u32 %v3634_v23, 16  ;;  %v1739_v12 = vshll.u32 %v3634_v23, 16  ;;  %3742 = vmatpush3.bf16.msra.mxu1 %v3867_v31  ;;  %v3873_v23 = vld [vmem:[%s5405_s3 + $0x20] ss:$0 sps:$4 sm:$0xff]  }
 0x1a4   : > { %v1750_v11 = vor.u32 %v1748_v57, %v1747_v56  ;;  %v1755_v2 = vrot.slane %v1753_v59, 7  ;;  %v1751_v13 = vrot.slane %v1747_v56, 4  ;;  %3743 = vmatprep.subr.bf16.mxu1 %v3868_v0  ;;  %v1527_v57 = vld [vmem:[#allocation2 + $0xa8] sm:$0x1] }
 0x1a5   : > { %v1733_v5 = vor.u32 %v1731_v62, %v1730_v39  ;;  %v1738_v7 = vrot.slane %v1736_v29, 7  ;;  %2504 = vrot.lane.b32.xlu1 %v2333_v16, %s3906_s26  ;;  %2785 = vrot.lane.b32.xlu0 %v2345_v40, %s3916_s20  ;;  %v1734_v21 = vrot.slane %v1730_v39, 4  ;;  %v1528_v61 = vsel %vm4352_vm15, 0, %v1527_v57 }
 0x1a6   : > { %v2038_v17 = vsel %vm4553_vm3, %v1750_v11, %v2037_v58  ;;  %v1758_v18 = vor.u32 %v1756_v4, %v1755_v2  ;;  %v1760_v19 = vrot.slane %v1755_v2, 4  ;;  %v3190_v39 = vsel %vm3188_vm9, %v3873_v23, 0  ;;  %1529 = vst [vmem:[#allocation2 + $0xa8] sm:$0x1] %v1528_v61  ;;  %v1524_v4 = vld [vmem:[#allocation2 + $0x9c] sm:$0x1] }
 0x1a7   : > { %2039 = vst [vmem:[#allocation2 + $0x30] sm:$0xf] %v2038_v17  ;;  %v2031_v22 = vsel %vm4553_vm3, %v1733_v5, %v2030_v63  ;;  %v1741_v24 = vor.u32 %v1739_v12, %v1738_v7  ;;  %v1743_v25 = vrot.slane %v1738_v7, 4  ;;  %3744 = vmatpush3.bf16.msra.mxu1 %v3868_v0  ;;  %v1525_v12 = vsel %vm4352_vm15, 0, %v1524_v4 }
 0x1a8   : > { %2032 = vst [vmem:[#allocation2 + $0x24] sm:$0xf] %v2031_v22  ;;  %v1759_v3 = vsel %vm4564_vm7, %v1751_v13, %v1758_v18  ;;  %v2042_v10 = vsel %vm4352_vm15, %v1760_v19, %v2041_v6  ;;  %3745 = vmatprep.subr.bf16.mxu1 %v3871_v43  ;;  %1526 = vst [vmem:[#allocation2 + $0x9c] sm:$0x1] %v1525_v12 }
 0x1a9   : > { %2040 = vst.msk [vmem:[#allocation2 + $0x34] sm:$0xf] %vm1473_vm12, %v1759_v3  ;;  %2043 = vst [vmem:[#allocation2 + $0x38] sm:$0x1] %v2042_v10  ;;  %v1742_v26 = vsel %vm4564_vm7, %v1734_v21, %v1741_v24  ;;  %v2035_v15 = vsel %vm4352_vm15, %v1743_v25, %v2034_v20  ;;  %2666 = vrot.lane.b32.xlu0 %v2333_v16, %s3911_s12  ;;  %v1583_v16 = vld [vmem:[#allocation2 + $0xb0] sm:$0x1] }
 0x1aa   : > { %2033 = vst.msk [vmem:[#allocation2 + $0x28] sm:$0xf] %vm1473_vm12, %v1742_v26  ;;  %2036 = vst [vmem:[#allocation2 + $0x2c] sm:$0x1] %v2035_v15  ;;  %v1584_v19 = vsel %vm4373_vm14, 0, %v1583_v16 }
 0x1ab   : > { %3746 = vmatpush3.bf16.msra.mxu1 %v3871_v43  ;;  %v1580_v20 = vld [vmem:[#allocation2 + $0xa4] sm:$0x1]  ;;  %1585 = vst [vmem:[#allocation2 + $0xb0] sm:$0x1] %v1584_v19  ;;  %v2051_v3 = vld [vmem:[#allocation2 + $0x48] sm:$0xf] }
 0x1ac   : > { %3782 = vmatprep.subr.msk.bf16.mxu1 %vm3188_vm9, %v3873_v23  ;;  %v1581_v25 = vsel %vm4373_vm14, 0, %v1580_v20 }
 0x1ad   : > { %1582 = vst [vmem:[#allocation2 + $0xa4] sm:$0x1] %v1581_v25 }
 0x1af   : > { %3748 = vmatpush3.bf16.msra.mxu1 %v3190_v39 }
 0x1b0   : > { %v3850_v32 = vld [vmem:[#allocation2 + $0x30] sm:$0xff]   ;;  %v3852_v33 = vld [vmem:[#allocation2 + $0x38] ss:$0 sps:$4 sm:$0x11]  }
 0x1b1   : > { %2625 = vrot.lane.b32.xlu1 %v3850_v32, %s3909_s6  ;;  %2742 = vrot.lane.b32.xlu0 %v3850_v32, %s3913_s15  ;;  %v4637_v34 = vld [vmem:[#allocation2 + $0x24] sm:$0xff]   ;;  %v4639_v35 = vld [vmem:[#allocation2 + $0x2c] ss:$0 sps:$4 sm:$0x11]   ;;  %v2361_v37 = vshll.u32 %v3850_v32, 16  ;;  %v2546_v8 = vrot.slane %v3850_v32, 1 }
 0x1b2   : > { %v2547_v38 = vrot.slane %v3852_v33, 1  ;;  %v2543_v40 = vrot.slane %v4637_v34, 1  ;;  %v2544_v42 = vrot.slane %v4639_v35, 1  ;;  %v2359_v41 = vshrl.u32 %v3850_v32, 16  ;;  %v2044_v32 = vld [vmem:[#allocation2 + $0x3c] sm:$0xf] }
 0x1b3   : > { %v2363_v30 = vrot.slane %v2361_v37, 1  ;;  %v2366_v47 = vshll.u32 %v3852_v33, 16  ;;  %v2349_v50 = vshll.u32 %v4637_v34, 16  ;;  %v2354_v2 = vshll.u32 %v4639_v35, 16 }
 0x1b4   : > { %v2548_v60 = vsel %vm633_vm0, %v2546_v8, %v2547_v38  ;;  %v4659_v46 = vsel %vm633_vm0, %v2543_v40, %v2544_v42  ;;  %v2347_v27 = vshrl.u32 %v4637_v34, 16  ;;  %v2055_v8 = vld [vmem:[#allocation2 + $0x50] sm:$0x1] }
 0x1b5   : > { %2740 = vrot.lane.b32.xlu1 %v4637_v34, %s3913_s15  ;;  %2623 = vrot.lane.b32.xlu0 %v4637_v34, %s3909_s6  ;;  %v2364_v56 = vor.u32 %v2363_v30, %v2359_v41  ;;  %v2368_v63 = vrot.slane %v2366_v47, 1  ;;  %v2351_v7 = vrot.slane %v2349_v50, 1  ;;  %v2356_v0 = vrot.slane %v2354_v2, 1 }
 0x1b7   : > { %v2369_v18 = vsel %vm408_vm1, %v2364_v56, %v2368_v63  ;;  %v2352_v42 = vor.u32 %v2351_v7, %v2347_v27 }
 0x1b9   : > { %v3717_v49 = vpop.f32.mrb[8].mxu0  ;;  %2707 = vrot.lane.b32.xlu1 %v2548_v60, %s3914_s16  ;;  %2824 = vrot.lane.b32.xlu0 %v2548_v60, %s3915_s17  ;;  %v2357_v23 = vsel %vm408_vm1, %v2352_v42, %v2356_v0 }
 0x1ba   : > { %v1355_v9 = vadd.f32 %v3717_v49, %v4522_v51  ;;  %v1346_v44 = vpop.f32.mrb[9].mxu0 }
 0x1bb   : > { %v1347_v28 = vadd.f32 %v4522_v51, %v1346_v44  ;;  %v3718_v45 = vpop.f32.mrb[10].mxu0 }
 0x1bc   : > { %v1451_v53 = vmax.f32 %v1355_v9, 0.0  ;;  %v1358_v54 = vadd.f32 %v3718_v45, %v4522_v51  ;;  %v1349_v55 = vpop.f32.mrb[11].mxu0  ;;  %v2048_v9 = vld [vmem:[#allocation2 + $0x44] sm:$0x1] }
 0x1bd   : > { %v1449_v58 = vmax.f32 %v1347_v28, 0.0  ;;  %v1350_v59 = vadd.f32 %v4522_v51, %v1349_v55  ;;  %2588 = vrot.lane.b32.xlu1 %v4659_v46, %s3908_s28  ;;  %2590 = vrot.lane.b32.xlu0 %v2548_v60, %s3908_s28 }
 0x1be   : > { %v3639_v62 = vpack.c.bf16 %v1451_v53, %v1451_v53  ;;  %v1452_v29 = vmax.f32 %v1358_v54, 0.0 }
 0x1bf   : > { %v3637_v48 = vpack.c.bf16 %v1449_v58, %v1449_v58  ;;  %v1450_v11 = vmax.f32 %v1350_v59, 0.0 }
 0x1c0   : > { %v1779_v5 = vshrl.u32 %v3639_v62, 16  ;;  %v3640_v6 = vpack.c.bf16 %v1452_v29, %v1452_v29  ;;  %v1782_v22 = vshll.u32 %v3639_v62, 16 }
 0x1c1   : > { %v1762_v13 = vshrl.u32 %v3637_v48, 16  ;;  %v3638_v17 = vpack.c.bf16 %v1450_v11, %v1450_v11  ;;  %2672 = vrot.lane.b32.xlu1 %v2369_v18, %s3911_s12  ;;  %2822 = vrot.lane.b32.xlu0 %v4659_v46, %s3915_s17  ;;  %v1765_v26 = vshll.u32 %v3637_v48, 16  ;;  %v1533_v11 = vld [vmem:[#allocation2 + $0xc0] sm:$0x1] }
 0x1c2   : > { %v1781_v21 = vrot.slane %v1779_v5, 7  ;;  %v1787_v24 = vshrl.u32 %v3640_v6, 16  ;;  %v1790_v35 = vshll.u32 %v3640_v6, 16  ;;  %v1534_v4 = vsel %vm4352_vm15, 0, %v1533_v11 }
 0x1c3   : > { %v1764_v10 = vrot.slane %v1762_v13, 7  ;;  %v1770_v15 = vshrl.u32 %v3638_v17, 16  ;;  %v1773_v40 = vshll.u32 %v3638_v17, 16  ;;  %1535 = vst [vmem:[#allocation2 + $0xc0] sm:$0x1] %v1534_v4 }
 0x1c4   : > { %v1784_v31 = vor.u32 %v1782_v22, %v1781_v21  ;;  %v1789_v33 = vrot.slane %v1787_v24, 7  ;;  %v1785_v43 = vrot.slane %v1781_v21, 4 }
 0x1c5   : > { %v1767_v37 = vor.u32 %v1765_v26, %v1764_v10  ;;  %v1772_v38 = vrot.slane %v1770_v15, 7  ;;  %2510 = vrot.lane.b32.xlu1 %v2369_v18, %s3906_s26  ;;  %2705 = vrot.lane.b32.xlu0 %v4659_v46, %s3914_s16  ;;  %v1768_v34 = vrot.slane %v1764_v10, 4  ;;  %v1530_v10 = vld [vmem:[#allocation2 + $0xb4] sm:$0x1] }
 0x1c6   : > { %v2052_v30 = vsel %vm4553_vm3, %v1784_v31, %v2051_v3  ;;  %v1792_v49 = vor.u32 %v1790_v35, %v1789_v33  ;;  %v1794_v60 = vrot.slane %v1789_v33, 4  ;;  %v1531_v31 = vsel %vm4352_vm15, 0, %v1530_v10 }
 0x1c7   : > { %2053 = vst [vmem:[#allocation2 + $0x48] sm:$0xf] %v2052_v30  ;;  %v2045_v44 = vsel %vm4553_vm3, %v1767_v37, %v2044_v32  ;;  %v1775_v41 = vor.u32 %v1773_v40, %v1772_v38  ;;  %v1777_v28 = vrot.slane %v1772_v38, 4  ;;  %v1589_v32 = vld [vmem:[#allocation2 + $0xc8] sm:$0x1] }
 0x1c8   : > { %2046 = vst [vmem:[#allocation2 + $0x3c] sm:$0xf] %v2045_v44  ;;  %v1793_v45 = vsel %vm4564_vm7, %v1785_v43, %v1792_v49  ;;  %v2056_v47 = vsel %vm4352_vm15, %v1794_v60, %v2055_v8  ;;  %1532 = vst [vmem:[#allocation2 + $0xb4] sm:$0x1] %v1531_v31  ;;  %v1590_v37 = vsel %vm4373_vm14, 0, %v1589_v32 }
 0x1c9   : > { %2054 = vst.msk [vmem:[#allocation2 + $0x4c] sm:$0xf] %vm1473_vm12, %v1793_v45  ;;  %2057 = vst [vmem:[#allocation2 + $0x50] sm:$0x1] %v2056_v47  ;;  %v1776_v46 = vsel %vm4564_vm7, %v1768_v34, %v1775_v41  ;;  %v2049_v50 = vsel %vm4352_vm15, %v1777_v28, %v2048_v9  ;;  %2787 = vrot.lane.b32.xlu1 %v2357_v23, %s3916_s20  ;;  %2789 = vrot.lane.b32.xlu0 %v2369_v18, %s3916_s20  ;;  %v1586_v8 = vld [vmem:[#allocation2 + $0xbc] sm:$0x1] }
 0x1ca   : > { %2047 = vst.msk [vmem:[#allocation2 + $0x40] sm:$0xf] %vm1473_vm12, %v1776_v46  ;;  %2050 = vst [vmem:[#allocation2 + $0x44] sm:$0x1] %v2049_v50  ;;  %v1587_v43 = vsel %vm4373_vm14, 0, %v1586_v8 }
 0x1cb   : > { %1591 = vst [vmem:[#allocation2 + $0xc8] sm:$0x1] %v1590_v37  ;;  %1588 = vst [vmem:[#allocation2 + $0xbc] sm:$0x1] %v1587_v43  ;;  %v2065_v9 = vld [vmem:[#allocation2 + $0x60] sm:$0xf] }
 0x1cc   : > { %v2058_v47 = vld [vmem:[#allocation2 + $0x54] sm:$0xf] }
 0x1cd   : > { %2508 = vrot.lane.b32.xlu1 %v2357_v23, %s3906_s26  ;;  %2670 = vrot.lane.b32.xlu0 %v2357_v23, %s3911_s12 }
 0x1d0   : > { %v3854_v53 = vld [vmem:[#allocation2 + $0x48] sm:$0xff]   ;;  %v3856_v54 = vld [vmem:[#allocation2 + $0x50] ss:$0 sps:$4 sm:$0x11]  }
 0x1d1   : > { %2629 = vrot.lane.b32.xlu1 %v3854_v53, %s3909_s6  ;;  %2746 = vrot.lane.b32.xlu0 %v3854_v53, %s3913_s15  ;;  %v4708_v55 = vld [vmem:[#allocation2 + $0x3c] sm:$0xff]   ;;  %v2552_v56 = vrot.slane %v3854_v53, 1  ;;  %v2553_v57 = vrot.slane %v3856_v54, 1  ;;  %v4710_v58 = vld [vmem:[#allocation2 + $0x44] ss:$0 sps:$4 sm:$0x11]  }
 0x1d2   : > { %v2385_v59 = vshll.u32 %v3854_v53, 16  ;;  %v2549_v62 = vrot.slane %v4708_v55, 1  ;;  %v2550_v29 = vrot.slane %v4710_v58, 1  ;;  %v2383_v7 = vshrl.u32 %v3854_v53, 16 }
 0x1d3   : > { %v2554_v39 = vsel %vm633_vm0, %v2552_v56, %v2553_v57  ;;  %v2390_v12 = vshll.u32 %v3856_v54, 16  ;;  %v2373_v18 = vshll.u32 %v4708_v55, 16  ;;  %v2378_v3 = vshll.u32 %v4710_v58, 16  ;;  %v2069_v54 = vld [vmem:[#allocation2 + $0x68] sm:$0x1] }
 0x1d4   : > { %v2387_v48 = vrot.slane %v2385_v59, 1  ;;  %v2551_v21 = vsel %vm633_vm0, %v2549_v62, %v2550_v29  ;;  %v2371_v28 = vshrl.u32 %v4708_v55, 16  ;;  %v2062_v29 = vld [vmem:[#allocation2 + $0x5c] sm:$0x1] }
 0x1d5   : > { %2744 = vrot.lane.b32.xlu1 %v4708_v55, %s3913_s15  ;;  %2627 = vrot.lane.b32.xlu0 %v4708_v55, %s3909_s6  ;;  %v2392_v27 = vrot.slane %v2390_v12, 1  ;;  %v2375_v0 = vrot.slane %v2373_v18, 1  ;;  %v2380_v23 = vrot.slane %v2378_v3, 1 }
 0x1d6   : > { %v2388_v22 = vor.u32 %v2387_v48, %v2383_v7 }
 0x1d7   : > { %v2376_v58 = vor.u32 %v2375_v0, %v2371_v28 }
 0x1d8   : > { %v2393_v42 = vsel %vm408_vm1, %v2388_v22, %v2392_v27 }
 0x1d9   : > { %v3721_v61 = vpop.f32.mrb[12].mxu0  ;;  %2711 = vrot.lane.b32.xlu1 %v2554_v39, %s3914_s16  ;;  %2828 = vrot.lane.b32.xlu0 %v2554_v39, %s3915_s17  ;;  %v2381_v7 = vsel %vm408_vm1, %v2376_v58, %v2380_v23 }
 0x1da   : > { %v1371_v63 = vadd.f32 %v3721_v61, %v4522_v51  ;;  %v1362_v2 = vpop.f32.mrb[13].mxu0 }
 0x1db   : > { %v1363_v5 = vadd.f32 %v4522_v51, %v1362_v2  ;;  %v3722_v6 = vpop.f32.mrb[14].mxu0 }
 0x1dc   : > { %v1455_v16 = vmax.f32 %v1371_v63, 0.0  ;;  %v1374_v13 = vadd.f32 %v3722_v6, %v4522_v51  ;;  %v1365_v17 = vpop.f32.mrb[15].mxu0 }
 0x1dd   : > { %v1453_v19 = vmax.f32 %v1363_v5, 0.0  ;;  %v1366_v20 = vadd.f32 %v4522_v51, %v1365_v17  ;;  %2592 = vrot.lane.b32.xlu1 %v2551_v21, %s3908_s28  ;;  %2594 = vrot.lane.b32.xlu0 %v2554_v39, %s3908_s28 }
 0x1de   : > { %v3643_v24 = vpack.c.bf16 %v1455_v16, %v1455_v16  ;;  %v1456_v25 = vmax.f32 %v1374_v13, 0.0 }
 0x1df   : > { %v3641_v26 = vpack.c.bf16 %v1453_v19, %v1453_v19  ;;  %v1454_v15 = vmax.f32 %v1366_v20, 0.0 }
 0x1e0   : > { %v1813_v33 = vshrl.u32 %v3643_v24, 16  ;;  %v3644_v35 = vpack.c.bf16 %v1456_v25, %v1456_v25  ;;  %v1816_v49 = vshll.u32 %v3643_v24, 16 }
 0x1e1   : > { %v1796_v38 = vshrl.u32 %v3641_v26, 16  ;;  %v3642_v40 = vpack.c.bf16 %v1454_v15, %v1454_v15  ;;  %2676 = vrot.lane.b32.xlu1 %v2393_v42, %s3911_s12  ;;  %2826 = vrot.lane.b32.xlu0 %v2551_v21, %s3915_s17  ;;  %v1799_v44 = vshll.u32 %v3641_v26, 16 }
 0x1e2   : > { %v1815_v30 = vrot.slane %v1813_v33, 7  ;;  %v1821_v60 = vshrl.u32 %v3644_v35, 16  ;;  %v1824_v50 = vshll.u32 %v3644_v35, 16 }
 0x1e3   : > { %v1798_v34 = vrot.slane %v1796_v38, 7  ;;  %v1804_v41 = vshrl.u32 %v3642_v40, 16  ;;  %v1807_v57 = vshll.u32 %v3642_v40, 16 }
 0x1e4   : > { %v1818_v45 = vor.u32 %v1816_v49, %v1815_v30  ;;  %v1823_v46 = vrot.slane %v1821_v60, 7  ;;  %v1819_v59 = vrot.slane %v1815_v30, 4 }
 0x1e5   : > { %v1801_v53 = vor.u32 %v1799_v44, %v1798_v34  ;;  %v1806_v56 = vrot.slane %v1804_v41, 7  ;;  %2514 = vrot.lane.b32.xlu1 %v2393_v42, %s3906_s26  ;;  %2709 = vrot.lane.b32.xlu0 %v2551_v21, %s3914_s16  ;;  %v1802_v55 = vrot.slane %v1798_v34, 4  ;;  %v4771_v21 = vpop.permute.xlu0 %2502 }
 0x1e6   : > { %v2066_v61 = vsel %vm4553_vm3, %v1818_v45, %v2065_v9  ;;  %v1826_v39 = vor.u32 %v1824_v50, %v1823_v46  ;;  %v1828_v62 = vrot.slane %v1823_v46, 4 }
 0x1e7   : > { %2067 = vst [vmem:[#allocation2 + $0x60] sm:$0xf] %v2066_v61  ;;  %v2059_v48 = vsel %vm4553_vm3, %v1801_v53, %v2058_v47  ;;  %v1809_v11 = vor.u32 %v1807_v57, %v1806_v56  ;;  %v1811_v63 = vrot.slane %v1806_v56, 4  ;;  %v2079_v56 = vld [vmem:[#allocation2 + $0x78] sm:$0xf] }
 0x1e8   : > { %2060 = vst [vmem:[#allocation2 + $0x54] sm:$0xf] %v2059_v48  ;;  %v1827_v2 = vsel %vm4564_vm7, %v1819_v59, %v1826_v39  ;;  %v2070_v4 = vsel %vm4352_vm15, %v1828_v62, %v2069_v54  ;;  %v2072_v62 = vld [vmem:[#allocation2 + $0x6c] sm:$0xf] }
 0x1e9   : > { %2068 = vst.msk [vmem:[#allocation2 + $0x64] sm:$0xf] %vm1473_vm12, %v1827_v2  ;;  %2071 = vst [vmem:[#allocation2 + $0x68] sm:$0x1] %v2070_v4  ;;  %v1810_v5 = vsel %vm4564_vm7, %v1802_v55, %v1809_v11  ;;  %v2063_v6 = vsel %vm4352_vm15, %v1811_v63, %v2062_v29  ;;  %2791 = vrot.lane.b32.xlu1 %v2381_v7, %s3916_s20  ;;  %2793 = vrot.lane.b32.xlu0 %v2393_v42, %s3916_s20  ;;  %v4785_v60 = vpop.permute.xlu0 %2582  ;;  %v2083_v4 = vld [vmem:[#allocation2 + $0x80] sm:$0x1] }
 0x1ea   : > { %2061 = vst.msk [vmem:[#allocation2 + $0x58] sm:$0xf] %vm1473_vm12, %v1810_v5  ;;  %2064 = vst [vmem:[#allocation2 + $0x5c] sm:$0x1] %v2063_v6 }
 0x1ed   : > { %2512 = vrot.lane.b32.xlu1 %v2381_v7, %s3906_s26  ;;  %2674 = vrot.lane.b32.xlu0 %v2381_v7, %s3911_s12 }
 0x1f0   : > { %v3858_v12 = vld [vmem:[#allocation2 + $0x60] sm:$0xff]   ;;  %v3860_v16 = vld [vmem:[#allocation2 + $0x68] ss:$0 sps:$4 sm:$0x11]  }
 0x1f1   : > { %2633 = vrot.lane.b32.xlu1 %v3858_v12, %s3909_s6  ;;  %2750 = vrot.lane.b32.xlu0 %v3858_v12, %s3913_s15  ;;  %v4765_v13 = vld [vmem:[#allocation2 + $0x54] sm:$0xff]   ;;  %v2558_v17 = vrot.slane %v3858_v12, 1  ;;  %v2559_v18 = vrot.slane %v3860_v16, 1  ;;  %v3861_v19 = vld [vmem:[#allocation2 + $0x5c] ss:$0 sps:$4 sm:$0x11]  }
 0x1f2   : > { %v2409_v20 = vshll.u32 %v3858_v12, 16  ;;  %v2555_v25 = vrot.slane %v4765_v13, 1  ;;  %v2556_v3 = vrot.slane %v3861_v19, 1  ;;  %v2407_v32 = vshrl.u32 %v3858_v12, 16 }
 0x1f3   : > { %v2560_v24 = vsel %vm633_vm0, %v2558_v17, %v2559_v18  ;;  %v2414_v33 = vshll.u32 %v3860_v16, 16  ;;  %v2397_v8 = vshll.u32 %v4765_v13, 16  ;;  %v2402_v45 = vshll.u32 %v3861_v19, 16  ;;  %v2076_v18 = vld [vmem:[#allocation2 + $0x74] sm:$0x1] }
 0x1f4   : > { %v2411_v10 = vrot.slane %v2409_v20, 1  ;;  %v2557_v42 = vsel %vm633_vm0, %v2555_v25, %v2556_v3  ;;  %v2395_v61 = vshrl.u32 %v4765_v13, 16 }
 0x1f5   : > { %2748 = vrot.lane.b32.xlu1 %v4765_v13, %s3913_s15  ;;  %2631 = vrot.lane.b32.xlu0 %v4765_v13, %s3909_s6  ;;  %v2416_v44 = vrot.slane %v2414_v33, 1  ;;  %v2399_v50 = vrot.slane %v2397_v8, 1  ;;  %v2404_v63 = vrot.slane %v2402_v45, 1  ;;  %v1536_v33 = vld [vmem:[#allocation2 + $0xcc] sm:$0x1] }
 0x1f6   : > { %v2412_v43 = vor.u32 %v2411_v10, %v2407_v32 }
 0x1f7   : > { %v2400_v7 = vor.u32 %v2399_v50, %v2395_v61 }
 0x1f9   : > { %v3725_v22 = vpop.f32.mrb[16].mxu0  ;;  %2715 = vrot.lane.b32.xlu1 %v2560_v24, %s3914_s16  ;;  %2832 = vrot.lane.b32.xlu0 %v2560_v24, %s3915_s17 }
 0x1fa   : > { %v1387_v26 = vadd.f32 %v3725_v22, %v4522_v51  ;;  %v1378_v15 = vpop.f32.mrb[17].mxu0 }
 0x1fb   : > { %v1379_v27 = vadd.f32 %v4522_v51, %v1378_v15  ;;  %v3726_v31 = vpop.f32.mrb[18].mxu0 }
 0x1fc   : > { %v1459_v35 = vmax.f32 %v1387_v26, 0.0  ;;  %v1390_v0 = vadd.f32 %v3726_v31, %v4522_v51  ;;  %v1381_v37 = vpop.f32.mrb[19].mxu0  ;;  %v2405_v31 = vsel %vm408_vm1, %v2400_v7, %v2404_v63 }
 0x1fd   : > { %v1457_v38 = vmax.f32 %v1379_v27, 0.0  ;;  %v1382_v40 = vadd.f32 %v4522_v51, %v1381_v37  ;;  %2596 = vrot.lane.b32.xlu1 %v2557_v42, %s3908_s28  ;;  %2598 = vrot.lane.b32.xlu0 %v2560_v24, %s3908_s28  ;;  %v2417_v51 = vsel %vm408_vm1, %v2412_v43, %v2416_v44  ;;  %v1592_v37 = vld [vmem:[#allocation2 + $0xd4] sm:$0x1] }
 0x1fe   : > { %v3647_v30 = vpack.c.bf16 %v1459_v35, %v1459_v35  ;;  %v1460_v49 = vmax.f32 %v1390_v0, 0.0  ;;  %v1537_v35 = vsel %vm4352_vm15, 0, %v1536_v33  ;;  %v1593_v8 = vsel %vm4373_vm14, 0, %v1592_v37 }
 0x1ff   : > { %v3645_v9 = vpack.c.bf16 %v1457_v38, %v1457_v38  ;;  %v1458_v34 = vmax.f32 %v1382_v40, 0.0  ;;  %1538 = vst [vmem:[#allocation2 + $0xcc] sm:$0x1] %v1537_v35  ;;  %1594 = vst [vmem:[#allocation2 + $0xd4] sm:$0x1] %v1593_v8  ;;  %vm3013_vm14 = vcmask 392192  }
 0x200   : > { %v1847_v41 = vshrl.u32 %v3647_v30, 16  ;;  %v3648_v28 = vpack.c.bf16 %v1460_v49, %v1460_v49  ;;  %v1850_v53 = vshll.u32 %v3647_v30, 16 }
 0x201   : > { %v1830_v47 = vshrl.u32 %v3645_v9, 16  ;;  %v3646_v46 = vpack.c.bf16 %v1458_v34, %v1458_v34  ;;  %2680 = vrot.lane.b32.xlu1 %v2417_v51, %s3911_s12  ;;  %2830 = vrot.lane.b32.xlu0 %v2557_v42, %s3915_s17  ;;  %v1833_v58 = vshll.u32 %v3645_v9, 16  ;;  %v3885_v34 = vld [vmem:[#allocation2] sm:$0xff]  }
 0x202   : > { %v1849_v23 = vrot.slane %v1847_v41, 7  ;;  %v1855_v54 = vshrl.u32 %v3648_v28, 16  ;;  %v1858_v55 = vshll.u32 %v3648_v28, 16  ;;  %v2853_v14 = vsel %vm985_vm4, %v3885_v34, %v4771_v21 }
 0x203   : > { %v1832_v57 = vrot.slane %v1830_v47, 7  ;;  %v1838_v59 = vshrl.u32 %v3646_v46, 16  ;;  %v4791_v48 = vpop.permute.xlu1 %2621  ;;  %v4793_v11 = vpop.permute.xlu0 %2738  ;;  %v1841_v6 = vshll.u32 %v3646_v46, 16  ;;  %v2885_v45 = vsel %vm1051_vm6, %v2853_v14, %v4785_v60 }
 0x204   : > { %v1852_v39 = vor.u32 %v1850_v53, %v1849_v23  ;;  %v1857_v29 = vrot.slane %v1855_v54, 7  ;;  %v1853_v12 = vrot.slane %v1849_v23, 4  ;;  %v4852_v54 = vld [vmem:[%s5404_s2] ss:$0 sm:$0xff] }
 0x205   : > { %v1835_v2 = vor.u32 %v1833_v58, %v1832_v57  ;;  %v1840_v5 = vrot.slane %v1838_v59, 7  ;;  %2518 = vrot.lane.b32.xlu1 %v2417_v51, %s3906_s26  ;;  %2713 = vrot.lane.b32.xlu0 %v2557_v42, %s3914_s16  ;;  %v1836_v19 = vrot.slane %v1832_v57, 4 }
 0x206   : > { %v2080_v16 = vsel %vm4553_vm3, %v1852_v39, %v2079_v56  ;;  %v1860_v17 = vor.u32 %v1858_v55, %v1857_v29  ;;  %v1862_v13 = vrot.slane %v1857_v29, 4 }
 0x207   : > { %2081 = vst [vmem:[#allocation2 + $0x78] sm:$0xf] %v2080_v16  ;;  %v2073_v20 = vsel %vm4553_vm3, %v1835_v2, %v2072_v62  ;;  %v1843_v22 = vor.u32 %v1841_v6, %v1840_v5  ;;  %v1845_v24 = vrot.slane %v1840_v5, 4  ;;  %v4805_v10 = vpop.permute.xlu1 %2703  ;;  %v2620_v26 = vpop.permute.xlu0 %2619 }
 0x208   : > { %2074 = vst [vmem:[#allocation2 + $0x6c] sm:$0xf] %v2073_v20  ;;  %v1861_v25 = vsel %vm4564_vm7, %v1853_v12, %v1860_v17  ;;  %v2084_v3 = vsel %vm4352_vm15, %v1862_v13, %v2083_v4  ;;  %v2917_v57 = vsel %vm1117_vm8, %v2885_v45, %v2620_v26 }
 0x209   : > { %2082 = vst.msk [vmem:[#allocation2 + $0x7c] sm:$0xf] %vm1473_vm12, %v1861_v25  ;;  %2085 = vst [vmem:[#allocation2 + $0x80] sm:$0x1] %v2084_v3  ;;  %v1844_v15 = vsel %vm4564_vm7, %v1836_v19, %v1843_v22  ;;  %v2077_v27 = vsel %vm4352_vm15, %v1845_v24, %v2076_v18  ;;  %2795 = vrot.lane.b32.xlu1 %v2405_v31, %s3916_s20  ;;  %2797 = vrot.lane.b32.xlu0 %v2417_v51, %s3916_s20 }
 0x20a   : > { %2075 = vst.msk [vmem:[#allocation2 + $0x70] sm:$0xf] %vm1473_vm12, %v1844_v15  ;;  %2078 = vst [vmem:[#allocation2 + $0x74] sm:$0x1] %v2077_v27 }
 0x20b   : > { %v4816_v32 = vpop.permute.xlu0 %2820  ;;  %v4820_v0 = vpop.permute.xlu1 %2584 }
 0x20d   : > { %2516 = vrot.lane.b32.xlu1 %v2405_v31, %s3906_s26  ;;  %2678 = vrot.lane.b32.xlu0 %v2405_v31, %s3911_s12 }
 0x20f   : > { %v4826_v38 = vpop.permute.xlu0 %2586  ;;  %v4830_v43 = vpop.permute.xlu1 %2668 }
 0x210   : > { %v3862_v40 = vld [vmem:[#allocation2 + $0x78] sm:$0xff]   ;;  %v3864_v42 = vld [vmem:[#allocation2 + $0x80] ss:$0 sps:$4 sm:$0x11]  }
 0x211   : > { %2637 = vrot.lane.b32.xlu1 %v3862_v40, %s3909_s6  ;;  %2754 = vrot.lane.b32.xlu0 %v3862_v40, %s3913_s15  ;;  %v4832_v49 = vld [vmem:[#allocation2 + $0x6c] sm:$0xff]   ;;  %v4834_v9 = vld [vmem:[#allocation2 + $0x74] ss:$0 sps:$4 sm:$0x11]   ;;  %v2564_v44 = vrot.slane %v3862_v40, 1  ;;  %v2565_v41 = vrot.slane %v3864_v42, 1 }
 0x212   : > { %v2433_v28 = vshll.u32 %v3862_v40, 16  ;;  %v2561_v46 = vrot.slane %v4832_v49, 1  ;;  %v2562_v51 = vrot.slane %v4834_v9, 1  ;;  %v2431_v61 = vshrl.u32 %v3862_v40, 16 }
 0x213   : > { %v2702_v30 = vpop.permute.xlu0 %2701  ;;  %v2566_v21 = vsel %vm633_vm0, %v2564_v44, %v2565_v41  ;;  %v4847_v53 = vpop.permute.xlu1 %2506  ;;  %v2438_v39 = vshll.u32 %v3864_v42, 16  ;;  %v2421_v4 = vshll.u32 %v4832_v49, 16  ;;  %v2426_v18 = vshll.u32 %v4834_v9, 16  ;;  %v2086_v41 = vld [vmem:[#allocation2 + $0x84] sm:$0xf] }
 0x214   : > { %v2435_v23 = vrot.slane %v2433_v28, 1  ;;  %v2563_v2 = vsel %vm633_vm0, %v2561_v46, %v2562_v51  ;;  %v2419_v14 = vshrl.u32 %v4832_v49, 16 }
 0x215   : > { %2752 = vrot.lane.b32.xlu1 %v4832_v49, %s3913_s15  ;;  %2635 = vrot.lane.b32.xlu0 %v4832_v49, %s3909_s6  ;;  %v2440_v22 = vrot.slane %v2438_v39, 1  ;;  %v2423_v27 = vrot.slane %v2421_v4, 1  ;;  %v2428_v46 = vrot.slane %v2426_v18, 1 }
 0x216   : > { %v2436_v12 = vor.u32 %v2435_v23, %v2431_v61  ;;  %v2090_v61 = vld [vmem:[#allocation2 + $0x8c] sm:$0x1] }
 0x217   : > { %v2786_v47 = vpop.permute.xlu0 %2785  ;;  %v4870_v25 = vpop.permute.xlu1 %2504 }
 0x218   : > { %v2441_v35 = vsel %vm408_vm1, %v2436_v12, %v2440_v22 }
 0x219   : > { %v3729_v50 = vpop.f32.mrb[20].mxu0  ;;  %2719 = vrot.lane.b32.xlu1 %v2566_v21, %s3914_s16  ;;  %2836 = vrot.lane.b32.xlu0 %v2566_v21, %s3915_s17 }
 0x21a   : > { %v1403_v60 = vadd.f32 %v4852_v54, %v3729_v50  ;;  %v1394_v56 = vpop.f32.mrb[21].mxu0  ;;  %v2097_v50 = vld [vmem:[#allocation2 + $0x98] sm:$0x1] }
 0x21b   : > { %v1395_v58 = vadd.f32 %v4852_v54, %v1394_v56  ;;  %v3730_v59 = vpop.f32.mrb[22].mxu0  ;;  %v2667_v63 = vpop.permute.xlu0 %2666 }
 0x21c   : > { %v1463_v62 = vmax.f32 %v1403_v60, 0.0  ;;  %v1406_v29 = vadd.f32 %v4852_v54, %v3730_v59  ;;  %v1397_v55 = vpop.f32.mrb[23].mxu0  ;;  %v2949_v7 = vsel %vm1183_vm10, %v2917_v57, %v2667_v63  ;;  %v2424_v60 = vor.u32 %v2423_v27, %v2419_v14 }
 0x21d   : > { %v1461_v5 = vmax.f32 %v1395_v58, 0.0  ;;  %v1398_v6 = vadd.f32 %v4852_v54, %v1397_v55  ;;  %v2982_v13 = vsel %vm2980_vm11, %v2949_v7, %v2702_v30  ;;  %2600 = vrot.lane.b32.xlu1 %v2563_v2, %s3908_s28  ;;  %2602 = vrot.lane.b32.xlu0 %v2566_v21, %s3908_s28 }
 0x21e   : > { %v3651_v16 = vpack.c.bf16 %v1463_v62, %v1463_v62  ;;  %v1464_v17 = vmax.f32 %v1406_v29, 0.0  ;;  %v3015_v24 = vsel %vm3013_vm14, %v2982_v13, %v4793_v11  ;;  %v2093_v11 = vld [vmem:[#allocation2 + $0x90] sm:$0xf]  ;;  %v2429_v12 = vsel %vm408_vm1, %v2424_v60, %v2428_v46 }
 0x21f   : > { %v3649_v19 = vpack.c.bf16 %v1461_v5, %v1461_v5  ;;  %v1462_v20 = vmax.f32 %v1398_v6, 0.0  ;;  %v3048_v15 = vsel %vm3046_vm2, %v3015_v24, %v2786_v47  ;;  %v3887_v13 = vld [vmem:[#allocation2 + $0xc] sm:$0xff]  }
 0x220   : > { %v1881_v3 = vshrl.u32 %v3651_v16, 16  ;;  %v3652_v26 = vpack.c.bf16 %v1464_v17, %v1464_v17  ;;  %v3081_v37 = vsel %vm3079_vm13, %v3048_v15, %v4816_v32  ;;  %v1884_v40 = vshll.u32 %v3651_v16, 16 }
 0x221   : > { %v1864_v31 = vshrl.u32 %v3649_v19, 16  ;;  %v3650_v33 = vpack.c.bf16 %v1462_v20, %v1462_v20  ;;  %2684 = vrot.lane.b32.xlu1 %v2441_v35, %s3911_s12  ;;  %2834 = vrot.lane.b32.xlu0 %v2563_v2, %s3915_s17  ;;  %v1867_v9 = vshll.u32 %v3649_v19, 16  ;;  %v2855_v18 = vsel %vm985_vm4, %v3887_v13, %v4870_v25 }
 0x222   : > { %v1883_v8 = vrot.slane %v1881_v3, 7  ;;  %v1889_v42 = vshrl.u32 %v3652_v26, 16  ;;  %3749 = vmatprep.mubr.msk.bf16.mxu1 %vm3155_vm5, %v3081_v37  ;;  %v1892_v45 = vshll.u32 %v3652_v26, 16  ;;  %v2887_v3 = vsel %vm1051_vm6, %v2855_v18, %v4820_v0 }
 0x223   : > { %v1866_v30 = vrot.slane %v1864_v31, 7  ;;  %v1872_v34 = vshrl.u32 %v3650_v33, 16  ;;  %v4880_v32 = vpop.permute.xlu1 %2625  ;;  %v4882_v47 = vpop.permute.xlu0 %2742  ;;  %v1875_v23 = vshll.u32 %v3650_v33, 16 }
 0x224   : > { %v1886_v44 = vor.u32 %v1884_v40, %v1883_v8  ;;  %v1891_v28 = vrot.slane %v1889_v42, 7  ;;  %v1887_v56 = vrot.slane %v1883_v8, 4 }
 0x225   : > { %v1869_v51 = vor.u32 %v1867_v9, %v1866_v30  ;;  %v1874_v21 = vrot.slane %v1872_v34, 7  ;;  %2522 = vrot.lane.b32.xlu1 %v2441_v35, %s3906_s26  ;;  %2717 = vrot.lane.b32.xlu0 %v2563_v2, %s3914_s16  ;;  %v1870_v39 = vrot.slane %v1866_v30, 4 }
 0x226   : > { %v2094_v57 = vsel %vm4553_vm3, %v1886_v44, %v2093_v11  ;;  %v1894_v58 = vor.u32 %v1892_v45, %v1891_v28  ;;  %v1896_v59 = vrot.slane %v1891_v28, 4  ;;  %v3888_v44 = vld [vmem:[#allocation2 + $0x18] sm:$0xff]  }
 0x227   : > { %2095 = vst [vmem:[#allocation2 + $0x90] sm:$0xf] %v2094_v57  ;;  %v2087_v62 = vsel %vm4553_vm3, %v1869_v51, %v2086_v41  ;;  %v1877_v29 = vor.u32 %v1875_v23, %v1874_v21  ;;  %v1879_v55 = vrot.slane %v1874_v21, 4  ;;  %v2741_v5 = vpop.permute.xlu1 %2740  ;;  %v4894_v6 = vpop.permute.xlu0 %2623  ;;  %v2857_v41 = vsel %vm985_vm4, %v3888_v44, %v4847_v53 }
 0x228   : > { %2088 = vst [vmem:[#allocation2 + $0x84] sm:$0xf] %v2087_v62  ;;  %v1895_v63 = vsel %vm4564_vm7, %v1887_v56, %v1894_v58  ;;  %v2098_v4 = vsel %vm4352_vm15, %v1896_v59, %v2097_v50 }
 0x229   : > { %2096 = vst.msk [vmem:[#allocation2 + $0x94] sm:$0xf] %vm1473_vm12, %v1895_v63  ;;  %2099 = vst [vmem:[#allocation2 + $0x98] sm:$0x1] %v2098_v4  ;;  %v1878_v2 = vsel %vm4564_vm7, %v1870_v39, %v1877_v29  ;;  %v2091_v7 = vsel %vm4352_vm15, %v1879_v55, %v2090_v61  ;;  %2799 = vrot.lane.b32.xlu1 %v2429_v12, %s3916_s20  ;;  %2801 = vrot.lane.b32.xlu0 %v2441_v35, %s3916_s20 }
 0x22a   : > { %2089 = vst.msk [vmem:[#allocation2 + $0x88] sm:$0xf] %vm1473_vm12, %v1878_v2  ;;  %2092 = vst [vmem:[#allocation2 + $0x8c] sm:$0x1] %v2091_v7  ;;  %v2919_v35 = vsel %vm1117_vm8, %v2887_v3, %v4791_v48 }
 0x22b   : > { %v4905_v16 = vpop.permute.xlu1 %2707  ;;  %v4907_v17 = vpop.permute.xlu0 %2824  ;;  %v2951_v42 = vsel %vm1183_vm10, %v2919_v35, %v4830_v43 }
 0x22c   : > { %v2984_v43 = vsel %vm2980_vm11, %v2951_v42, %v4805_v10 }
 0x22d   : > { %2520 = vrot.lane.b32.xlu1 %v2429_v12, %s3906_s26  ;;  %2682 = vrot.lane.b32.xlu0 %v2429_v12, %s3911_s12  ;;  %v3017_v23 = vsel %vm3013_vm14, %v2984_v43, %v2741_v5  ;;  %v2889_v5 = vsel %vm1051_vm6, %v2857_v41, %v4826_v38 }
 0x22e   : > { %v2921_v18 = vsel %vm1117_vm8, %v2889_v5, %v4894_v6  ;;  %v2107_v6 = vld [vmem:[#allocation2 + $0xa8] sm:$0xf] }
 0x22f   : > { %v4913_v19 = vpop.permute.xlu1 %2588  ;;  %v4915_v20 = vpop.permute.xlu0 %2590 }
 0x230   : > { %v4917_v22 = vld [vmem:[#allocation2 + $0x90] sm:$0xff]   ;;  %v4939_v40 = vld [vmem:[#allocation2 + $0x98] ss:$0 sps:$4 sm:$0x11]  }
 0x231   : > { %v4919_v24 = vld [vmem:[#allocation2 + $0x84] sm:$0xff]   ;;  %v3870_v26 = vld [vmem:[#allocation2 + $0x8c] ss:$0 sps:$4 sm:$0x11]   ;;  %v2457_v37 = vshll.u32 %v4917_v22, 16  ;;  %v2455_v21 = vshrl.u32 %v4917_v22, 16 }
 0x232   : > { %2756 = vrot.lane.b32.xlu1 %v4919_v24, %s3913_s15  ;;  %v2567_v15 = vrot.slane %v4919_v24, 1  ;;  %v2445_v27 = vshll.u32 %v4919_v24, 16  ;;  %v2568_v33 = vrot.slane %v3870_v26, 1  ;;  %v2443_v30 = vshrl.u32 %v4919_v24, 16 }
 0x233   : > { %v4927_v25 = vpop.permute.xlu1 %2672  ;;  %v2823_v31 = vpop.permute.xlu0 %2822  ;;  %v2450_v9 = vshll.u32 %v3870_v26, 16  ;;  %v2459_v14 = vrot.slane %v2457_v37, 1  ;;  %v2462_v53 = vshll.u32 %v4939_v40, 16  ;;  %v2571_v37 = vrot.slane %v4939_v40, 1 }
 0x234   : > { %v4933_v8 = vsel %vm633_vm0, %v2567_v15, %v2568_v33  ;;  %v2447_v0 = vrot.slane %v2445_v27, 1  ;;  %v2570_v27 = vrot.slane %v4917_v22, 1 }
 0x235   : > { %2838 = vrot.lane.b32.xlu0 %v4933_v8, %s3915_s17  ;;  %v2452_v58 = vrot.slane %v2450_v9, 1  ;;  %v2460_v29 = vor.u32 %v2459_v14, %v2455_v21  ;;  %v2464_v13 = vrot.slane %v2462_v53, 1  ;;  %v2111_v53 = vld [vmem:[#allocation2 + $0xb0] sm:$0x1] }
 0x236   : > { %2641 = vrot.lane.b32.xlu1 %v4917_v22, %s3909_s6  ;;  %v2448_v46 = vor.u32 %v2447_v0, %v2443_v30 }
 0x237   : > { %v4943_v11 = vpop.permute.xlu1 %2510  ;;  %v4945_v48 = vpop.permute.xlu0 %2705  ;;  %v4975_v35 = vsel %vm408_vm1, %v2460_v29, %v2464_v13  ;;  %v3889_v13 = vld [vmem:[#allocation2 + $0x24] sm:$0xff]  }
 0x238   : > { %v2453_v4 = vsel %vm408_vm1, %v2448_v46, %v2452_v58  ;;  %v2100_v46 = vld [vmem:[#allocation2 + $0x9c] sm:$0xf]  ;;  %v2104_v58 = vld [vmem:[#allocation2 + $0xa4] sm:$0x1] }
 0x239   : > { %v3733_v34 = vpop.f32.mrb[24].mxu0  ;;  %2639 = vrot.lane.b32.xlu0 %v4919_v24, %s3909_s6 }
 0x23a   : > { %v1419_v28 = vadd.f32 %v4852_v54, %v3733_v34  ;;  %v1410_v45 = vpop.f32.mrb[25].mxu0  ;;  %2604 = vrot.lane.b32.xlu1 %v4933_v8, %s3908_s28 }
 0x23b   : > { %v1411_v51 = vadd.f32 %v4852_v54, %v1410_v45  ;;  %v3734_v50 = vpop.f32.mrb[26].mxu0  ;;  %v2788_v10 = vpop.permute.xlu1 %2787 }
 0x23c   : > { %v1467_v60 = vmax.f32 %v1419_v28, 0.0  ;;  %v1422_v56 = vadd.f32 %v4852_v54, %v3734_v50  ;;  %v1413_v57 = vpop.f32.mrb[27].mxu0  ;;  %v3050_v39 = vsel %vm3046_vm2, %v3017_v23, %v2788_v10  ;;  %v2790_v62 = vpop.permute.xlu0 %2789 }
 0x23d   : > { %v1465_v59 = vmax.f32 %v1411_v51, 0.0  ;;  %v1414_v61 = vadd.f32 %v4852_v54, %v1413_v57  ;;  %v3083_v2 = vsel %vm3079_vm13, %v3050_v39, %v2823_v31  ;;  %2686 = vrot.lane.b32.xlu0 %v2453_v4, %s3911_s12 }
 0x23e   : > { %v3655_v55 = vpack.c.bf16 %v1467_v60, %v1467_v60  ;;  %v1468_v63 = vmax.f32 %v1422_v56, 0.0  ;;  %2803 = vrot.lane.b32.xlu1 %v2453_v4, %s3916_s20  ;;  %3750 = vmatmul.mubr.msk.bf16.vlgmr.msra.gmra.mrb[0].mxu1 %vm3155_vm5, %v3083_v2 }
 0x23f   : > { %v3653_v7 = vpack.c.bf16 %v1465_v59, %v1465_v59  ;;  %v1466_v12 = vmax.f32 %v1414_v61, 0.0  ;;  %v2509_v15 = vpop.permute.xlu1 %2508 }
 0x240   : > { %v1915_v3 = vshrl.u32 %v3655_v55, 16  ;;  %v3656_v26 = vpack.c.bf16 %v1468_v63, %v1468_v63  ;;  %v2671_v38 = vpop.permute.xlu0 %2670  ;;  %v1918_v42 = vshll.u32 %v3655_v55, 16 }
 0x241   : > { %v1898_v31 = vshrl.u32 %v3653_v7, 16  ;;  %v3654_v33 = vpack.c.bf16 %v1466_v12, %v1466_v12  ;;  %v1901_v30 = vshll.u32 %v3653_v7, 16  ;;  %2721 = vrot.lane.b32.xlu0 %v4933_v8, %s3914_s16  ;;  %v2953_v40 = vsel %vm1183_vm10, %v2921_v18, %v2671_v38 }
 0x242   : > { %v1917_v0 = vrot.slane %v1915_v3, 7  ;;  %v1923_v9 = vshrl.u32 %v3656_v26, 16  ;;  %v1926_v14 = vshll.u32 %v3656_v26, 16  ;;  %2524 = vrot.lane.b32.xlu1 %v2453_v4, %s3906_s26  ;;  %v2986_v60 = vsel %vm2980_vm11, %v2953_v40, %v4945_v48 }
 0x243   : > { %v1900_v34 = vrot.slane %v1898_v31, 7  ;;  %v1906_v44 = vshrl.u32 %v3654_v33, 16  ;;  %v1909_v41 = vshll.u32 %v3654_v33, 16  ;;  %v4982_v51 = vpop.permute.xlu1 %2629  ;;  %v3019_v59 = vsel %vm3013_vm14, %v2986_v60, %v4882_v47 }
 0x244   : > { %v1920_v28 = vor.u32 %v1918_v42, %v1917_v0  ;;  %v1921_v45 = vrot.slane %v1917_v0, 4  ;;  %v1925_v43 = vrot.slane %v1923_v9, 7  ;;  %v4986_v56 = vpop.permute.xlu0 %2746  ;;  %v3052_v48 = vsel %vm3046_vm2, %v3019_v59, %v2790_v62  ;;  %v3890_v59 = vld [vmem:[#allocation2 + $0x30] sm:$0xff]  }
 0x245   : > { %v1903_v50 = vor.u32 %v1901_v30, %v1900_v34  ;;  %v1904_v21 = vrot.slane %v1900_v34, 4  ;;  %v1908_v23 = vrot.slane %v1906_v44, 7  ;;  %2758 = vrot.lane.b32.xlu0 %v4917_v22, %s3913_s15  ;;  %v3085_v63 = vsel %vm3079_vm13, %v3052_v48, %v4907_v17 }
 0x246   : > { %v2108_v8 = vsel %vm4553_vm3, %v1920_v28, %v2107_v6  ;;  %v1928_v57 = vor.u32 %v1926_v14, %v1925_v43  ;;  %v1930_v10 = vrot.slane %v1925_v43, 4  ;;  %2688 = vrot.lane.b32.xlu1 %v4975_v35, %s3911_s12  ;;  %3753 = vmatprep.mubr.msk.bf16.mxu1 %vm3155_vm5, %v3085_v63  ;;  %v2572_v7 = vsel %vm633_vm0, %v2570_v27, %v2571_v37 }
 0x247   : > { %2109 = vst [vmem:[#allocation2 + $0xa8] sm:$0xf] %v2108_v8  ;;  %v2101_v61 = vsel %vm4553_vm3, %v1903_v50, %v2100_v46  ;;  %v1911_v39 = vor.u32 %v1909_v41, %v1908_v23  ;;  %v1913_v29 = vrot.slane %v1908_v23, 4  ;;  %v2745_v4 = vpop.permute.xlu1 %2744  ;;  %v2859_v18 = vsel %vm985_vm4, %v3889_v13, %v2509_v15 }
 0x248   : > { %2102 = vst [vmem:[#allocation2 + $0x9c] sm:$0xf] %v2101_v61  ;;  %v1929_v55 = vsel %vm4564_vm7, %v1921_v45, %v1928_v57  ;;  %v2112_v47 = vsel %vm4352_vm15, %v1930_v10, %v2111_v53  ;;  %v5011_v5 = vpop.permute.xlu0 %2627  ;;  %v2891_v27 = vsel %vm1051_vm6, %v2859_v18, %v4913_v19  ;;  %v2861_v61 = vsel %vm985_vm4, %v3890_v59, %v4943_v11 }
 0x249   : > { %2110 = vst.msk [vmem:[#allocation2 + $0xac] sm:$0xf] %vm1473_vm12, %v1929_v55  ;;  %2113 = vst [vmem:[#allocation2 + $0xb0] sm:$0x1] %v2112_v47  ;;  %v1912_v62 = vsel %vm4564_vm7, %v1904_v21, %v1911_v39  ;;  %v2105_v2 = vsel %vm4352_vm15, %v1913_v29, %v2104_v58  ;;  %2805 = vrot.lane.b32.xlu0 %v4975_v35, %s3916_s20  ;;  %v2923_v30 = vsel %vm1117_vm8, %v2891_v27, %v4880_v32  ;;  %v2121_v27 = vld [vmem:[#allocation2 + $0xc0] sm:$0xf] }
 0x24a   : > { %2103 = vst.msk [vmem:[#allocation2 + $0xa0] sm:$0xf] %vm1473_vm12, %v1912_v62  ;;  %2106 = vst [vmem:[#allocation2 + $0xa4] sm:$0x1] %v2105_v2  ;;  %2723 = vrot.lane.b32.xlu1 %v2572_v7, %s3914_s16  ;;  %v2955_v46 = vsel %vm1183_vm10, %v2923_v30, %v4927_v25  ;;  %v2893_v11 = vsel %vm1051_vm6, %v2861_v61, %v4915_v20 }
 0x24b   : > { %v5018_v17 = vpop.permute.xlu1 %2711  ;;  %v2988_v25 = vsel %vm2980_vm11, %v2955_v46, %v4905_v16 }
 0x24c   : > { %v5020_v12 = vpop.permute.xlu0 %2828  ;;  %v3021_v39 = vsel %vm3013_vm14, %v2988_v25, %v2745_v4 }
 0x24d   : > { %2840 = vrot.lane.b32.xlu0 %v2572_v7, %s3915_s17 }
 0x24f   : > { %v5024_v3 = vpop.permute.xlu1 %2592 }
 0x250   : > { %v5026_v26 = vpop.permute.xlu0 %2594  ;;  %v5065_v2 = vld [vmem:[#allocation2 + $0xa8] sm:$0xff]  }
 0x251   : > { %v5028_v31 = vld [vmem:[#allocation2 + $0x9c] sm:$0xff]   ;;  %v3876_v33 = vld [vmem:[#allocation2 + $0xa4] ss:$0 sps:$4 sm:$0x11]   ;;  %v2479_v52 = vshrl.u32 %v5065_v2, 16 }
 0x252   : > { %2760 = vrot.lane.b32.xlu1 %v5028_v31, %s3913_s15  ;;  %v2573_v38 = vrot.slane %v5028_v31, 1  ;;  %v2469_v37 = vshll.u32 %v5028_v31, 16  ;;  %v2574_v0 = vrot.slane %v3876_v33, 1  ;;  %v2474_v42 = vshll.u32 %v3876_v33, 16 }
 0x253   : > { %v5036_v15 = vpop.permute.xlu1 %2676  ;;  %v2467_v6 = vshrl.u32 %v5028_v31, 16 }
 0x254   : > { %v2827_v9 = vpop.permute.xlu0 %2826  ;;  %v2471_v34 = vrot.slane %v2469_v37, 1  ;;  %v5042_v14 = vsel %vm633_vm0, %v2573_v38, %v2574_v0  ;;  %v2476_v45 = vrot.slane %v2474_v42, 1  ;;  %v2925_v38 = vsel %vm1117_vm8, %v2893_v11, %v5011_v5 }
 0x255   : > { %2842 = vrot.lane.b32.xlu0 %v5042_v14, %s3915_s17 }
 0x256   : > { %v3737_v19 = vpop.f32.mrb[28].mxu0  ;;  %v2472_v28 = vor.u32 %v2471_v34, %v2467_v6  ;;  %v2125_v34 = vld [vmem:[#allocation2 + $0xc8] sm:$0x1] }
 0x257   : > { %v1435_v44 = vadd.f32 %v4852_v54, %v3737_v19  ;;  %v1426_v41 = vpop.f32.mrb[29].mxu0  ;;  %v5050_v40 = vpop.permute.xlu1 %2514 }
 0x258   : > { %v1427_v32 = vadd.f32 %v4852_v54, %v1426_v41  ;;  %v3738_v43 = vpop.f32.mrb[30].mxu0  ;;  %v5053_v23 = vpop.permute.xlu0 %2709  ;;  %v2477_v60 = vsel %vm408_vm1, %v2472_v28, %v2476_v45 }
 0x259   : > { %v1471_v50 = vmax.f32 %v1435_v44, 0.0  ;;  %v1438_v21 = vadd.f32 %v4852_v54, %v3738_v43  ;;  %v1429_v53 = vpop.f32.mrb[31].mxu0  ;;  %2807 = vrot.lane.b32.xlu1 %v2477_v60, %s3916_s20  ;;  %2606 = vrot.lane.b32.xlu0 %v2572_v7, %s3908_s28  ;;  %v2481_v44 = vshll.u32 %v5065_v2, 16 }
 0x25a   : > { %v1469_v8 = vmax.f32 %v1427_v32, 0.0  ;;  %v1430_v57 = vadd.f32 %v4852_v54, %v1429_v53  ;;  %v2118_v32 = vld [vmem:[#allocation2 + $0xbc] sm:$0x1]  ;;  %v3878_v53 = vld [vmem:[#allocation2 + $0xb0] ss:$0 sps:$4 sm:$0x11]  }
 0x25b   : > { %v3659_v10 = vpack.c.bf16 %v1471_v50, %v1471_v50  ;;  %v1472_v58 = vmax.f32 %v1438_v21, 0.0  ;;  %v2792_v55 = vpop.permute.xlu1 %2791  ;;  %v2483_v1 = vrot.slane %v2481_v44, 1 }
 0x25c   : > { %v3657_v29 = vpack.c.bf16 %v1469_v8, %v1469_v8  ;;  %v1470_v48 = vmax.f32 %v1430_v57, 0.0  ;;  %v3054_v63 = vsel %vm3046_vm2, %v3021_v39, %v2792_v55  ;;  %v2794_v62 = vpop.permute.xlu0 %2793 }
 0x25d   : > { %v1949_v47 = vshrl.u32 %v3659_v10, 16  ;;  %v3660_v54 = vpack.c.bf16 %v1472_v58, %v1472_v58  ;;  %2526 = vrot.lane.b32.xlu1 %v4975_v35, %s3906_s26  ;;  %v3087_v7 = vsel %vm3079_vm13, %v3054_v63, %v2827_v9  ;;  %v1952_v18 = vshll.u32 %v3659_v10, 16  ;;  %2643 = vrot.lane.b32.xlu0 %v5028_v31, %s3909_s6  ;;  %v2114_v35 = vld [vmem:[#allocation2 + $0xb4] sm:$0xf] }
 0x25e   : > { %v1932_v16 = vshrl.u32 %v3657_v29, 16  ;;  %v3658_v13 = vpack.c.bf16 %v1470_v48, %v1470_v48  ;;  %3754 = vmatmul.mubr.msk.bf16.gmra.mrb[4].mxu1 %vm3155_vm5, %v3087_v7  ;;  %v1935_v0 = vshll.u32 %v3657_v29, 16  ;;  %v2484_v63 = vor.u32 %v2483_v1, %v2479_v52 }
 0x25f   : > { %v1951_v4 = vrot.slane %v1949_v47, 7  ;;  %v1957_v33 = vshrl.u32 %v3660_v54, 16  ;;  %v2513_v30 = vpop.permute.xlu1 %2512  ;;  %v1960_v20 = vshll.u32 %v3660_v54, 16  ;;  %v2486_v47 = vshll.u32 %v3878_v53, 16 }
 0x260   : > { %v1934_v37 = vrot.slane %v1932_v16, 7  ;;  %v1940_v42 = vshrl.u32 %v3658_v13, 16  ;;  %v2675_v19 = vpop.permute.xlu0 %2674  ;;  %v1943_v46 = vshll.u32 %v3658_v13, 16  ;;  %v2577_v7 = vrot.slane %v3878_v53, 1 }
 0x261   : > { %v1954_v9 = vor.u32 %v1952_v18, %v1951_v4  ;;  %v1959_v6 = vrot.slane %v1957_v33, 7  ;;  %v1955_v41 = vrot.slane %v1951_v4, 4  ;;  %2528 = vrot.lane.b32.xlu1 %v2477_v60, %s3906_s26  ;;  %2690 = vrot.lane.b32.xlu0 %v2477_v60, %s3911_s12  ;;  %v2957_v10 = vsel %vm1183_vm10, %v2925_v38, %v2675_v19  ;;  %v3891_v4 = vld [vmem:[#allocation2 + $0x3c] sm:$0xff]  }
 0x262   : > { %v1937_v28 = vor.u32 %v1935_v0, %v1934_v37  ;;  %v1942_v45 = vrot.slane %v1940_v42, 7  ;;  %v1938_v43 = vrot.slane %v1934_v37, 4  ;;  %v2990_v60 = vsel %vm2980_vm11, %v2957_v10, %v5053_v23 }
 0x263   : > { %v2122_v5 = vsel %vm4553_vm3, %v1954_v9, %v2121_v27  ;;  %v1962_v50 = vor.u32 %v1960_v20, %v1959_v6  ;;  %v1964_v21 = vrot.slane %v1959_v6, 4  ;;  %v5085_v58 = vpop.permute.xlu1 %2633  ;;  %v3023_v55 = vsel %vm3013_vm14, %v2990_v60, %v4986_v56 }
 0x264   : > { %2123 = vst [vmem:[#allocation2 + $0xc0] sm:$0xf] %v2122_v5  ;;  %v2115_v8 = vsel %vm4553_vm3, %v1937_v28, %v2114_v35  ;;  %v1945_v57 = vor.u32 %v1943_v46, %v1942_v45  ;;  %v1947_v25 = vrot.slane %v1942_v45, 4  ;;  %v5093_v39 = vpop.permute.xlu0 %2750  ;;  %v3056_v23 = vsel %vm3046_vm2, %v3023_v55, %v2794_v62 }
 0x265   : > { %2116 = vst [vmem:[#allocation2 + $0xb4] sm:$0xf] %v2115_v8  ;;  %v1963_v59 = vsel %vm4564_vm7, %v1955_v41, %v1962_v50  ;;  %v2126_v61 = vsel %vm4352_vm15, %v1964_v21, %v2125_v34  ;;  %2608 = vrot.lane.b32.xlu1 %v5042_v14, %s3908_s28  ;;  %2725 = vrot.lane.b32.xlu0 %v5042_v14, %s3914_s16  ;;  %v2488_v14 = vrot.slane %v2486_v47, 1  ;;  %v3892_v21 = vld [vmem:[#allocation2 + $0x48] sm:$0xff]  }
 0x266   : > { %2124 = vst.msk [vmem:[#allocation2 + $0xc4] sm:$0xf] %vm1473_vm12, %v1963_v59  ;;  %2127 = vst [vmem:[#allocation2 + $0xc8] sm:$0x1] %v2126_v61  ;;  %v1946_v29 = vsel %vm4564_vm7, %v1938_v43, %v1945_v57  ;;  %v2119_v48 = vsel %vm4352_vm15, %v1947_v25, %v2118_v32  ;;  %v3089_v36 = vsel %vm3079_vm13, %v3056_v23, %v5020_v12  ;;  %v2576_v12 = vrot.slane %v5065_v2, 1 }
 0x267   : > { %2117 = vst.msk [vmem:[#allocation2 + $0xb8] sm:$0xf] %vm1473_vm12, %v1946_v29  ;;  %2120 = vst [vmem:[#allocation2 + $0xbc] sm:$0x1] %v2119_v48  ;;  %v2749_v54 = vpop.permute.xlu1 %2748  ;;  %3757 = vmatprep.mubr.msk.bf16.mxu1 %vm3155_vm5, %v3089_v36  ;;  %v2489_v13 = vsel %vm408_vm1, %v2484_v63, %v2488_v14  ;;  %v2863_v18 = vsel %vm985_vm4, %v3891_v4, %v2513_v30  ;;  %v2865_v53 = vsel %vm985_vm4, %v3892_v21, %v5050_v40 }
 0x268   : > { %v2632_v56 = vpop.permute.xlu0 %2631  ;;  %v2578_v0 = vsel %vm633_vm0, %v2576_v12, %v2577_v7  ;;  %v2895_v35 = vsel %vm1051_vm6, %v2863_v18, %v5024_v3  ;;  %v3884_v12 = vld [vmem:[#allocation2 + $0xd4] ss:$0 sps:$4 sm:$0x11]  }
 0x269   : > { %2645 = vrot.lane.b32.xlu1 %v5065_v2, %s3909_s6  ;;  %2762 = vrot.lane.b32.xlu0 %v5065_v2, %s3913_s15  ;;  %v2927_v19 = vsel %vm1117_vm8, %v2895_v35, %v4982_v51 }
 0x26a   : > { %v2959_v45 = vsel %vm1183_vm10, %v2927_v19, %v5036_v15 }
 0x26b   : > { %v5116_v16 = vpop.permute.xlu1 %2715  ;;  %v2992_v51 = vsel %vm2980_vm11, %v2959_v45, %v5018_v17  ;;  %v2897_v17 = vsel %vm1051_vm6, %v2865_v53, %v5026_v26 }
 0x26c   : > { %v5118_v62 = vpop.permute.xlu0 %2832  ;;  %v3025_v43 = vsel %vm3013_vm14, %v2992_v51, %v2749_v54  ;;  %v2929_v59 = vsel %vm1117_vm8, %v2897_v17, %v2632_v56  ;;  %v3883_v56 = vld [vmem:[#allocation2 + $0xcc] sm:$0xff]  }
 0x26d   : > { %2692 = vrot.lane.b32.xlu1 %v2489_v13, %s3911_s12  ;;  %2809 = vrot.lane.b32.xlu0 %v2489_v13, %s3916_s20  ;;  %v3881_v57 = vld [vmem:[#allocation2 + $0xc0] sm:$0xff]   ;;  %v3882_v29 = vld [vmem:[#allocation2 + $0xc8] ss:$0 sps:$4 sm:$0x11]   ;;  %v2776_v7 = vshll.u32 %v3883_v56, 16  ;;  %v2817_v51 = vrot.slane %v3883_v56, 1 }
 0x26e   : > { %v5123_v11 = vld [vmem:[#allocation2 + $0xb4] sm:$0xff]   ;;  %v3880_v27 = vld [vmem:[#allocation2 + $0xbc] ss:$0 sps:$4 sm:$0x11]   ;;  %v2657_v61 = vshll.u32 %v3881_v57, 16  ;;  %v2655_v36 = vshrl.u32 %v3881_v57, 16 }
 0x26f   : > { %v5127_v33 = vpop.permute.xlu1 %2596  ;;  %v2493_v38 = vshll.u32 %v5123_v11, 16  ;;  %v2579_v42 = vrot.slane %v5123_v11, 1  ;;  %v2580_v9 = vrot.slane %v3880_v27, 1  ;;  %v2491_v6 = vshrl.u32 %v5123_v11, 16 }
 0x270   : > { %v5130_v37 = vpop.permute.xlu0 %2598  ;;  %v2498_v20 = vshll.u32 %v3880_v27, 16  ;;  %v2659_v52 = vrot.slane %v2657_v61, 1  ;;  %v2662_v54 = vshll.u32 %v3882_v29, 16  ;;  %v2698_v27 = vrot.slane %v3881_v57, 1 }
 0x271   : > { %2727 = vrot.lane.b32.xlu1 %v2578_v0, %s3914_s16  ;;  %v2495_v30 = vrot.slane %v2493_v38, 1  ;;  %2844 = vrot.lane.b32.xlu0 %v2578_v0, %s3915_s17  ;;  %v2581_v3 = vsel %vm633_vm0, %v2579_v42, %v2580_v9  ;;  %v2699_v38 = vrot.slane %v3882_v29, 1  ;;  %v2774_v42 = vshrl.u32 %v3883_v56, 16 }
 0x272   : > { %v2500_v28 = vrot.slane %v2498_v20, 1  ;;  %v2660_v14 = vor.u32 %v2659_v52, %v2655_v36  ;;  %v2778_v9 = vrot.slane %v2776_v7, 1 }
 0x273   : > { %v5139_v34 = vpop.permute.xlu1 %2680  ;;  %v2496_v41 = vor.u32 %v2495_v30, %v2491_v6  ;;  %v2781_v30 = vshll.u32 %v3884_v12, 16  ;;  %v2700_v19 = vsel %vm633_vm0, %v2698_v27, %v2699_v38 }
 0x274   : > { %v2831_v44 = vpop.permute.xlu0 %2830 }
 0x275   : > { %2764 = vrot.lane.b32.xlu1 %v5123_v11, %s3913_s15  ;;  %2846 = vrot.lane.b32.xlu0 %v2581_v3, %s3915_s17  ;;  %v2501_v5 = vsel %vm408_vm1, %v2496_v41, %v2500_v28  ;;  %v2779_v41 = vor.u32 %v2778_v9, %v2774_v42 }
 0x277   : > { %v5149_v46 = vpop.permute.xlu1 %2518 }
 0x278   : > { %v2714_v32 = vpop.permute.xlu0 %2713 }
 0x279   : > { %2811 = vrot.lane.b32.xlu1 %v2501_v5, %s3916_s20  ;;  %2610 = vrot.lane.b32.xlu0 %v2578_v0, %s3908_s28  ;;  %v3893_v0 = vld [vmem:[#allocation2 + $0x54] sm:$0xff]  }
 0x27b   : > { %v2796_v50 = vpop.permute.xlu1 %2795 }
 0x27c   : > { %v3058_v15 = vsel %vm3046_vm2, %v3025_v43, %v2796_v50  ;;  %v2798_v8 = vpop.permute.xlu0 %2797  ;;  %v2818_v43 = vrot.slane %v3884_v12, 1 }
 0x27d   : > { %2530 = vrot.lane.b32.xlu1 %v2489_v13, %s3906_s26  ;;  %v3091_v25 = vsel %vm3079_vm13, %v3058_v15, %v2831_v44  ;;  %2647 = vrot.lane.b32.xlu0 %v5123_v11, %s3909_s6  ;;  %v2664_v13 = vrot.slane %v2662_v54, 1 }
 0x27e   : > { %3758 = vmatmul.mubr.msk.bf16.gmra.mrb[8].mxu1 %vm3155_vm5, %v3091_v25  ;;  %v2819_v15 = vsel %vm633_vm0, %v2817_v51, %v2818_v43 }
 0x27f   : > { %v2517_v10 = vpop.permute.xlu1 %2516 }
 0x280   : > { %v2679_v40 = vpop.permute.xlu0 %2678  ;;  %v2867_v35 = vsel %vm985_vm4, %v3893_v0, %v2517_v10 }
 0x281   : > { %v2961_v60 = vsel %vm1183_vm10, %v2929_v59, %v2679_v40  ;;  %2532 = vrot.lane.b32.xlu1 %v2501_v5, %s3906_s26  ;;  %2694 = vrot.lane.b32.xlu0 %v2501_v5, %s3911_s12  ;;  %v2899_v44 = vsel %vm1051_vm6, %v2867_v35, %v5127_v33 }
 0x282   : > { %v2994_v1 = vsel %vm2980_vm11, %v2961_v60, %v2714_v32  ;;  %v2931_v45 = vsel %vm1117_vm8, %v2899_v44, %v5085_v58 }
 0x283   : > { %v3027_v48 = vsel %vm3013_vm14, %v2994_v1, %v5093_v39  ;;  %v5174_v55 = vpop.permute.xlu1 %2637  ;;  %v2963_v33 = vsel %vm1183_vm10, %v2931_v45, %v5139_v34 }
 0x284   : > { %v5176_v26 = vpop.permute.xlu0 %2754  ;;  %v3060_v23 = vsel %vm3046_vm2, %v3027_v48, %v2798_v8  ;;  %v2996_v53 = vsel %vm2980_vm11, %v2963_v33, %v5116_v16 }
 0x285   : > { %2612 = vrot.lane.b32.xlu1 %v2581_v3, %s3908_s28  ;;  %v3093_v47 = vsel %vm3079_vm13, %v3060_v23, %v5118_v62  ;;  %2729 = vrot.lane.b32.xlu0 %v2581_v3, %s3914_s16  ;;  %v2665_v62 = vsel %vm408_vm1, %v2660_v14, %v2664_v13  ;;  %v2783_v3 = vrot.slane %v2781_v30, 1 }
 0x286   : > { %3761 = vmatprep.mubr.msk.bf16.mxu1 %vm3155_vm5, %v3093_v47 }
 0x287   : > { %v2753_v39 = vpop.permute.xlu1 %2752  ;;  %v2784_v5 = vsel %vm408_vm1, %v2779_v41, %v2783_v3 }
 0x288   : > { %v2636_v63 = vpop.permute.xlu0 %2635  ;;  %v3029_v58 = vsel %vm3013_vm14, %v2996_v53, %v2753_v39 }
 0x289   : > { %2649 = vrot.lane.b32.xlu1 %v3881_v57, %s3909_s6  ;;  %2766 = vrot.lane.b32.xlu0 %v3881_v57, %s3913_s15  ;;  %v3894_v57 = vld [vmem:[#allocation2 + $0x60] sm:$0xff]   ;;  %s3628_s6 = sshll.u32 %s5419_s19, 8 }
 0x28a   : > { %v2869_v25 = vsel %vm985_vm4, %v3894_v57, %v5149_v46  ;;  %s5302_s13 = scalar_lea.vmem %s5407_s5, %s3628_s6 }
 0x28b   : > { %v2720_v4 = vpop.permute.xlu1 %2719  ;;  %v2901_v16 = vsel %vm1051_vm6, %v2869_v25, %v5130_v37 }
 0x28c   : > { %v2837_v18 = vpop.permute.xlu0 %2836  ;;  %v2933_v40 = vsel %vm1117_vm8, %v2901_v16, %v2636_v63 }
 0x28d   : > { %2696 = vrot.lane.b32.xlu1 %v2665_v62, %s3911_s12  ;;  %2813 = vrot.lane.b32.xlu0 %v2665_v62, %s3916_s20  ;;  %v3895_v62 = vld [vmem:[#allocation2 + $0x78] sm:$0xff]  }
 0x28f   : > { %v2601_v6 = vpop.permute.xlu1 %2600 }
 0x290   : > { %v2603_v20 = vpop.permute.xlu0 %2602 }
 0x291   : > { %2731 = vrot.lane.b32.xlu1 %v2700_v19, %s3914_s16  ;;  %2848 = vrot.lane.b32.xlu0 %v2700_v19, %s3915_s17 }
 0x293   : > { %v2685_v28 = vpop.permute.xlu1 %2684 }
 0x294   : > { %v2835_v32 = vpop.permute.xlu0 %2834 }
 0x295   : > { %2768 = vrot.lane.b32.xlu1 %v3883_v56, %s3913_s15 }
 0x297   : > { %v2523_v50 = vpop.permute.xlu1 %2522 }
 0x298   : > { %v2718_v21 = vpop.permute.xlu0 %2717  ;;  %v2873_v27 = vsel %vm985_vm4, %v3895_v62, %v2523_v50 }
 0x299   : > { %2815 = vrot.lane.b32.xlu1 %v2784_v5, %s3916_s20  ;;  %v2905_v0 = vsel %vm1051_vm6, %v2873_v27, %v2603_v20 }
 0x29b   : > { %v2800_v8 = vpop.permute.xlu1 %2799 }
 0x29c   : > { %v3062_v17 = vsel %vm3046_vm2, %v3029_v58, %v2800_v8  ;;  %v2802_v10 = vpop.permute.xlu0 %2801 }
 0x29d   : > { %2850 = vrot.lane.b32.xlu1 %v2819_v15, %s3915_s17  ;;  %v3095_v34 = vsel %vm3079_vm13, %v3062_v17, %v2835_v32 }
 0x29e   : > { %3762 = vmatmul.mubr.msk.bf16.gmra.mrb[12].mxu1 %vm3155_vm5, %v3095_v34 }
 0x29f   : > { %v2521_v59 = vpop.permute.xlu1 %2520 }
 0x2a0   : > { %v2683_v61 = vpop.permute.xlu0 %2682  ;;  %v2871_v60 = vsel %vm985_vm4, %v4832_v49, %v2521_v59 }
 0x2a1   : > { %v2965_v46 = vsel %vm1183_vm10, %v2933_v40, %v2683_v61  ;;  %v2903_v48 = vsel %vm1051_vm6, %v2871_v60, %v2601_v6 }
 0x2a2   : > { %v2998_v1 = vsel %vm2980_vm11, %v2965_v46, %v2718_v21  ;;  %v2935_v47 = vsel %vm1117_vm8, %v2903_v48, %v5174_v55 }
 0x2a3   : > { %v3031_v29 = vsel %vm3013_vm14, %v2998_v1, %v5176_v26  ;;  %v2967_v54 = vsel %vm1183_vm10, %v2935_v47, %v2685_v28 }
 0x2a4   : > { %v2757_v23 = vpop.permute.xlu1 %2756  ;;  %v3064_v52 = vsel %vm3046_vm2, %v3031_v29, %v2802_v10  ;;  %v3000_v26 = vsel %vm2980_vm11, %v2967_v54, %v2720_v4 }
 0x2a5   : > { %v3097_v37 = vsel %vm3079_vm13, %v3064_v52, %v2837_v18  ;;  %v3033_v63 = vsel %vm3013_vm14, %v3000_v26, %v2757_v23 }
 0x2a6   : > { %3765 = vmatprep.mubr.msk.bf16.mxu1 %vm3155_vm5, %v3097_v37 }
 0x2a7   : > { %v2839_v49 = vpop.permute.xlu0 %2838 }
 0x2a8   : > { %v2642_v36 = vpop.permute.xlu1 %2641 }
 0x2ab   : > { %v2640_v56 = vpop.permute.xlu0 %2639 }
 0x2ac   : > { %v2605_v39 = vpop.permute.xlu1 %2604  ;;  %v2937_v4 = vsel %vm1117_vm8, %v2905_v0, %v2640_v56 }
 0x2af   : > { %v2687_v14 = vpop.permute.xlu0 %2686 }
 0x2b0   : > { %v2804_v13 = vpop.permute.xlu1 %2803  ;;  %v2969_v42 = vsel %vm1183_vm10, %v2937_v4, %v2687_v14 }
 0x2b1   : > { %v3066_v12 = vsel %vm3046_vm2, %v3033_v63, %v2804_v13 }
 0x2b2   : > { %v3099_v7 = vsel %vm3079_vm13, %v3066_v12, %v2839_v49 }
 0x2b3   : > { %3766 = vmatmul.mubr.msk.bf16.gmra.mrb[16].mxu1 %vm3155_vm5, %v3099_v7  ;;  %v2722_v18 = vpop.permute.xlu0 %2721 }
 0x2b4   : > { %v2525_v55 = vpop.permute.xlu1 %2524  ;;  %v3002_v30 = vsel %vm2980_vm11, %v2969_v42, %v2722_v18 }
 0x2b5   : > { %v2875_v19 = vsel %vm985_vm4, %v4919_v24, %v2525_v55 }
 0x2b6   : > { %v2907_v20 = vsel %vm1051_vm6, %v2875_v19, %v2605_v39 }
 0x2b7   : > { %v2759_v38 = vpop.permute.xlu0 %2758  ;;  %v2939_v45 = vsel %vm1117_vm8, %v2907_v20, %v2642_v36 }
 0x2b8   : > { %v2689_v9 = vpop.permute.xlu1 %2688  ;;  %v3035_v6 = vsel %vm3013_vm14, %v3002_v30, %v2759_v38 }
 0x2b9   : > { %v2971_v51 = vsel %vm1183_vm10, %v2939_v45, %v2689_v9 }
 0x2bb   : > { %v2806_v35 = vpop.permute.xlu0 %2805 }
 0x2bc   : > { %v3068_v44 = vsel %vm3046_vm2, %v3035_v6, %v2806_v35  ;;  %v2724_v28 = vpop.permute.xlu1 %2723 }
 0x2bd   : > { %v3004_v43 = vsel %vm2980_vm11, %v2971_v51, %v2724_v28 }
 0x2bf   : > { %v2841_v41 = vpop.permute.xlu0 %2840 }
 0x2c0   : > { %v3101_v3 = vsel %vm3079_vm13, %v3068_v44, %v2841_v41 }
 0x2c1   : > { %3769 = vmatprep.mubr.msk.bf16.mxu1 %vm3155_vm5, %v3101_v3 }
 0x2c4   : > { %v2761_v32 = vpop.permute.xlu1 %2760 }
 0x2c5   : > { %v3037_v24 = vsel %vm3013_vm14, %v3004_v43, %v2761_v32 }
 0x2c7   : > { %v2843_v5 = vpop.permute.xlu0 %2842 }
 0x2cb   : > { %v2808_v33 = vpop.permute.xlu1 %2807  ;;  %v2607_v21 = vpop.permute.xlu0 %2606 }
 0x2cc   : > { %v3070_v50 = vsel %vm3046_vm2, %v3037_v24, %v2808_v33 }
 0x2cd   : > { %v3103_v53 = vsel %vm3079_vm13, %v3070_v50, %v2843_v5 }
 0x2ce   : > { %3770 = vmatmul.mubr.msk.bf16.gmra.mrb[20].mxu1 %vm3155_vm5, %v3103_v53 }
 0x2cf   : > { %v2527_v15 = vpop.permute.xlu1 %2526  ;;  %v2644_v58 = vpop.permute.xlu0 %2643 }
 0x2d0   : > { %v2877_v17 = vsel %vm985_vm4, %v4917_v22, %v2527_v15 }
 0x2d1   : > { %v2909_v34 = vsel %vm1051_vm6, %v2877_v17, %v2607_v21 }
 0x2d2   : > { %v2941_v40 = vsel %vm1117_vm8, %v2909_v34, %v2644_v58 }
 0x2d3   : > { %v2529_v8 = vpop.permute.xlu1 %2528  ;;  %v2691_v57 = vpop.permute.xlu0 %2690 }
 0x2d4   : > { %v2973_v46 = vsel %vm1183_vm10, %v2941_v40, %v2691_v57  ;;  %v2879_v37 = vsel %vm985_vm4, %v5028_v31, %v2529_v8 }
 0x2d7   : > { %v2609_v25 = vpop.permute.xlu1 %2608  ;;  %v2726_v10 = vpop.permute.xlu0 %2725 }
 0x2d8   : > { %v3006_v1 = vsel %vm2980_vm11, %v2973_v46, %v2726_v10  ;;  %v2911_v47 = vsel %vm1051_vm6, %v2879_v37, %v2609_v25 }
 0x2db   : > { %v2646_v16 = vpop.permute.xlu1 %2645  ;;  %v2763_v59 = vpop.permute.xlu0 %2762 }
 0x2dc   : > { %v3039_v29 = vsel %vm3013_vm14, %v3006_v1, %v2763_v59  ;;  %v2943_v36 = vsel %vm1117_vm8, %v2911_v47, %v2646_v16 }
 0x2df   : > { %v2693_v61 = vpop.permute.xlu1 %2692  ;;  %v2810_v60 = vpop.permute.xlu0 %2809 }
 0x2e0   : > { %v3072_v23 = vsel %vm3046_vm2, %v3039_v29, %v2810_v60  ;;  %v2975_v56 = vsel %vm1183_vm10, %v2943_v36, %v2693_v61 }
 0x2e3   : > { %v2728_v48 = vpop.permute.xlu1 %2727  ;;  %v2845_v52 = vpop.permute.xlu0 %2844 }
 0x2e4   : > { %v3105_v22 = vsel %vm3079_vm13, %v3072_v23, %v2845_v52  ;;  %v3008_v39 = vsel %vm2980_vm11, %v2975_v56, %v2728_v48 }
 0x2e5   : > { %3773 = vmatprep.mubr.msk.bf16.mxu1 %vm3155_vm5, %v3105_v22 }
 0x2e7   : > { %v2765_v49 = vpop.permute.xlu1 %2764  ;;  %v2847_v54 = vpop.permute.xlu0 %2846 }
 0x2e8   : > { %v3041_v26 = vsel %vm3013_vm14, %v3008_v39, %v2765_v49 }
 0x2eb   : > { %v2812_v63 = vpop.permute.xlu1 %2811  ;;  %v2611_v13 = vpop.permute.xlu0 %2610 }
 0x2ec   : > { %v3074_v14 = vsel %vm3046_vm2, %v3041_v26, %v2812_v63 }
 0x2ed   : > { %v3107_v31 = vsel %vm3079_vm13, %v3074_v14, %v2847_v54 }
 0x2ee   : > { %3774 = vmatmul.mubr.msk.bf16.gmra.mrb[24].mxu1 %vm3155_vm5, %v3107_v31 }
 0x2ef   : > { %v2531_v12 = vpop.permute.xlu1 %2530  ;;  %v2648_v7 = vpop.permute.xlu0 %2647 }
 0x2f0   : > { %v2881_v27 = vsel %vm985_vm4, %v5065_v2, %v2531_v12 }
 0x2f1   : > { %v2913_v0 = vsel %vm1051_vm6, %v2881_v27, %v2611_v13 }
 0x2f2   : > { %v2945_v42 = vsel %vm1117_vm8, %v2913_v0, %v2648_v7 }
 0x2f3   : > { %v2533_v18 = vpop.permute.xlu1 %2532  ;;  %v2695_v55 = vpop.permute.xlu0 %2694 }
 0x2f4   : > { %v2977_v6 = vsel %vm1183_vm10, %v2945_v42, %v2695_v55  ;;  %v2883_v45 = vsel %vm985_vm4, %v5123_v11, %v2533_v18  ;;  %v5294_v11 = vld [vmem:[%s5406_s4] ss:$0 sm:$0xff] }
 0x2f7   : > { %v2613_v62 = vpop.permute.xlu1 %2612  ;;  %v2730_v38 = vpop.permute.xlu0 %2729 }
 0x2f8   : > { %v3010_v19 = vsel %vm2980_vm11, %v2977_v6, %v2730_v38  ;;  %v2915_v32 = vsel %vm1051_vm6, %v2883_v45, %v2613_v62 }
 0x2fb   : > { %v2650_v4 = vpop.permute.xlu1 %2649  ;;  %v2767_v35 = vpop.permute.xlu0 %2766 }
 0x2fc   : > { %v3043_v44 = vsel %vm3013_vm14, %v3010_v19, %v2767_v35  ;;  %v2947_v5 = vsel %vm1117_vm8, %v2915_v32, %v2650_v4 }
 0x2ff   : > { %v2697_v9 = vpop.permute.xlu1 %2696  ;;  %v2814_v30 = vpop.permute.xlu0 %2813 }
 0x300   : > { %v3076_v3 = vsel %vm3046_vm2, %v3043_v44, %v2814_v30  ;;  %v2979_v43 = vsel %vm1183_vm10, %v2947_v5, %v2697_v9 }
 0x303   : > { %v2732_v41 = vpop.permute.xlu1 %2731  ;;  %v2849_v2 = vpop.permute.xlu0 %2848 }
 0x304   : > { %v3109_v20 = vsel %vm3079_vm13, %v3076_v3, %v2849_v2  ;;  %v3012_v24 = vsel %vm2980_vm11, %v2979_v43, %v2732_v41 }
 0x305   : > { %3777 = vmatprep.mubr.msk.bf16.mxu1 %vm3155_vm5, %v3109_v20 }
 0x307   : > { %v2769_v28 = vpop.permute.xlu1 %2768 }
 0x308   : > { %v3045_v33 = vsel %vm3013_vm14, %v3012_v24, %v2769_v28 }
 0x30b   : > { %v2816_v51 = vpop.permute.xlu1 %2815 }
 0x30c   : > { %v3078_v50 = vsel %vm3046_vm2, %v3045_v33, %v2816_v51 }
 0x30f   : > { %v2851_v21 = vpop.permute.xlu1 %2850 }
 0x310   : > { %v3111_v53 = vsel %vm3079_vm13, %v3078_v50, %v2851_v21 }
 0x311   : > { %3778 = vmatmul.mubr.msk.bf16.gmra.mrb[28].mxu1 %vm3155_vm5, %v3111_v53  ;;  %v3751_v15 = vpop.f32.mrb[0].mxu1 }
 0x312   : > { %v3235_v58 = vadd.f32 %v3751_v15, %v5294_v11  ;;  %v3226_v8 = vpop.f32.mrb[1].mxu1 }
 0x313   : > { %v3227_v57 = vadd.f32 %v5294_v11, %v3226_v8  ;;  %v3752_v25 = vpop.f32.mrb[2].mxu1 }
 0x314   : > { %v3355_v17 = vmax.f32 %v3235_v58, 0.0  ;;  %v3238_v10 = vadd.f32 %v3752_v25, %v5294_v11  ;;  %v3229_v34 = vpop.f32.mrb[3].mxu1 }
 0x315   : > { %v3353_v16 = vmax.f32 %v3227_v57, 0.0  ;;  %v3230_v59 = vadd.f32 %v5294_v11, %v3229_v34 }
 0x316   : > { %3387 = vst.msk [vmem:[%s5302_s13 + $0x10] sm:$0xff] %vm985_vm4, %v3355_v17  ;;  %v3356_v40 = vmax.f32 %v3238_v10, 0.0 }
 0x317   : > { %3385 = vst.msk [vmem:[%s5302_s13] sm:$0xff] %vm985_vm4, %v3353_v16  ;;  %v3354_v61 = vmax.f32 %v3230_v59, 0.0 }
 0x318   : > { %3388 = vst.msk [vmem:[%s5302_s13 + $0x18] sm:$0xff] %vm985_vm4, %v3356_v40 }
 0x319   : > { %3386 = vst.msk [vmem:[%s5302_s13 + $0x8] sm:$0xff] %vm985_vm4, %v3354_v61 }
 0x331   : > { %v3755_v60 = vpop.f32.mrb[4].mxu1 }
 0x332   : > { %v3251_v46 = vadd.f32 %v3755_v60, %v5294_v11  ;;  %v3242_v1 = vpop.f32.mrb[5].mxu1 }
 0x333   : > { %v3243_v29 = vadd.f32 %v5294_v11, %v3242_v1  ;;  %v3756_v48 = vpop.f32.mrb[6].mxu1 }
 0x334   : > { %v3359_v23 = vmax.f32 %v3251_v46, 0.0  ;;  %v3254_v52 = vadd.f32 %v3756_v48, %v5294_v11  ;;  %v3245_v22 = vpop.f32.mrb[7].mxu1 }
 0x335   : > { %v3357_v37 = vmax.f32 %v3243_v29, 0.0  ;;  %v3246_v47 = vadd.f32 %v5294_v11, %v3245_v22 }
 0x336   : > { %3391 = vst.msk [vmem:[%s5302_s13 + $0x30] sm:$0xff] %vm985_vm4, %v3359_v23  ;;  %v3360_v49 = vmax.f32 %v3254_v52, 0.0 }
 0x337   : > { %3389 = vst.msk [vmem:[%s5302_s13 + $0x20] sm:$0xff] %vm985_vm4, %v3357_v37  ;;  %v3358_v36 = vmax.f32 %v3246_v47, 0.0 }
 0x338   : > { %3392 = vst.msk [vmem:[%s5302_s13 + $0x38] sm:$0xff] %vm985_vm4, %v3360_v49 }
 0x339   : > { %3390 = vst.msk [vmem:[%s5302_s13 + $0x28] sm:$0xff] %vm985_vm4, %v3358_v36 }
 0x351   : > { %v3759_v54 = vpop.f32.mrb[8].mxu1 }
 0x352   : > { %v3267_v56 = vadd.f32 %v3759_v54, %v5294_v11  ;;  %v3258_v39 = vpop.f32.mrb[9].mxu1 }
 0x353   : > { %v3259_v26 = vadd.f32 %v5294_v11, %v3258_v39  ;;  %v3760_v63 = vpop.f32.mrb[10].mxu1 }
 0x354   : > { %v3363_v14 = vmax.f32 %v3267_v56, 0.0  ;;  %v3270_v13 = vadd.f32 %v3760_v63, %v5294_v11  ;;  %v3261_v31 = vpop.f32.mrb[11].mxu1 }
 0x355   : > { %v3361_v12 = vmax.f32 %v3259_v26, 0.0  ;;  %v3262_v7 = vadd.f32 %v5294_v11, %v3261_v31 }
 0x356   : > { %3395 = vst.msk [vmem:[%s5302_s13 + $0x50] sm:$0xff] %vm985_vm4, %v3363_v14  ;;  %v3364_v18 = vmax.f32 %v3270_v13, 0.0 }
 0x357   : > { %3393 = vst.msk [vmem:[%s5302_s13 + $0x40] sm:$0xff] %vm985_vm4, %v3361_v12  ;;  %v3362_v55 = vmax.f32 %v3262_v7, 0.0 }
 0x358   : > { %3396 = vst.msk [vmem:[%s5302_s13 + $0x58] sm:$0xff] %vm985_vm4, %v3364_v18 }
 0x359   : > { %3394 = vst.msk [vmem:[%s5302_s13 + $0x48] sm:$0xff] %vm985_vm4, %v3362_v55 }
 0x371   : > { %v3763_v62 = vpop.f32.mrb[12].mxu1 }
 0x372   : > { %v3283_v27 = vadd.f32 %v3763_v62, %v5294_v11  ;;  %v3274_v38 = vpop.f32.mrb[13].mxu1 }
 0x373   : > { %v3275_v0 = vadd.f32 %v5294_v11, %v3274_v38  ;;  %v3764_v4 = vpop.f32.mrb[14].mxu1 }
 0x374   : > { %v3367_v35 = vmax.f32 %v3283_v27, 0.0  ;;  %v3286_v42 = vadd.f32 %v3764_v4, %v5294_v11  ;;  %v3277_v9 = vpop.f32.mrb[15].mxu1 }
 0x375   : > { %v3365_v30 = vmax.f32 %v3275_v0, 0.0  ;;  %v3278_v6 = vadd.f32 %v5294_v11, %v3277_v9 }
 0x376   : > { %3399 = vst.msk [vmem:[%s5302_s13 + $0x70] sm:$0xff] %vm985_vm4, %v3367_v35  ;;  %v3368_v19 = vmax.f32 %v3286_v42, 0.0 }
 0x377   : > { %3397 = vst.msk [vmem:[%s5302_s13 + $0x60] sm:$0xff] %vm985_vm4, %v3365_v30  ;;  %v3366_v44 = vmax.f32 %v3278_v6, 0.0 }
 0x378   : > { %3400 = vst.msk [vmem:[%s5302_s13 + $0x78] sm:$0xff] %vm985_vm4, %v3368_v19 }
 0x379   : > { %3398 = vst.msk [vmem:[%s5302_s13 + $0x68] sm:$0xff] %vm985_vm4, %v3366_v44 }
 0x386   : > { %v3767_v41 = vpop.f32.mrb[16].mxu1 }
 0x387   : > { %v3299_v3 = vadd.f32 %v3767_v41, %v5294_v11  ;;  %v3290_v2 = vpop.f32.mrb[17].mxu1 }
 0x388   : > { %v3291_v20 = vadd.f32 %v5294_v11, %v3290_v2  ;;  %v3768_v28 = vpop.f32.mrb[18].mxu1 }
 0x389   : > { %v3371_v45 = vmax.f32 %v3299_v3, 0.0  ;;  %v3302_v32 = vadd.f32 %v3768_v28, %v5294_v11  ;;  %v3293_v5 = vpop.f32.mrb[19].mxu1 }
 0x38a   : > { %v3369_v51 = vmax.f32 %v3291_v20, 0.0  ;;  %v3294_v43 = vadd.f32 %v5294_v11, %v3293_v5 }
 0x38b   : > { %3403 = vst.msk [vmem:[%s5302_s13 + $0x90] sm:$0xff] %vm985_vm4, %v3371_v45  ;;  %v3372_v24 = vmax.f32 %v3302_v32, 0.0 }
 0x38c   : > { %3401 = vst.msk [vmem:[%s5302_s13 + $0x80] sm:$0xff] %vm985_vm4, %v3369_v51  ;;  %v3370_v33 = vmax.f32 %v3294_v43, 0.0 }
 0x38d   : > { %3404 = vst.msk [vmem:[%s5302_s13 + $0x98] sm:$0xff] %vm985_vm4, %v3372_v24 }
 0x38e   : > { %3402 = vst.msk [vmem:[%s5302_s13 + $0x88] sm:$0xff] %vm985_vm4, %v3370_v33 }
 0x3a1   : > { %v3771_v50 = vpop.f32.mrb[20].mxu1 }
 0x3a2   : > { %v3315_v21 = vadd.f32 %v3771_v50, %v5294_v11  ;;  %v3306_v53 = vpop.f32.mrb[21].mxu1 }
 0x3a3   : > { %v3307_v15 = vadd.f32 %v5294_v11, %v3306_v53  ;;  %v3772_v58 = vpop.f32.mrb[22].mxu1 }
 0x3a4   : > { %v3375_v8 = vmax.f32 %v3315_v21, 0.0  ;;  %v3318_v57 = vadd.f32 %v3772_v58, %v5294_v11  ;;  %v3309_v25 = vpop.f32.mrb[23].mxu1 }
 0x3a5   : > { %v3373_v17 = vmax.f32 %v3307_v15, 0.0  ;;  %v3310_v10 = vadd.f32 %v5294_v11, %v3309_v25 }
 0x3a6   : > { %3407 = vst.msk [vmem:[%s5302_s13 + $0xb0] sm:$0xff] %vm985_vm4, %v3375_v8  ;;  %v3376_v34 = vmax.f32 %v3318_v57, 0.0 }
 0x3a7   : > { %3405 = vst.msk [vmem:[%s5302_s13 + $0xa0] sm:$0xff] %vm985_vm4, %v3373_v17  ;;  %v3374_v16 = vmax.f32 %v3310_v10, 0.0 }
 0x3a8   : > { %3408 = vst.msk [vmem:[%s5302_s13 + $0xb8] sm:$0xff] %vm985_vm4, %v3376_v34 }
 0x3a9   : > { %3406 = vst.msk [vmem:[%s5302_s13 + $0xa8] sm:$0xff] %vm985_vm4, %v3374_v16 }
 0x3c1   : > { %v3775_v59 = vpop.f32.mrb[24].mxu1 }
 0x3c2   : > { %v3331_v40 = vadd.f32 %v3775_v59, %v5294_v11  ;;  %v3322_v61 = vpop.f32.mrb[25].mxu1 }
 0x3c3   : > { %v3323_v60 = vadd.f32 %v5294_v11, %v3322_v61  ;;  %v3776_v46 = vpop.f32.mrb[26].mxu1 }
 0x3c4   : > { %v3379_v1 = vmax.f32 %v3331_v40, 0.0  ;;  %v3334_v29 = vadd.f32 %v3776_v46, %v5294_v11  ;;  %v3325_v48 = vpop.f32.mrb[27].mxu1 }
 0x3c5   : > { %v3377_v23 = vmax.f32 %v3323_v60, 0.0  ;;  %v3326_v52 = vadd.f32 %v5294_v11, %v3325_v48 }
 0x3c6   : > { %3411 = vst.msk [vmem:[%s5302_s13 + $0xd0] sm:$0xff] %vm985_vm4, %v3379_v1  ;;  %v3380_v22 = vmax.f32 %v3334_v29, 0.0 }
 0x3c7   : > { %3409 = vst.msk [vmem:[%s5302_s13 + $0xc0] sm:$0xff] %vm985_vm4, %v3377_v23  ;;  %v3378_v37 = vmax.f32 %v3326_v52, 0.0 }
 0x3c8   : > { %3412 = vst.msk [vmem:[%s5302_s13 + $0xd8] sm:$0xff] %vm985_vm4, %v3380_v22 }
 0x3c9   : > { %3410 = vst.msk [vmem:[%s5302_s13 + $0xc8] sm:$0xff] %vm985_vm4, %v3378_v37 }
 0x3e4   : > { %v3779_v47 = vpop.f32.mrb[28].mxu1 }
 0x3e5   : > { %v3347_v49 = vadd.f32 %v3779_v47, %v5294_v11  ;;  %v3338_v36 = vpop.f32.mrb[29].mxu1 }
 0x3e6   : > { %v3339_v54 = vadd.f32 %v5294_v11, %v3338_v36  ;;  %v3780_v56 = vpop.f32.mrb[30].mxu1 }
 0x3e7   : > { %v3383_v39 = vmax.f32 %v3347_v49, 0.0  ;;  %v3350_v26 = vadd.f32 %v3780_v56, %v5294_v11  ;;  %v3341_v63 = vpop.f32.mrb[31].mxu1 }
 0x3e8   : > { %v3381_v14 = vmax.f32 %v3339_v54, 0.0  ;;  %v3342_v13 = vadd.f32 %v5294_v11, %v3341_v63 }
 0x3e9   : > { %3415 = vst.msk [vmem:[%s5302_s13 + $0xf0] sm:$0xff] %vm985_vm4, %v3383_v39  ;;  %v3384_v31 = vmax.f32 %v3350_v26, 0.0 }
 0x3ea   : > { %3413 = vst.msk [vmem:[%s5302_s13 + $0xe0] sm:$0xff] %vm985_vm4, %v3381_v14  ;;  %v3382_v12 = vmax.f32 %v3342_v13, 0.0 }
 0x3eb   : > { %3416 = vst.msk [vmem:[%s5302_s13 + $0xf8] sm:$0xff] %vm985_vm4, %v3384_v31 }
 0x3ec   : > { %3414 = vst.msk [vmem:[%s5302_s13 + $0xe8] sm:$0xff] %vm985_vm4, %v3382_v12 }
 0x3ed PF: > { %s15_s18 = sadd.s32 1, %s3902_s18  }
 0x3ee   : > { %p12_p4 = scmp.ge.s32.totalorder %s15_s18, 4  }
 0x3f0   :  { %14 = sbr.rel (!%p12_p4) target bundleno = 1 (0x1), region = 72 }

</bundles_post_ra>
